<compile_context>
chip_gen: v5e
topology: v5e:2x2
jax: 0.10.0
libtpu: 0.0.40
codegen_flags: <defaults>
</compile_context>

<pallas_src>
import functools

import jax
import jax.numpy as jnp
from jax.experimental import pallas as pl
from jax.experimental.pallas import tpu as pltpu  # noqa: F401

NEG_SLOPE_ACT3 = 0.01   # nn.LeakyReLU() default
NEG_SLOPE_GAT = 0.2     # GATConv default negative_slope
NEG_BIG = -1e30
HIDDEN = 64             # LSTM / time-branch hidden size


def _full_spec(shape):
    # Single grid step, full-array block (block_shape == array shape is legal).
    return pl.BlockSpec(shape, lambda i, _nd=len(shape): (0,) * _nd)


# ----------------------------------------------------------------------------
# Fused forward kernel
# ----------------------------------------------------------------------------
def _fused_forward_kernel(*refs, hidden):
    (x_poi_ref, x_svi_ref, t_ref, adj_ref,
     poi1_w, poi1_b, poi2_w, poi2_b,
     svi1_w, svi1_b, svi2_w, svi2_b,
     all1_w, all1_b, all2_w, all2_b,
     g1_w, g1_as, g1_ad, g1_b,
     g2_w, g2_as, g2_ad, g2_b,
     g3_w, g3_as, g3_ad, g3_b,
     l1_w, l1_b, l2_w, l2_b, l3_w, l3_b,
     t1_w, t1_b, t2_w, t2_b,
     f1_w, f1_b, f2_w, f2_b, f3_w, f3_b,
     o_ref) = refs

    def mm(x, w):
        # MXU matmul: bf16 inputs, f32 accumulation.
        return jnp.dot(x.astype(jnp.bfloat16), w,
                       preferred_element_type=jnp.float32)

    def leaky(y, slope):
        return jnp.where(y > 0, y, slope * y)

    def dense(x, w_ref, b_ref, act):
        y = mm(x, w_ref[...]) + b_ref[...]
        if act == "leaky":
            y = leaky(y, NEG_SLOPE_ACT3)
        elif act == "relu":
            y = jnp.maximum(y, 0.0)
        return y

    # Adjacency mask loaded once, reused by all three GAT layers.
    mask = adj_ref[...] > 0.5

    def gat(x, w_ref, as_ref, ad_ref, b_ref):
        h = mm(x, w_ref[...])                                         # (N, F)
        a_src = jnp.sum(h * as_ref[...], axis=-1, keepdims=True)      # (N, 1)
        a_dst = jnp.sum(h * ad_ref[...], axis=-1, keepdims=True)      # (N, 1)
        # e[i, j] = LeakyReLU_0.2(a_dst[i] + a_src[j])
        e = a_dst + a_src.T                                           # (N, N)
        e = leaky(e, NEG_SLOPE_GAT)
        e = jnp.where(mask, e, NEG_BIG)
        m = jnp.max(e, axis=-1, keepdims=True)
        p = jnp.exp(e - m)
        p = jnp.where(mask, p, 0.0)
        denom = jnp.sum(p, axis=-1, keepdims=True)
        alpha = p * pl.reciprocal(denom, approx=True)
        out = jnp.dot(alpha.astype(jnp.bfloat16), h.astype(jnp.bfloat16),
                      preferred_element_type=jnp.float32) + b_ref[...]
        # act3 (LeakyReLU 0.01) follows every GAT layer in the module.
        return leaky(out, NEG_SLOPE_ACT3)

    def lstm_cell(x, w_ref, b_ref):
        # Forget gate dropped at init (c0 == 0): gates packed as [i, g, o].
        g = mm(x, w_ref[...]) + b_ref[...]                            # (N, 3H)
        i_g = jax.nn.sigmoid(g[:, 0:hidden])
        c_g = jnp.tanh(g[:, hidden:2 * hidden])
        o_g = jax.nn.sigmoid(g[:, 2 * hidden:3 * hidden])
        return o_g * jnp.tanh(i_g * c_g)

    # ---- POI / SVI branches -------------------------------------------------
    p = dense(x_poi_ref[...], poi1_w, poi1_b, "leaky")                # (N, 64)
    p = dense(p, poi2_w, poi2_b, "leaky")
    s = dense(x_svi_ref[...], svi1_w, svi1_b, "leaky")                # (N, 128)
    s = dense(s, svi2_w, svi2_b, "leaky")

    # concat(poi, svi) @ W_all1  ==  poi @ W[:64] + svi @ W[64:192]  (no concat)
    x = mm(p, all1_w[0:64, :]) + mm(s, all1_w[64:192, :]) + all1_b[...]
    x = leaky(x, NEG_SLOPE_ACT3)
    x = dense(x, all2_w, all2_b, "leaky")                             # (N, 128)

    # ---- GAT stack ----------------------------------------------------------
    x = gat(x, g1_w, g1_as, g1_ad, g1_b)                              # (N, 128)
    x = gat(x, g2_w, g2_as, g2_ad, g2_b)                              # (N, 128)
    x = gat(x, g3_w, g3_as, g3_ad, g3_b)                              # (N, 64)

    # ---- LSTM (seq_len == 1, zero initial state) + time MLPs ---------------
    t = lstm_cell(t_ref[...], l1_w, l1_b)                             # (N, 64)
    t = lstm_cell(t, l2_w, l2_b)
    t = lstm_cell(t, l3_w, l3_b)
    t = dense(t, t1_w, t1_b, "leaky")
    t = dense(t, t2_w, t2_b, "leaky")

    # concat(gat, time) @ W_lin1  ==  gat @ W[:64] + time @ W[64:128]
    y = mm(x, f1_w[0:64, :]) + mm(t, f1_w[64:128, :]) + f1_b[...]
    y = jnp.maximum(y, 0.0)
    y = dense(y, f2_w, f2_b, "relu")
    o_ref[...] = dense(y, f3_w, f3_b, "none")                         # (N, 4)


# ----------------------------------------------------------------------------
# Parameter init (torch-like uniform(-1/sqrt(fan_in), ...)); weights are
# pre-transposed to (d_in, d_out) and cast to bf16 ONCE here.
# ----------------------------------------------------------------------------
def init_linear(key, fan_in, fan_out):
    k1, k2 = jax.random.split(key)
    bound = 1.0 / (fan_in ** 0.5)
    w = jax.random.uniform(k1, (fan_out, fan_in), jnp.float32, -bound, bound)
    b = jax.random.uniform(k2, (fan_out,), jnp.float32, -bound, bound)
    return w.T.astype(jnp.bfloat16), b.reshape(1, fan_out)


def init_gat(key, fan_in, fan_out):
    k1, k2, k3 = jax.random.split(key, 3)
    bound = 1.0 / (fan_in ** 0.5)
    w = jax.random.uniform(k1, (fan_out, fan_in), jnp.float32, -bound, bound)
    att_src = jax.random.uniform(k2, (fan_out,), jnp.float32, -bound, bound)
    att_dst = jax.random.uniform(k3, (fan_out,), jnp.float32, -bound, bound)
    bias = jnp.zeros((1, fan_out), jnp.float32)
    return (w.T.astype(jnp.bfloat16),
            att_src.reshape(1, fan_out),
            att_dst.reshape(1, fan_out),
            bias)


def init_lstm_layer(key, input_size, hidden=HIDDEN):
    k1, k2, k3, k4 = jax.random.split(key, 4)
    bound = 1.0 / (hidden ** 0.5)
    w_ih = jax.random.uniform(k1, (4 * hidden, input_size), jnp.float32, -bound, bound)
    _w_hh = jax.random.uniform(k2, (4 * hidden, hidden), jnp.float32, -bound, bound)  # unused: h0 == 0
    b_ih = jax.random.uniform(k3, (4 * hidden,), jnp.float32, -bound, bound)
    b_hh = jax.random.uniform(k4, (4 * hidden,), jnp.float32, -bound, bound)
    b = b_ih + b_hh
    # Drop the forget-gate rows (it multiplies c0 == 0); keep [i, g, o].
    keep = jnp.concatenate([jnp.arange(0, hidden),
                            jnp.arange(2 * hidden, 4 * hidden)])
    w3 = w_ih[keep].T.astype(jnp.bfloat16)       # (input_size, 3H)
    b3 = b[keep].reshape(1, 3 * hidden)
    return w3, b3


def init_params(key, input_length):
    keys = jax.random.split(key, 18)
    return {
        "poi1": init_linear(keys[0], 13, 64),
        "poi2": init_linear(keys[1], 64, 64),
        "svi1": init_linear(keys[2], 365, 128),
        "svi2": init_linear(keys[3], 128, 128),
        "all1": init_linear(keys[4], 128 + 64, 128),
        "all2": init_linear(keys[5], 128, 128),
        "gat1": init_gat(keys[6], 128, 128),
        "gat2": init_gat(keys[7], 128, 128),
        "gat3": init_gat(keys[8], 128, 64),
        "lstm1": init_lstm_layer(keys[9], input_length),
        "lstm2": init_lstm_layer(keys[10], HIDDEN),
        "lstm3": init_lstm_layer(keys[11], HIDDEN),
        "time1": init_linear(keys[12], 64, 64),
        "time2": init_linear(keys[13], 64, 64),
        "linear1": init_linear(keys[14], 128, 64),
        "linear2": init_linear(keys[15], 64, 64),
        "linear3": init_linear(keys[16], 64, 4),
    }


_PARAM_ORDER = ("poi1", "poi2", "svi1", "svi2", "all1", "all2",
                "gat1", "gat2", "gat3",
                "lstm1", "lstm2", "lstm3",
                "time1", "time2", "linear1", "linear2", "linear3")


def _flatten_params(params):
    flat = []
    for name in _PARAM_ORDER:
        flat.extend(params[name])
    return flat


# ----------------------------------------------------------------------------
# Full forward pass: one fused pallas_call
# ----------------------------------------------------------------------------
def forward(params, x_all, edge_index, input_length):
    n = x_all.shape[0]
    # x_phy = x_all[:, 1:3] and x_sec = x_all[:, 16:56] are sliced but unused
    # in the reference module, so they are simply never read here.
    x_poi = x_all[:, 3:16]
    x_svi = x_all[:, 56:421]
    t_seq = x_all[:, 421:421 + input_length]     # seq_len == 1, batch == n

    # Dense adjacency: adj[dst, src] = 1 for every edge src -> dst, + self-loops.
    adj = jnp.zeros((n, n), jnp.float32)
    adj = adj.at[edge_index[1], edge_index[0]].set(1.0)
    adj = jnp.maximum(adj, jnp.eye(n, dtype=jnp.float32))

    args = [x_poi, x_svi, t_seq, adj] + _flatten_params(params)
    in_specs = [_full_spec(a.shape) for a in args]

    return pl.pallas_call(
        functools.partial(_fused_forward_kernel, hidden=HIDDEN),
        out_shape=jax.ShapeDtypeStruct((n, 4), jnp.float32),
        grid=(1,),
        in_specs=in_specs,
        out_specs=_full_spec((n, 4)),
        compiler_params=pltpu.CompilerParams(
            dimension_semantics=("arbitrary",)),
    )(*args)


if __name__ == "__main__":
    input_length = 24
    n_nodes = 16
    n_features = 421 + input_length          # 445

    key = jax.random.PRNGKey(0)
    k_params, k_x = jax.random.split(key)
    params = init_params(k_params, input_length)
    x_all = jax.random.normal(k_x, (n_nodes, n_features), jnp.float32)

    # deterministic ring graph (bidirectional)
    src = jnp.arange(n_nodes, dtype=jnp.int32)
    dst = (src + 1) % n_nodes
    edge_index = jnp.stack([jnp.concatenate([src, dst]),
                            jnp.concatenate([dst, src])], axis=0)   # (2, 2N)

    out = forward(params, x_all, edge_index, input_length)
    out = jax.block_until_ready(out)
    assert out.shape == (n_nodes, 4), out.shape
    assert bool(jnp.all(jnp.isfinite(out)))
    print("KERNEL_OK")
</pallas_src>

<mosaic_0001>
module attributes {stable_mosaic.version = 11 : i64} {
  func.func @_fused_forward_kernel(%arg0: i32, %arg1: memref<16x13xf32, #tpu.memory_space<vmem>>, %arg2: memref<16x365xf32, #tpu.memory_space<vmem>>, %arg3: memref<16x24xf32, #tpu.memory_space<vmem>>, %arg4: memref<16x16xf32, #tpu.memory_space<vmem>>, %arg5: memref<13x64xbf16, #tpu.memory_space<vmem>>, %arg6: memref<1x64xf32, #tpu.memory_space<vmem>>, %arg7: memref<64x64xbf16, #tpu.memory_space<vmem>>, %arg8: memref<1x64xf32, #tpu.memory_space<vmem>>, %arg9: memref<365x128xbf16, #tpu.memory_space<vmem>>, %arg10: memref<1x128xf32, #tpu.memory_space<vmem>>, %arg11: memref<128x128xbf16, #tpu.memory_space<vmem>>, %arg12: memref<1x128xf32, #tpu.memory_space<vmem>>, %arg13: memref<192x128xbf16, #tpu.memory_space<vmem>>, %arg14: memref<1x128xf32, #tpu.memory_space<vmem>>, %arg15: memref<128x128xbf16, #tpu.memory_space<vmem>>, %arg16: memref<1x128xf32, #tpu.memory_space<vmem>>, %arg17: memref<128x128xbf16, #tpu.memory_space<vmem>>, %arg18: memref<1x128xf32, #tpu.memory_space<vmem>>, %arg19: memref<1x128xf32, #tpu.memory_space<vmem>>, %arg20: memref<1x128xf32, #tpu.memory_space<vmem>>, %arg21: memref<128x128xbf16, #tpu.memory_space<vmem>>, %arg22: memref<1x128xf32, #tpu.memory_space<vmem>>, %arg23: memref<1x128xf32, #tpu.memory_space<vmem>>, %arg24: memref<1x128xf32, #tpu.memory_space<vmem>>, %arg25: memref<128x64xbf16, #tpu.memory_space<vmem>>, %arg26: memref<1x64xf32, #tpu.memory_space<vmem>>, %arg27: memref<1x64xf32, #tpu.memory_space<vmem>>, %arg28: memref<1x64xf32, #tpu.memory_space<vmem>>, %arg29: memref<24x192xbf16, #tpu.memory_space<vmem>>, %arg30: memref<1x192xf32, #tpu.memory_space<vmem>>, %arg31: memref<64x192xbf16, #tpu.memory_space<vmem>>, %arg32: memref<1x192xf32, #tpu.memory_space<vmem>>, %arg33: memref<64x192xbf16, #tpu.memory_space<vmem>>, %arg34: memref<1x192xf32, #tpu.memory_space<vmem>>, %arg35: memref<64x64xbf16, #tpu.memory_space<vmem>>, %arg36: memref<1x64xf32, #tpu.memory_space<vmem>>, %arg37: memref<64x64xbf16, #tpu.memory_space<vmem>>, %arg38: memref<1x64xf32, #tpu.memory_space<vmem>>, %arg39: memref<128x64xbf16, #tpu.memory_space<vmem>>, %arg40: memref<1x64xf32, #tpu.memory_space<vmem>>, %arg41: memref<64x64xbf16, #tpu.memory_space<vmem>>, %arg42: memref<1x64xf32, #tpu.memory_space<vmem>>, %arg43: memref<64x4xbf16, #tpu.memory_space<vmem>>, %arg44: memref<1x4xf32, #tpu.memory_space<vmem>>, %arg45: memref<16x4xf32, #tpu.memory_space<vmem>>) attributes {dimension_semantics = [#tpu.dimension_semantics<arbitrary>], iteration_bounds = array<i64: 1>, scalar_prefetch = 0 : i64, scratch_operands = 0 : i64, tpu.core_type = #tpu.core_type<tc>, window_params = [{pipeline_mode = #tpu.pipeline_mode<synchronous>, transform_indices = @transform_0, window_bounds = array<i64: 16, 13>}, {pipeline_mode = #tpu.pipeline_mode<synchronous>, transform_indices = @transform_1, window_bounds = array<i64: 16, 365>}, {pipeline_mode = #tpu.pipeline_mode<synchronous>, transform_indices = @transform_2, window_bounds = array<i64: 16, 24>}, {pipeline_mode = #tpu.pipeline_mode<synchronous>, transform_indices = @transform_3, window_bounds = array<i64: 16, 16>}, {pipeline_mode = #tpu.pipeline_mode<synchronous>, transform_indices = @transform_4, window_bounds = array<i64: 13, 64>}, {pipeline_mode = #tpu.pipeline_mode<synchronous>, transform_indices = @transform_5, window_bounds = array<i64: 1, 64>}, {pipeline_mode = #tpu.pipeline_mode<synchronous>, transform_indices = @transform_6, window_bounds = array<i64: 64, 64>}, {pipeline_mode = #tpu.pipeline_mode<synchronous>, transform_indices = @transform_7, window_bounds = array<i64: 1, 64>}, {pipeline_mode = #tpu.pipeline_mode<synchronous>, transform_indices = @transform_8, window_bounds = array<i64: 365, 128>}, {pipeline_mode = #tpu.pipeline_mode<synchronous>, transform_indices = @transform_9, window_bounds = array<i64: 1, 128>}, {pipeline_mode = #tpu.pipeline_mode<synchronous>, transform_indices = @transform_10, window_bounds = array<i64: 128, 128>}, {pipeline_mode = #tpu.pipeline_mode<synchronous>, transform_indices = @transform_11, window_bounds = array<i64: 1, 128>}, {pipeline_mode = #tpu.pipeline_mode<synchronous>, transform_indices = @transform_12, window_bounds = array<i64: 192, 128>}, {pipeline_mode = #tpu.pipeline_mode<synchronous>, transform_indices = @transform_13, window_bounds = array<i64: 1, 128>}, {pipeline_mode = #tpu.pipeline_mode<synchronous>, transform_indices = @transform_14, window_bounds = array<i64: 128, 128>}, {pipeline_mode = #tpu.pipeline_mode<synchronous>, transform_indices = @transform_15, window_bounds = array<i64: 1, 128>}, {pipeline_mode = #tpu.pipeline_mode<synchronous>, transform_indices = @transform_16, window_bounds = array<i64: 128, 128>}, {pipeline_mode = #tpu.pipeline_mode<synchronous>, transform_indices = @transform_17, window_bounds = array<i64: 1, 128>}, {pipeline_mode = #tpu.pipeline_mode<synchronous>, transform_indices = @transform_18, window_bounds = array<i64: 1, 128>}, {pipeline_mode = #tpu.pipeline_mode<synchronous>, transform_indices = @transform_19, window_bounds = array<i64: 1, 128>}, {pipeline_mode = #tpu.pipeline_mode<synchronous>, transform_indices = @transform_20, window_bounds = array<i64: 128, 128>}, {pipeline_mode = #tpu.pipeline_mode<synchronous>, transform_indices = @transform_21, window_bounds = array<i64: 1, 128>}, {pipeline_mode = #tpu.pipeline_mode<synchronous>, transform_indices = @transform_22, window_bounds = array<i64: 1, 128>}, {pipeline_mode = #tpu.pipeline_mode<synchronous>, transform_indices = @transform_23, window_bounds = array<i64: 1, 128>}, {pipeline_mode = #tpu.pipeline_mode<synchronous>, transform_indices = @transform_24, window_bounds = array<i64: 128, 64>}, {pipeline_mode = #tpu.pipeline_mode<synchronous>, transform_indices = @transform_25, window_bounds = array<i64: 1, 64>}, {pipeline_mode = #tpu.pipeline_mode<synchronous>, transform_indices = @transform_26, window_bounds = array<i64: 1, 64>}, {pipeline_mode = #tpu.pipeline_mode<synchronous>, transform_indices = @transform_27, window_bounds = array<i64: 1, 64>}, {pipeline_mode = #tpu.pipeline_mode<synchronous>, transform_indices = @transform_28, window_bounds = array<i64: 24, 192>}, {pipeline_mode = #tpu.pipeline_mode<synchronous>, transform_indices = @transform_29, window_bounds = array<i64: 1, 192>}, {pipeline_mode = #tpu.pipeline_mode<synchronous>, transform_indices = @transform_30, window_bounds = array<i64: 64, 192>}, {pipeline_mode = #tpu.pipeline_mode<synchronous>, transform_indices = @transform_31, window_bounds = array<i64: 1, 192>}, {pipeline_mode = #tpu.pipeline_mode<synchronous>, transform_indices = @transform_32, window_bounds = array<i64: 64, 192>}, {pipeline_mode = #tpu.pipeline_mode<synchronous>, transform_indices = @transform_33, window_bounds = array<i64: 1, 192>}, {pipeline_mode = #tpu.pipeline_mode<synchronous>, transform_indices = @transform_34, window_bounds = array<i64: 64, 64>}, {pipeline_mode = #tpu.pipeline_mode<synchronous>, transform_indices = @transform_35, window_bounds = array<i64: 1, 64>}, {pipeline_mode = #tpu.pipeline_mode<synchronous>, transform_indices = @transform_36, window_bounds = array<i64: 64, 64>}, {pipeline_mode = #tpu.pipeline_mode<synchronous>, transform_indices = @transform_37, window_bounds = array<i64: 1, 64>}, {pipeline_mode = #tpu.pipeline_mode<synchronous>, transform_indices = @transform_38, window_bounds = array<i64: 128, 64>}, {pipeline_mode = #tpu.pipeline_mode<synchronous>, transform_indices = @transform_39, window_bounds = array<i64: 1, 64>}, {pipeline_mode = #tpu.pipeline_mode<synchronous>, transform_indices = @transform_40, window_bounds = array<i64: 64, 64>}, {pipeline_mode = #tpu.pipeline_mode<synchronous>, transform_indices = @transform_41, window_bounds = array<i64: 1, 64>}, {pipeline_mode = #tpu.pipeline_mode<synchronous>, transform_indices = @transform_42, window_bounds = array<i64: 64, 4>}, {pipeline_mode = #tpu.pipeline_mode<synchronous>, transform_indices = @transform_43, window_bounds = array<i64: 1, 4>}, {pipeline_mode = #tpu.pipeline_mode<synchronous>, transform_indices = @transform_44, window_bounds = array<i64: 16, 4>}]} {
    %c0 = arith.constant 0 : index
    %c0_0 = arith.constant 0 : index
    %0 = vector.load %arg4[%c0, %c0_0] : memref<16x16xf32, #tpu.memory_space<vmem>>, vector<16x16xf32>
    %cst = arith.constant 5.000000e-01 : f32
    %1 = vector.broadcast %cst : f32 to vector<16x16xf32>
    %2 = arith.cmpf ogt, %0, %1 : vector<16x16xf32>
    %c0_1 = arith.constant 0 : index
    %c0_2 = arith.constant 0 : index
    %3 = vector.load %arg1[%c0_1, %c0_2] : memref<16x13xf32, #tpu.memory_space<vmem>>, vector<16x13xf32>
    %c0_3 = arith.constant 0 : index
    %c0_4 = arith.constant 0 : index
    %4 = vector.load %arg5[%c0_3, %c0_4] : memref<13x64xbf16, #tpu.memory_space<vmem>>, vector<13x64xbf16>
    %5 = arith.truncf %3 : vector<16x13xf32> to vector<16x13xbf16>
    %cst_5 = arith.constant dense<0.000000e+00> : vector<16x64xf32>
    %6 = tpu.matmul %5, %4, %cst_5 {dimension_numbers = #tpu.dot_dimension_numbers<[1], [0], [0], [1], [0, 0, 1, 1], [], []>} : vector<16x13xbf16>, vector<13x64xbf16>, vector<16x64xf32> -> vector<16x64xf32>
    %c0_6 = arith.constant 0 : index
    %c0_7 = arith.constant 0 : index
    %7 = vector.load %arg6[%c0_6, %c0_7] : memref<1x64xf32, #tpu.memory_space<vmem>>, vector<1x64xf32>
    %8 = vector.broadcast %7 : vector<1x64xf32> to vector<16x64xf32>
    %9 = arith.addf %6, %8 : vector<16x64xf32>
    %cst_8 = arith.constant 0.000000e+00 : f32
    %10 = vector.broadcast %cst_8 : f32 to vector<16x64xf32>
    %11 = arith.cmpf ogt, %9, %10 : vector<16x64xf32>
    %cst_9 = arith.constant 0.00999999977 : f32
    %12 = vector.broadcast %cst_9 : f32 to vector<16x64xf32>
    %13 = arith.mulf %12, %9 : vector<16x64xf32>
    %14 = arith.select %11, %9, %13 : vector<16x64xi1>, vector<16x64xf32>
    %c0_10 = arith.constant 0 : index
    %c0_11 = arith.constant 0 : index
    %15 = vector.load %arg7[%c0_10, %c0_11] : memref<64x64xbf16, #tpu.memory_space<vmem>>, vector<64x64xbf16>
    %16 = arith.truncf %14 : vector<16x64xf32> to vector<16x64xbf16>
    %cst_12 = arith.constant dense<0.000000e+00> : vector<16x64xf32>
    %17 = tpu.matmul %16, %15, %cst_12 {dimension_numbers = #tpu.dot_dimension_numbers<[1], [0], [0], [1], [0, 0, 1, 1], [], []>} : vector<16x64xbf16>, vector<64x64xbf16>, vector<16x64xf32> -> vector<16x64xf32>
    %c0_13 = arith.constant 0 : index
    %c0_14 = arith.constant 0 : index
    %18 = vector.load %arg8[%c0_13, %c0_14] : memref<1x64xf32, #tpu.memory_space<vmem>>, vector<1x64xf32>
    %19 = vector.broadcast %18 : vector<1x64xf32> to vector<16x64xf32>
    %20 = arith.addf %17, %19 : vector<16x64xf32>
    %cst_15 = arith.constant 0.000000e+00 : f32
    %21 = vector.broadcast %cst_15 : f32 to vector<16x64xf32>
    %22 = arith.cmpf ogt, %20, %21 : vector<16x64xf32>
    %cst_16 = arith.constant 0.00999999977 : f32
    %23 = vector.broadcast %cst_16 : f32 to vector<16x64xf32>
    %24 = arith.mulf %23, %20 : vector<16x64xf32>
    %25 = arith.select %22, %20, %24 : vector<16x64xi1>, vector<16x64xf32>
    %c0_17 = arith.constant 0 : index
    %c0_18 = arith.constant 0 : index
    %26 = vector.load %arg2[%c0_17, %c0_18] : memref<16x365xf32, #tpu.memory_space<vmem>>, vector<16x365xf32>
    %c0_19 = arith.constant 0 : index
    %c0_20 = arith.constant 0 : index
    %27 = vector.load %arg9[%c0_19, %c0_20] : memref<365x128xbf16, #tpu.memory_space<vmem>>, vector<365x128xbf16>
    %28 = arith.truncf %26 : vector<16x365xf32> to vector<16x365xbf16>
    %cst_21 = arith.constant dense<0.000000e+00> : vector<16x128xf32>
    %29 = tpu.matmul %28, %27, %cst_21 {dimension_numbers = #tpu.dot_dimension_numbers<[1], [0], [0], [1], [0, 0, 1, 1], [], []>} : vector<16x365xbf16>, vector<365x128xbf16>, vector<16x128xf32> -> vector<16x128xf32>
    %c0_22 = arith.constant 0 : index
    %c0_23 = arith.constant 0 : index
    %30 = vector.load %arg10[%c0_22, %c0_23] : memref<1x128xf32, #tpu.memory_space<vmem>>, vector<1x128xf32>
    %31 = vector.broadcast %30 : vector<1x128xf32> to vector<16x128xf32>
    %32 = arith.addf %29, %31 : vector<16x128xf32>
    %cst_24 = arith.constant 0.000000e+00 : f32
    %33 = vector.broadcast %cst_24 : f32 to vector<16x128xf32>
    %34 = arith.cmpf ogt, %32, %33 : vector<16x128xf32>
    %cst_25 = arith.constant 0.00999999977 : f32
    %35 = vector.broadcast %cst_25 : f32 to vector<16x128xf32>
    %36 = arith.mulf %35, %32 : vector<16x128xf32>
    %37 = arith.select %34, %32, %36 : vector<16x128xi1>, vector<16x128xf32>
    %c0_26 = arith.constant 0 : index
    %c0_27 = arith.constant 0 : index
    %38 = vector.load %arg11[%c0_26, %c0_27] : memref<128x128xbf16, #tpu.memory_space<vmem>>, vector<128x128xbf16>
    %39 = arith.truncf %37 : vector<16x128xf32> to vector<16x128xbf16>
    %cst_28 = arith.constant dense<0.000000e+00> : vector<16x128xf32>
    %40 = tpu.matmul %39, %38, %cst_28 {dimension_numbers = #tpu.dot_dimension_numbers<[1], [0], [0], [1], [0, 0, 1, 1], [], []>} : vector<16x128xbf16>, vector<128x128xbf16>, vector<16x128xf32> -> vector<16x128xf32>
    %c0_29 = arith.constant 0 : index
    %c0_30 = arith.constant 0 : index
    %41 = vector.load %arg12[%c0_29, %c0_30] : memref<1x128xf32, #tpu.memory_space<vmem>>, vector<1x128xf32>
    %42 = vector.broadcast %41 : vector<1x128xf32> to vector<16x128xf32>
    %43 = arith.addf %40, %42 : vector<16x128xf32>
    %cst_31 = arith.constant 0.000000e+00 : f32
    %44 = vector.broadcast %cst_31 : f32 to vector<16x128xf32>
    %45 = arith.cmpf ogt, %43, %44 : vector<16x128xf32>
    %cst_32 = arith.constant 0.00999999977 : f32
    %46 = vector.broadcast %cst_32 : f32 to vector<16x128xf32>
    %47 = arith.mulf %46, %43 : vector<16x128xf32>
    %48 = arith.select %45, %43, %47 : vector<16x128xi1>, vector<16x128xf32>
    %c0_33 = arith.constant 0 : index
    %c0_34 = arith.constant 0 : index
    %49 = vector.load %arg13[%c0_33, %c0_34] : memref<192x128xbf16, #tpu.memory_space<vmem>>, vector<64x128xbf16>
    %50 = arith.truncf %25 : vector<16x64xf32> to vector<16x64xbf16>
    %cst_35 = arith.constant dense<0.000000e+00> : vector<16x128xf32>
    %51 = tpu.matmul %50, %49, %cst_35 {dimension_numbers = #tpu.dot_dimension_numbers<[1], [0], [0], [1], [0, 0, 1, 1], [], []>} : vector<16x64xbf16>, vector<64x128xbf16>, vector<16x128xf32> -> vector<16x128xf32>
    %c64 = arith.constant 64 : index
    %c0_36 = arith.constant 0 : index
    %52 = vector.load %arg13[%c64, %c0_36] : memref<192x128xbf16, #tpu.memory_space<vmem>>, vector<128x128xbf16>
    %53 = arith.truncf %48 : vector<16x128xf32> to vector<16x128xbf16>
    %cst_37 = arith.constant dense<0.000000e+00> : vector<16x128xf32>
    %54 = tpu.matmul %53, %52, %cst_37 {dimension_numbers = #tpu.dot_dimension_numbers<[1], [0], [0], [1], [0, 0, 1, 1], [], []>} : vector<16x128xbf16>, vector<128x128xbf16>, vector<16x128xf32> -> vector<16x128xf32>
    %55 = arith.addf %51, %54 : vector<16x128xf32>
    %c0_38 = arith.constant 0 : index
    %c0_39 = arith.constant 0 : index
    %56 = vector.load %arg14[%c0_38, %c0_39] : memref<1x128xf32, #tpu.memory_space<vmem>>, vector<1x128xf32>
    %57 = vector.broadcast %56 : vector<1x128xf32> to vector<16x128xf32>
    %58 = arith.addf %55, %57 : vector<16x128xf32>
    %cst_40 = arith.constant 0.000000e+00 : f32
    %59 = vector.broadcast %cst_40 : f32 to vector<16x128xf32>
    %60 = arith.cmpf ogt, %58, %59 : vector<16x128xf32>
    %cst_41 = arith.constant 0.00999999977 : f32
    %61 = vector.broadcast %cst_41 : f32 to vector<16x128xf32>
    %62 = arith.mulf %61, %58 : vector<16x128xf32>
    %63 = arith.select %60, %58, %62 : vector<16x128xi1>, vector<16x128xf32>
    %c0_42 = arith.constant 0 : index
    %c0_43 = arith.constant 0 : index
    %64 = vector.load %arg15[%c0_42, %c0_43] : memref<128x128xbf16, #tpu.memory_space<vmem>>, vector<128x128xbf16>
    %65 = arith.truncf %63 : vector<16x128xf32> to vector<16x128xbf16>
    %cst_44 = arith.constant dense<0.000000e+00> : vector<16x128xf32>
    %66 = tpu.matmul %65, %64, %cst_44 {dimension_numbers = #tpu.dot_dimension_numbers<[1], [0], [0], [1], [0, 0, 1, 1], [], []>} : vector<16x128xbf16>, vector<128x128xbf16>, vector<16x128xf32> -> vector<16x128xf32>
    %c0_45 = arith.constant 0 : index
    %c0_46 = arith.constant 0 : index
    %67 = vector.load %arg16[%c0_45, %c0_46] : memref<1x128xf32, #tpu.memory_space<vmem>>, vector<1x128xf32>
    %68 = vector.broadcast %67 : vector<1x128xf32> to vector<16x128xf32>
    %69 = arith.addf %66, %68 : vector<16x128xf32>
    %cst_47 = arith.constant 0.000000e+00 : f32
    %70 = vector.broadcast %cst_47 : f32 to vector<16x128xf32>
    %71 = arith.cmpf ogt, %69, %70 : vector<16x128xf32>
    %cst_48 = arith.constant 0.00999999977 : f32
    %72 = vector.broadcast %cst_48 : f32 to vector<16x128xf32>
    %73 = arith.mulf %72, %69 : vector<16x128xf32>
    %74 = arith.select %71, %69, %73 : vector<16x128xi1>, vector<16x128xf32>
    %c0_49 = arith.constant 0 : index
    %c0_50 = arith.constant 0 : index
    %75 = vector.load %arg17[%c0_49, %c0_50] : memref<128x128xbf16, #tpu.memory_space<vmem>>, vector<128x128xbf16>
    %76 = arith.truncf %74 : vector<16x128xf32> to vector<16x128xbf16>
    %cst_51 = arith.constant dense<0.000000e+00> : vector<16x128xf32>
    %77 = tpu.matmul %76, %75, %cst_51 {dimension_numbers = #tpu.dot_dimension_numbers<[1], [0], [0], [1], [0, 0, 1, 1], [], []>} : vector<16x128xbf16>, vector<128x128xbf16>, vector<16x128xf32> -> vector<16x128xf32>
    %c0_52 = arith.constant 0 : index
    %c0_53 = arith.constant 0 : index
    %78 = vector.load %arg18[%c0_52, %c0_53] : memref<1x128xf32, #tpu.memory_space<vmem>>, vector<1x128xf32>
    %79 = vector.broadcast %78 : vector<1x128xf32> to vector<16x128xf32>
    %80 = arith.mulf %77, %79 : vector<16x128xf32>
    %cst_54 = arith.constant dense<0.000000e+00> : vector<16xf32>
    %81 = vector.multi_reduction <add>, %80, %cst_54 [1] : vector<16x128xf32> to vector<16xf32>
    %82 = vector.shape_cast %81 : vector<16xf32> to vector<16x1xf32>
    %c0_55 = arith.constant 0 : index
    %c0_56 = arith.constant 0 : index
    %83 = vector.load %arg19[%c0_55, %c0_56] : memref<1x128xf32, #tpu.memory_space<vmem>>, vector<1x128xf32>
    %84 = vector.broadcast %83 : vector<1x128xf32> to vector<16x128xf32>
    %85 = arith.mulf %77, %84 : vector<16x128xf32>
    %cst_57 = arith.constant dense<0.000000e+00> : vector<16xf32>
    %86 = vector.multi_reduction <add>, %85, %cst_57 [1] : vector<16x128xf32> to vector<16xf32>
    %87 = vector.shape_cast %86 : vector<16xf32> to vector<16x1xf32>
    %88 = tpu.transpose %82, [1, 0] : vector<16x1xf32> -> vector<1x16xf32>
    %89 = vector.broadcast %87 : vector<16x1xf32> to vector<16x16xf32>
    %90 = vector.broadcast %88 : vector<1x16xf32> to vector<16x16xf32>
    %91 = arith.addf %89, %90 : vector<16x16xf32>
    %cst_58 = arith.constant 0.000000e+00 : f32
    %92 = vector.broadcast %cst_58 : f32 to vector<16x16xf32>
    %93 = arith.cmpf ogt, %91, %92 : vector<16x16xf32>
    %cst_59 = arith.constant 2.000000e-01 : f32
    %94 = vector.broadcast %cst_59 : f32 to vector<16x16xf32>
    %95 = arith.mulf %94, %91 : vector<16x16xf32>
    %96 = arith.select %93, %91, %95 : vector<16x16xi1>, vector<16x16xf32>
    %cst_60 = arith.constant -1.000000e+30 : f32
    %97 = vector.broadcast %cst_60 : f32 to vector<16x16xf32>
    %98 = arith.select %2, %96, %97 : vector<16x16xi1>, vector<16x16xf32>
    %cst_61 = arith.constant dense<0xFF800000> : vector<16xf32>
    %99 = vector.multi_reduction <maximumf>, %98, %cst_61 [1] : vector<16x16xf32> to vector<16xf32>
    %100 = vector.shape_cast %99 : vector<16xf32> to vector<16x1xf32>
    %101 = vector.broadcast %100 : vector<16x1xf32> to vector<16x16xf32>
    %102 = arith.subf %98, %101 : vector<16x16xf32>
    %103 = math.exp %102 : vector<16x16xf32>
    %cst_62 = arith.constant 0.000000e+00 : f32
    %104 = vector.broadcast %cst_62 : f32 to vector<16x16xf32>
    %105 = arith.select %2, %103, %104 : vector<16x16xi1>, vector<16x16xf32>
    %cst_63 = arith.constant dense<0.000000e+00> : vector<16xf32>
    %106 = vector.multi_reduction <add>, %105, %cst_63 [1] : vector<16x16xf32> to vector<16xf32>
    %107 = vector.shape_cast %106 : vector<16xf32> to vector<16x1xf32>
    %108 = tpu.reciprocal %107 {approx = true} : vector<16x1xf32> -> vector<16x1xf32>
    %109 = vector.broadcast %108 : vector<16x1xf32> to vector<16x16xf32>
    %110 = arith.mulf %105, %109 : vector<16x16xf32>
    %111 = arith.truncf %110 : vector<16x16xf32> to vector<16x16xbf16>
    %112 = arith.truncf %77 : vector<16x128xf32> to vector<16x128xbf16>
    %cst_64 = arith.constant dense<0.000000e+00> : vector<16x128xf32>
    %113 = tpu.matmul %111, %112, %cst_64 {dimension_numbers = #tpu.dot_dimension_numbers<[1], [0], [0], [1], [0, 0, 1, 1], [], []>} : vector<16x16xbf16>, vector<16x128xbf16>, vector<16x128xf32> -> vector<16x128xf32>
    %c0_65 = arith.constant 0 : index
    %c0_66 = arith.constant 0 : index
    %114 = vector.load %arg20[%c0_65, %c0_66] : memref<1x128xf32, #tpu.memory_space<vmem>>, vector<1x128xf32>
    %115 = vector.broadcast %114 : vector<1x128xf32> to vector<16x128xf32>
    %116 = arith.addf %113, %115 : vector<16x128xf32>
    %cst_67 = arith.constant 0.000000e+00 : f32
    %117 = vector.broadcast %cst_67 : f32 to vector<16x128xf32>
    %118 = arith.cmpf ogt, %116, %117 : vector<16x128xf32>
    %cst_68 = arith.constant 0.00999999977 : f32
    %119 = vector.broadcast %cst_68 : f32 to vector<16x128xf32>
    %120 = arith.mulf %119, %116 : vector<16x128xf32>
    %121 = arith.select %118, %116, %120 : vector<16x128xi1>, vector<16x128xf32>
    %c0_69 = arith.constant 0 : index
    %c0_70 = arith.constant 0 : index
    %122 = vector.load %arg21[%c0_69, %c0_70] : memref<128x128xbf16, #tpu.memory_space<vmem>>, vector<128x128xbf16>
    %123 = arith.truncf %121 : vector<16x128xf32> to vector<16x128xbf16>
    %cst_71 = arith.constant dense<0.000000e+00> : vector<16x128xf32>
    %124 = tpu.matmul %123, %122, %cst_71 {dimension_numbers = #tpu.dot_dimension_numbers<[1], [0], [0], [1], [0, 0, 1, 1], [], []>} : vector<16x128xbf16>, vector<128x128xbf16>, vector<16x128xf32> -> vector<16x128xf32>
    %c0_72 = arith.constant 0 : index
    %c0_73 = arith.constant 0 : index
    %125 = vector.load %arg22[%c0_72, %c0_73] : memref<1x128xf32, #tpu.memory_space<vmem>>, vector<1x128xf32>
    %126 = vector.broadcast %125 : vector<1x128xf32> to vector<16x128xf32>
    %127 = arith.mulf %124, %126 : vector<16x128xf32>
    %cst_74 = arith.constant dense<0.000000e+00> : vector<16xf32>
    %128 = vector.multi_reduction <add>, %127, %cst_74 [1] : vector<16x128xf32> to vector<16xf32>
    %129 = vector.shape_cast %128 : vector<16xf32> to vector<16x1xf32>
    %c0_75 = arith.constant 0 : index
    %c0_76 = arith.constant 0 : index
    %130 = vector.load %arg23[%c0_75, %c0_76] : memref<1x128xf32, #tpu.memory_space<vmem>>, vector<1x128xf32>
    %131 = vector.broadcast %130 : vector<1x128xf32> to vector<16x128xf32>
    %132 = arith.mulf %124, %131 : vector<16x128xf32>
    %cst_77 = arith.constant dense<0.000000e+00> : vector<16xf32>
    %133 = vector.multi_reduction <add>, %132, %cst_77 [1] : vector<16x128xf32> to vector<16xf32>
    %134 = vector.shape_cast %133 : vector<16xf32> to vector<16x1xf32>
    %135 = tpu.transpose %129, [1, 0] : vector<16x1xf32> -> vector<1x16xf32>
    %136 = vector.broadcast %134 : vector<16x1xf32> to vector<16x16xf32>
    %137 = vector.broadcast %135 : vector<1x16xf32> to vector<16x16xf32>
    %138 = arith.addf %136, %137 : vector<16x16xf32>
    %cst_78 = arith.constant 0.000000e+00 : f32
    %139 = vector.broadcast %cst_78 : f32 to vector<16x16xf32>
    %140 = arith.cmpf ogt, %138, %139 : vector<16x16xf32>
    %cst_79 = arith.constant 2.000000e-01 : f32
    %141 = vector.broadcast %cst_79 : f32 to vector<16x16xf32>
    %142 = arith.mulf %141, %138 : vector<16x16xf32>
    %143 = arith.select %140, %138, %142 : vector<16x16xi1>, vector<16x16xf32>
    %cst_80 = arith.constant -1.000000e+30 : f32
    %144 = vector.broadcast %cst_80 : f32 to vector<16x16xf32>
    %145 = arith.select %2, %143, %144 : vector<16x16xi1>, vector<16x16xf32>
    %cst_81 = arith.constant dense<0xFF800000> : vector<16xf32>
    %146 = vector.multi_reduction <maximumf>, %145, %cst_81 [1] : vector<16x16xf32> to vector<16xf32>
    %147 = vector.shape_cast %146 : vector<16xf32> to vector<16x1xf32>
    %148 = vector.broadcast %147 : vector<16x1xf32> to vector<16x16xf32>
    %149 = arith.subf %145, %148 : vector<16x16xf32>
    %150 = math.exp %149 : vector<16x16xf32>
    %cst_82 = arith.constant 0.000000e+00 : f32
    %151 = vector.broadcast %cst_82 : f32 to vector<16x16xf32>
    %152 = arith.select %2, %150, %151 : vector<16x16xi1>, vector<16x16xf32>
    %cst_83 = arith.constant dense<0.000000e+00> : vector<16xf32>
    %153 = vector.multi_reduction <add>, %152, %cst_83 [1] : vector<16x16xf32> to vector<16xf32>
    %154 = vector.shape_cast %153 : vector<16xf32> to vector<16x1xf32>
    %155 = tpu.reciprocal %154 {approx = true} : vector<16x1xf32> -> vector<16x1xf32>
    %156 = vector.broadcast %155 : vector<16x1xf32> to vector<16x16xf32>
    %157 = arith.mulf %152, %156 : vector<16x16xf32>
    %158 = arith.truncf %157 : vector<16x16xf32> to vector<16x16xbf16>
    %159 = arith.truncf %124 : vector<16x128xf32> to vector<16x128xbf16>
    %cst_84 = arith.constant dense<0.000000e+00> : vector<16x128xf32>
    %160 = tpu.matmul %158, %159, %cst_84 {dimension_numbers = #tpu.dot_dimension_numbers<[1], [0], [0], [1], [0, 0, 1, 1], [], []>} : vector<16x16xbf16>, vector<16x128xbf16>, vector<16x128xf32> -> vector<16x128xf32>
    %c0_85 = arith.constant 0 : index
    %c0_86 = arith.constant 0 : index
    %161 = vector.load %arg24[%c0_85, %c0_86] : memref<1x128xf32, #tpu.memory_space<vmem>>, vector<1x128xf32>
    %162 = vector.broadcast %161 : vector<1x128xf32> to vector<16x128xf32>
    %163 = arith.addf %160, %162 : vector<16x128xf32>
    %cst_87 = arith.constant 0.000000e+00 : f32
    %164 = vector.broadcast %cst_87 : f32 to vector<16x128xf32>
    %165 = arith.cmpf ogt, %163, %164 : vector<16x128xf32>
    %cst_88 = arith.constant 0.00999999977 : f32
    %166 = vector.broadcast %cst_88 : f32 to vector<16x128xf32>
    %167 = arith.mulf %166, %163 : vector<16x128xf32>
    %168 = arith.select %165, %163, %167 : vector<16x128xi1>, vector<16x128xf32>
    %c0_89 = arith.constant 0 : index
    %c0_90 = arith.constant 0 : index
    %169 = vector.load %arg25[%c0_89, %c0_90] : memref<128x64xbf16, #tpu.memory_space<vmem>>, vector<128x64xbf16>
    %170 = arith.truncf %168 : vector<16x128xf32> to vector<16x128xbf16>
    %cst_91 = arith.constant dense<0.000000e+00> : vector<16x64xf32>
    %171 = tpu.matmul %170, %169, %cst_91 {dimension_numbers = #tpu.dot_dimension_numbers<[1], [0], [0], [1], [0, 0, 1, 1], [], []>} : vector<16x128xbf16>, vector<128x64xbf16>, vector<16x64xf32> -> vector<16x64xf32>
    %c0_92 = arith.constant 0 : index
    %c0_93 = arith.constant 0 : index
    %172 = vector.load %arg26[%c0_92, %c0_93] : memref<1x64xf32, #tpu.memory_space<vmem>>, vector<1x64xf32>
    %173 = vector.broadcast %172 : vector<1x64xf32> to vector<16x64xf32>
    %174 = arith.mulf %171, %173 : vector<16x64xf32>
    %cst_94 = arith.constant dense<0.000000e+00> : vector<16xf32>
    %175 = vector.multi_reduction <add>, %174, %cst_94 [1] : vector<16x64xf32> to vector<16xf32>
    %176 = vector.shape_cast %175 : vector<16xf32> to vector<16x1xf32>
    %c0_95 = arith.constant 0 : index
    %c0_96 = arith.constant 0 : index
    %177 = vector.load %arg27[%c0_95, %c0_96] : memref<1x64xf32, #tpu.memory_space<vmem>>, vector<1x64xf32>
    %178 = vector.broadcast %177 : vector<1x64xf32> to vector<16x64xf32>
    %179 = arith.mulf %171, %178 : vector<16x64xf32>
    %cst_97 = arith.constant dense<0.000000e+00> : vector<16xf32>
    %180 = vector.multi_reduction <add>, %179, %cst_97 [1] : vector<16x64xf32> to vector<16xf32>
    %181 = vector.shape_cast %180 : vector<16xf32> to vector<16x1xf32>
    %182 = tpu.transpose %176, [1, 0] : vector<16x1xf32> -> vector<1x16xf32>
    %183 = vector.broadcast %181 : vector<16x1xf32> to vector<16x16xf32>
    %184 = vector.broadcast %182 : vector<1x16xf32> to vector<16x16xf32>
    %185 = arith.addf %183, %184 : vector<16x16xf32>
    %cst_98 = arith.constant 0.000000e+00 : f32
    %186 = vector.broadcast %cst_98 : f32 to vector<16x16xf32>
    %187 = arith.cmpf ogt, %185, %186 : vector<16x16xf32>
    %cst_99 = arith.constant 2.000000e-01 : f32
    %188 = vector.broadcast %cst_99 : f32 to vector<16x16xf32>
    %189 = arith.mulf %188, %185 : vector<16x16xf32>
    %190 = arith.select %187, %185, %189 : vector<16x16xi1>, vector<16x16xf32>
    %cst_100 = arith.constant -1.000000e+30 : f32
    %191 = vector.broadcast %cst_100 : f32 to vector<16x16xf32>
    %192 = arith.select %2, %190, %191 : vector<16x16xi1>, vector<16x16xf32>
    %cst_101 = arith.constant dense<0xFF800000> : vector<16xf32>
    %193 = vector.multi_reduction <maximumf>, %192, %cst_101 [1] : vector<16x16xf32> to vector<16xf32>
    %194 = vector.shape_cast %193 : vector<16xf32> to vector<16x1xf32>
    %195 = vector.broadcast %194 : vector<16x1xf32> to vector<16x16xf32>
    %196 = arith.subf %192, %195 : vector<16x16xf32>
    %197 = math.exp %196 : vector<16x16xf32>
    %cst_102 = arith.constant 0.000000e+00 : f32
    %198 = vector.broadcast %cst_102 : f32 to vector<16x16xf32>
    %199 = arith.select %2, %197, %198 : vector<16x16xi1>, vector<16x16xf32>
    %cst_103 = arith.constant dense<0.000000e+00> : vector<16xf32>
    %200 = vector.multi_reduction <add>, %199, %cst_103 [1] : vector<16x16xf32> to vector<16xf32>
    %201 = vector.shape_cast %200 : vector<16xf32> to vector<16x1xf32>
    %202 = tpu.reciprocal %201 {approx = true} : vector<16x1xf32> -> vector<16x1xf32>
    %203 = vector.broadcast %202 : vector<16x1xf32> to vector<16x16xf32>
    %204 = arith.mulf %199, %203 : vector<16x16xf32>
    %205 = arith.truncf %204 : vector<16x16xf32> to vector<16x16xbf16>
    %206 = arith.truncf %171 : vector<16x64xf32> to vector<16x64xbf16>
    %cst_104 = arith.constant dense<0.000000e+00> : vector<16x64xf32>
    %207 = tpu.matmul %205, %206, %cst_104 {dimension_numbers = #tpu.dot_dimension_numbers<[1], [0], [0], [1], [0, 0, 1, 1], [], []>} : vector<16x16xbf16>, vector<16x64xbf16>, vector<16x64xf32> -> vector<16x64xf32>
    %c0_105 = arith.constant 0 : index
    %c0_106 = arith.constant 0 : index
    %208 = vector.load %arg28[%c0_105, %c0_106] : memref<1x64xf32, #tpu.memory_space<vmem>>, vector<1x64xf32>
    %209 = vector.broadcast %208 : vector<1x64xf32> to vector<16x64xf32>
    %210 = arith.addf %207, %209 : vector<16x64xf32>
    %cst_107 = arith.constant 0.000000e+00 : f32
    %211 = vector.broadcast %cst_107 : f32 to vector<16x64xf32>
    %212 = arith.cmpf ogt, %210, %211 : vector<16x64xf32>
    %cst_108 = arith.constant 0.00999999977 : f32
    %213 = vector.broadcast %cst_108 : f32 to vector<16x64xf32>
    %214 = arith.mulf %213, %210 : vector<16x64xf32>
    %215 = arith.select %212, %210, %214 : vector<16x64xi1>, vector<16x64xf32>
    %c0_109 = arith.constant 0 : index
    %c0_110 = arith.constant 0 : index
    %216 = vector.load %arg3[%c0_109, %c0_110] : memref<16x24xf32, #tpu.memory_space<vmem>>, vector<16x24xf32>
    %c0_111 = arith.constant 0 : index
    %c0_112 = arith.constant 0 : index
    %217 = vector.load %arg29[%c0_111, %c0_112] : memref<24x192xbf16, #tpu.memory_space<vmem>>, vector<24x192xbf16>
    %218 = arith.truncf %216 : vector<16x24xf32> to vector<16x24xbf16>
    %cst_113 = arith.constant dense<0.000000e+00> : vector<16x192xf32>
    %219 = tpu.matmul %218, %217, %cst_113 {dimension_numbers = #tpu.dot_dimension_numbers<[1], [0], [0], [1], [0, 0, 1, 1], [], []>} : vector<16x24xbf16>, vector<24x192xbf16>, vector<16x192xf32> -> vector<16x192xf32>
    %c0_114 = arith.constant 0 : index
    %c0_115 = arith.constant 0 : index
    %220 = vector.load %arg30[%c0_114, %c0_115] : memref<1x192xf32, #tpu.memory_space<vmem>>, vector<1x192xf32>
    %221 = vector.broadcast %220 : vector<1x192xf32> to vector<16x192xf32>
    %222 = arith.addf %219, %221 : vector<16x192xf32>
    %223 = vector.extract_strided_slice %222 {offsets = [0, 0], sizes = [16, 64], strides = [1, 1]} : vector<16x192xf32> to vector<16x64xf32>
    %224 = arith.negf %223 : vector<16x64xf32>
    %225 = math.exp %224 : vector<16x64xf32>
    %cst_116 = arith.constant 1.000000e+00 : f32
    %226 = vector.broadcast %cst_116 : f32 to vector<16x64xf32>
    %227 = arith.addf %226, %225 : vector<16x64xf32>
    %228 = arith.divf %226, %227 : vector<16x64xf32>
    %229 = vector.extract_strided_slice %222 {offsets = [0, 64], sizes = [16, 64], strides = [1, 1]} : vector<16x192xf32> to vector<16x64xf32>
    %230 = math.tanh %229 : vector<16x64xf32>
    %231 = vector.extract_strided_slice %222 {offsets = [0, 128], sizes = [16, 64], strides = [1, 1]} : vector<16x192xf32> to vector<16x64xf32>
    %232 = arith.negf %231 : vector<16x64xf32>
    %233 = math.exp %232 : vector<16x64xf32>
    %cst_117 = arith.constant 1.000000e+00 : f32
    %234 = vector.broadcast %cst_117 : f32 to vector<16x64xf32>
    %235 = arith.addf %234, %233 : vector<16x64xf32>
    %236 = arith.divf %234, %235 : vector<16x64xf32>
    %237 = arith.mulf %228, %230 : vector<16x64xf32>
    %238 = math.tanh %237 : vector<16x64xf32>
    %239 = arith.mulf %236, %238 : vector<16x64xf32>
    %c0_118 = arith.constant 0 : index
    %c0_119 = arith.constant 0 : index
    %240 = vector.load %arg31[%c0_118, %c0_119] : memref<64x192xbf16, #tpu.memory_space<vmem>>, vector<64x192xbf16>
    %241 = arith.truncf %239 : vector<16x64xf32> to vector<16x64xbf16>
    %cst_120 = arith.constant dense<0.000000e+00> : vector<16x192xf32>
    %242 = tpu.matmul %241, %240, %cst_120 {dimension_numbers = #tpu.dot_dimension_numbers<[1], [0], [0], [1], [0, 0, 1, 1], [], []>} : vector<16x64xbf16>, vector<64x192xbf16>, vector<16x192xf32> -> vector<16x192xf32>
    %c0_121 = arith.constant 0 : index
    %c0_122 = arith.constant 0 : index
    %243 = vector.load %arg32[%c0_121, %c0_122] : memref<1x192xf32, #tpu.memory_space<vmem>>, vector<1x192xf32>
    %244 = vector.broadcast %243 : vector<1x192xf32> to vector<16x192xf32>
    %245 = arith.addf %242, %244 : vector<16x192xf32>
    %246 = vector.extract_strided_slice %245 {offsets = [0, 0], sizes = [16, 64], strides = [1, 1]} : vector<16x192xf32> to vector<16x64xf32>
    %247 = arith.negf %246 : vector<16x64xf32>
    %248 = math.exp %247 : vector<16x64xf32>
    %cst_123 = arith.constant 1.000000e+00 : f32
    %249 = vector.broadcast %cst_123 : f32 to vector<16x64xf32>
    %250 = arith.addf %249, %248 : vector<16x64xf32>
    %251 = arith.divf %249, %250 : vector<16x64xf32>
    %252 = vector.extract_strided_slice %245 {offsets = [0, 64], sizes = [16, 64], strides = [1, 1]} : vector<16x192xf32> to vector<16x64xf32>
    %253 = math.tanh %252 : vector<16x64xf32>
    %254 = vector.extract_strided_slice %245 {offsets = [0, 128], sizes = [16, 64], strides = [1, 1]} : vector<16x192xf32> to vector<16x64xf32>
    %255 = arith.negf %254 : vector<16x64xf32>
    %256 = math.exp %255 : vector<16x64xf32>
    %cst_124 = arith.constant 1.000000e+00 : f32
    %257 = vector.broadcast %cst_124 : f32 to vector<16x64xf32>
    %258 = arith.addf %257, %256 : vector<16x64xf32>
    %259 = arith.divf %257, %258 : vector<16x64xf32>
    %260 = arith.mulf %251, %253 : vector<16x64xf32>
    %261 = math.tanh %260 : vector<16x64xf32>
    %262 = arith.mulf %259, %261 : vector<16x64xf32>
    %c0_125 = arith.constant 0 : index
    %c0_126 = arith.constant 0 : index
    %263 = vector.load %arg33[%c0_125, %c0_126] : memref<64x192xbf16, #tpu.memory_space<vmem>>, vector<64x192xbf16>
    %264 = arith.truncf %262 : vector<16x64xf32> to vector<16x64xbf16>
    %cst_127 = arith.constant dense<0.000000e+00> : vector<16x192xf32>
    %265 = tpu.matmul %264, %263, %cst_127 {dimension_numbers = #tpu.dot_dimension_numbers<[1], [0], [0], [1], [0, 0, 1, 1], [], []>} : vector<16x64xbf16>, vector<64x192xbf16>, vector<16x192xf32> -> vector<16x192xf32>
    %c0_128 = arith.constant 0 : index
    %c0_129 = arith.constant 0 : index
    %266 = vector.load %arg34[%c0_128, %c0_129] : memref<1x192xf32, #tpu.memory_space<vmem>>, vector<1x192xf32>
    %267 = vector.broadcast %266 : vector<1x192xf32> to vector<16x192xf32>
    %268 = arith.addf %265, %267 : vector<16x192xf32>
    %269 = vector.extract_strided_slice %268 {offsets = [0, 0], sizes = [16, 64], strides = [1, 1]} : vector<16x192xf32> to vector<16x64xf32>
    %270 = arith.negf %269 : vector<16x64xf32>
    %271 = math.exp %270 : vector<16x64xf32>
    %cst_130 = arith.constant 1.000000e+00 : f32
    %272 = vector.broadcast %cst_130 : f32 to vector<16x64xf32>
    %273 = arith.addf %272, %271 : vector<16x64xf32>
    %274 = arith.divf %272, %273 : vector<16x64xf32>
    %275 = vector.extract_strided_slice %268 {offsets = [0, 64], sizes = [16, 64], strides = [1, 1]} : vector<16x192xf32> to vector<16x64xf32>
    %276 = math.tanh %275 : vector<16x64xf32>
    %277 = vector.extract_strided_slice %268 {offsets = [0, 128], sizes = [16, 64], strides = [1, 1]} : vector<16x192xf32> to vector<16x64xf32>
    %278 = arith.negf %277 : vector<16x64xf32>
    %279 = math.exp %278 : vector<16x64xf32>
    %cst_131 = arith.constant 1.000000e+00 : f32
    %280 = vector.broadcast %cst_131 : f32 to vector<16x64xf32>
    %281 = arith.addf %280, %279 : vector<16x64xf32>
    %282 = arith.divf %280, %281 : vector<16x64xf32>
    %283 = arith.mulf %274, %276 : vector<16x64xf32>
    %284 = math.tanh %283 : vector<16x64xf32>
    %285 = arith.mulf %282, %284 : vector<16x64xf32>
    %c0_132 = arith.constant 0 : index
    %c0_133 = arith.constant 0 : index
    %286 = vector.load %arg35[%c0_132, %c0_133] : memref<64x64xbf16, #tpu.memory_space<vmem>>, vector<64x64xbf16>
    %287 = arith.truncf %285 : vector<16x64xf32> to vector<16x64xbf16>
    %cst_134 = arith.constant dense<0.000000e+00> : vector<16x64xf32>
    %288 = tpu.matmul %287, %286, %cst_134 {dimension_numbers = #tpu.dot_dimension_numbers<[1], [0], [0], [1], [0, 0, 1, 1], [], []>} : vector<16x64xbf16>, vector<64x64xbf16>, vector<16x64xf32> -> vector<16x64xf32>
    %c0_135 = arith.constant 0 : index
    %c0_136 = arith.constant 0 : index
    %289 = vector.load %arg36[%c0_135, %c0_136] : memref<1x64xf32, #tpu.memory_space<vmem>>, vector<1x64xf32>
    %290 = vector.broadcast %289 : vector<1x64xf32> to vector<16x64xf32>
    %291 = arith.addf %288, %290 : vector<16x64xf32>
    %cst_137 = arith.constant 0.000000e+00 : f32
    %292 = vector.broadcast %cst_137 : f32 to vector<16x64xf32>
    %293 = arith.cmpf ogt, %291, %292 : vector<16x64xf32>
    %cst_138 = arith.constant 0.00999999977 : f32
    %294 = vector.broadcast %cst_138 : f32 to vector<16x64xf32>
    %295 = arith.mulf %294, %291 : vector<16x64xf32>
    %296 = arith.select %293, %291, %295 : vector<16x64xi1>, vector<16x64xf32>
    %c0_139 = arith.constant 0 : index
    %c0_140 = arith.constant 0 : index
    %297 = vector.load %arg37[%c0_139, %c0_140] : memref<64x64xbf16, #tpu.memory_space<vmem>>, vector<64x64xbf16>
    %298 = arith.truncf %296 : vector<16x64xf32> to vector<16x64xbf16>
    %cst_141 = arith.constant dense<0.000000e+00> : vector<16x64xf32>
    %299 = tpu.matmul %298, %297, %cst_141 {dimension_numbers = #tpu.dot_dimension_numbers<[1], [0], [0], [1], [0, 0, 1, 1], [], []>} : vector<16x64xbf16>, vector<64x64xbf16>, vector<16x64xf32> -> vector<16x64xf32>
    %c0_142 = arith.constant 0 : index
    %c0_143 = arith.constant 0 : index
    %300 = vector.load %arg38[%c0_142, %c0_143] : memref<1x64xf32, #tpu.memory_space<vmem>>, vector<1x64xf32>
    %301 = vector.broadcast %300 : vector<1x64xf32> to vector<16x64xf32>
    %302 = arith.addf %299, %301 : vector<16x64xf32>
    %cst_144 = arith.constant 0.000000e+00 : f32
    %303 = vector.broadcast %cst_144 : f32 to vector<16x64xf32>
    %304 = arith.cmpf ogt, %302, %303 : vector<16x64xf32>
    %cst_145 = arith.constant 0.00999999977 : f32
    %305 = vector.broadcast %cst_145 : f32 to vector<16x64xf32>
    %306 = arith.mulf %305, %302 : vector<16x64xf32>
    %307 = arith.select %304, %302, %306 : vector<16x64xi1>, vector<16x64xf32>
    %c0_146 = arith.constant 0 : index
    %c0_147 = arith.constant 0 : index
    %308 = vector.load %arg39[%c0_146, %c0_147] : memref<128x64xbf16, #tpu.memory_space<vmem>>, vector<64x64xbf16>
    %309 = arith.truncf %215 : vector<16x64xf32> to vector<16x64xbf16>
    %cst_148 = arith.constant dense<0.000000e+00> : vector<16x64xf32>
    %310 = tpu.matmul %309, %308, %cst_148 {dimension_numbers = #tpu.dot_dimension_numbers<[1], [0], [0], [1], [0, 0, 1, 1], [], []>} : vector<16x64xbf16>, vector<64x64xbf16>, vector<16x64xf32> -> vector<16x64xf32>
    %c64_149 = arith.constant 64 : index
    %c0_150 = arith.constant 0 : index
    %311 = vector.load %arg39[%c64_149, %c0_150] : memref<128x64xbf16, #tpu.memory_space<vmem>>, vector<64x64xbf16>
    %312 = arith.truncf %307 : vector<16x64xf32> to vector<16x64xbf16>
    %cst_151 = arith.constant dense<0.000000e+00> : vector<16x64xf32>
    %313 = tpu.matmul %312, %311, %cst_151 {dimension_numbers = #tpu.dot_dimension_numbers<[1], [0], [0], [1], [0, 0, 1, 1], [], []>} : vector<16x64xbf16>, vector<64x64xbf16>, vector<16x64xf32> -> vector<16x64xf32>
    %314 = arith.addf %310, %313 : vector<16x64xf32>
    %c0_152 = arith.constant 0 : index
    %c0_153 = arith.constant 0 : index
    %315 = vector.load %arg40[%c0_152, %c0_153] : memref<1x64xf32, #tpu.memory_space<vmem>>, vector<1x64xf32>
    %316 = vector.broadcast %315 : vector<1x64xf32> to vector<16x64xf32>
    %317 = arith.addf %314, %316 : vector<16x64xf32>
    %cst_154 = arith.constant 0.000000e+00 : f32
    %318 = vector.broadcast %cst_154 : f32 to vector<16x64xf32>
    %319 = arith.maximumf %317, %318 : vector<16x64xf32>
    %c0_155 = arith.constant 0 : index
    %c0_156 = arith.constant 0 : index
    %320 = vector.load %arg41[%c0_155, %c0_156] : memref<64x64xbf16, #tpu.memory_space<vmem>>, vector<64x64xbf16>
    %321 = arith.truncf %319 : vector<16x64xf32> to vector<16x64xbf16>
    %cst_157 = arith.constant dense<0.000000e+00> : vector<16x64xf32>
    %322 = tpu.matmul %321, %320, %cst_157 {dimension_numbers = #tpu.dot_dimension_numbers<[1], [0], [0], [1], [0, 0, 1, 1], [], []>} : vector<16x64xbf16>, vector<64x64xbf16>, vector<16x64xf32> -> vector<16x64xf32>
    %c0_158 = arith.constant 0 : index
    %c0_159 = arith.constant 0 : index
    %323 = vector.load %arg42[%c0_158, %c0_159] : memref<1x64xf32, #tpu.memory_space<vmem>>, vector<1x64xf32>
    %324 = vector.broadcast %323 : vector<1x64xf32> to vector<16x64xf32>
    %325 = arith.addf %322, %324 : vector<16x64xf32>
    %cst_160 = arith.constant 0.000000e+00 : f32
    %326 = vector.broadcast %cst_160 : f32 to vector<16x64xf32>
    %327 = arith.maximumf %325, %326 : vector<16x64xf32>
    %c0_161 = arith.constant 0 : index
    %c0_162 = arith.constant 0 : index
    %328 = vector.load %arg43[%c0_161, %c0_162] : memref<64x4xbf16, #tpu.memory_space<vmem>>, vector<64x4xbf16>
    %329 = arith.truncf %327 : vector<16x64xf32> to vector<16x64xbf16>
    %cst_163 = arith.constant dense<0.000000e+00> : vector<16x4xf32>
    %330 = tpu.matmul %329, %328, %cst_163 {dimension_numbers = #tpu.dot_dimension_numbers<[1], [0], [0], [1], [0, 0, 1, 1], [], []>} : vector<16x64xbf16>, vector<64x4xbf16>, vector<16x4xf32> -> vector<16x4xf32>
    %c0_164 = arith.constant 0 : index
    %c0_165 = arith.constant 0 : index
    %331 = vector.load %arg44[%c0_164, %c0_165] : memref<1x4xf32, #tpu.memory_space<vmem>>, vector<1x4xf32>
    %332 = vector.broadcast %331 : vector<1x4xf32> to vector<16x4xf32>
    %333 = arith.addf %330, %332 : vector<16x4xf32>
    %c0_166 = arith.constant 0 : index
    %c0_167 = arith.constant 0 : index
    %334 = vector.load %arg45[%c0_166, %c0_167] : memref<16x4xf32, #tpu.memory_space<vmem>>, vector<16x4xf32>
    tpu.vector_store %arg45[%c0_166, %c0_167], %333 {strides = array<i32>} : memref<16x4xf32, #tpu.memory_space<vmem>>, vector<16x4xf32>,
    return
  }
  func.func @transform_0(%arg0: i32) -> (i32, i32) {
    %c0_i32 = arith.constant 0 : i32
    %c0_i32_0 = arith.constant 0 : i32
    %c0_i32_1 = arith.constant 0 : i32
    return %c0_i32, %c0_i32_0 : i32, i32
  }
  func.func @transform_1(%arg0: i32) -> (i32, i32) {
    %c0_i32 = arith.constant 0 : i32
    %c0_i32_0 = arith.constant 0 : i32
    %c0_i32_1 = arith.constant 0 : i32
    return %c0_i32, %c0_i32_0 : i32, i32
  }
  func.func @transform_2(%arg0: i32) -> (i32, i32) {
    %c0_i32 = arith.constant 0 : i32
    %c0_i32_0 = arith.constant 0 : i32
    %c0_i32_1 = arith.constant 0 : i32
    return %c0_i32, %c0_i32_0 : i32, i32
  }
  func.func @transform_3(%arg0: i32) -> (i32, i32) {
    %c0_i32 = arith.constant 0 : i32
    %c0_i32_0 = arith.constant 0 : i32
    %c0_i32_1 = arith.constant 0 : i32
    return %c0_i32, %c0_i32_0 : i32, i32
  }
  func.func @transform_4(%arg0: i32) -> (i32, i32) {
    %c0_i32 = arith.constant 0 : i32
    %c0_i32_0 = arith.constant 0 : i32
    %c0_i32_1 = arith.constant 0 : i32
    return %c0_i32, %c0_i32_0 : i32, i32
  }
  func.func @transform_5(%arg0: i32) -> (i32, i32) {
    %c0_i32 = arith.constant 0 : i32
    %c0_i32_0 = arith.constant 0 : i32
    %c0_i32_1 = arith.constant 0 : i32
    return %c0_i32, %c0_i32_0 : i32, i32
  }
  func.func @transform_6(%arg0: i32) -> (i32, i32) {
    %c0_i32 = arith.constant 0 : i32
    %c0_i32_0 = arith.constant 0 : i32
    %c0_i32_1 = arith.constant 0 : i32
    return %c0_i32, %c0_i32_0 : i32, i32
  }
  func.func @transform_7(%arg0: i32) -> (i32, i32) {
    %c0_i32 = arith.constant 0 : i32
    %c0_i32_0 = arith.constant 0 : i32
    %c0_i32_1 = arith.constant 0 : i32
    return %c0_i32, %c0_i32_0 : i32, i32
  }
  func.func @transform_8(%arg0: i32) -> (i32, i32) {
    %c0_i32 = arith.constant 0 : i32
    %c0_i32_0 = arith.constant 0 : i32
    %c0_i32_1 = arith.constant 0 : i32
    return %c0_i32, %c0_i32_0 : i32, i32
  }
  func.func @transform_9(%arg0: i32) -> (i32, i32) {
    %c0_i32 = arith.constant 0 : i32
    %c0_i32_0 = arith.constant 0 : i32
    %c0_i32_1 = arith.constant 0 : i32
    return %c0_i32, %c0_i32_0 : i32, i32
  }
  func.func @transform_10(%arg0: i32) -> (i32, i32) {
    %c0_i32 = arith.constant 0 : i32
    %c0_i32_0 = arith.constant 0 : i32
    %c0_i32_1 = arith.constant 0 : i32
    return %c0_i32, %c0_i32_0 : i32, i32
  }
  func.func @transform_11(%arg0: i32) -> (i32, i32) {
    %c0_i32 = arith.constant 0 : i32
    %c0_i32_0 = arith.constant 0 : i32
    %c0_i32_1 = arith.constant 0 : i32
    return %c0_i32, %c0_i32_0 : i32, i32
  }
  func.func @transform_12(%arg0: i32) -> (i32, i32) {
    %c0_i32 = arith.constant 0 : i32
    %c0_i32_0 = arith.constant 0 : i32
    %c0_i32_1 = arith.constant 0 : i32
    return %c0_i32, %c0_i32_0 : i32, i32
  }
  func.func @transform_13(%arg0: i32) -> (i32, i32) {
    %c0_i32 = arith.constant 0 : i32
    %c0_i32_0 = arith.constant 0 : i32
    %c0_i32_1 = arith.constant 0 : i32
    return %c0_i32, %c0_i32_0 : i32, i32
  }
  func.func @transform_14(%arg0: i32) -> (i32, i32) {
    %c0_i32 = arith.constant 0 : i32
    %c0_i32_0 = arith.constant 0 : i32
    %c0_i32_1 = arith.constant 0 : i32
    return %c0_i32, %c0_i32_0 : i32, i32
  }
  func.func @transform_15(%arg0: i32) -> (i32, i32) {
    %c0_i32 = arith.constant 0 : i32
    %c0_i32_0 = arith.constant 0 : i32
    %c0_i32_1 = arith.constant 0 : i32
    return %c0_i32, %c0_i32_0 : i32, i32
  }
  func.func @transform_16(%arg0: i32) -> (i32, i32) {
    %c0_i32 = arith.constant 0 : i32
    %c0_i32_0 = arith.constant 0 : i32
    %c0_i32_1 = arith.constant 0 : i32
    return %c0_i32, %c0_i32_0 : i32, i32
  }
  func.func @transform_17(%arg0: i32) -> (i32, i32) {
    %c0_i32 = arith.constant 0 : i32
    %c0_i32_0 = arith.constant 0 : i32
    %c0_i32_1 = arith.constant 0 : i32
    return %c0_i32, %c0_i32_0 : i32, i32
  }
  func.func @transform_18(%arg0: i32) -> (i32, i32) {
    %c0_i32 = arith.constant 0 : i32
    %c0_i32_0 = arith.constant 0 : i32
    %c0_i32_1 = arith.constant 0 : i32
    return %c0_i32, %c0_i32_0 : i32, i32
  }
  func.func @transform_19(%arg0: i32) -> (i32, i32) {
    %c0_i32 = arith.constant 0 : i32
    %c0_i32_0 = arith.constant 0 : i32
    %c0_i32_1 = arith.constant 0 : i32
    return %c0_i32, %c0_i32_0 : i32, i32
  }
  func.func @transform_20(%arg0: i32) -> (i32, i32) {
    %c0_i32 = arith.constant 0 : i32
    %c0_i32_0 = arith.constant 0 : i32
    %c0_i32_1 = arith.constant 0 : i32
    return %c0_i32, %c0_i32_0 : i32, i32
  }
  func.func @transform_21(%arg0: i32) -> (i32, i32) {
    %c0_i32 = arith.constant 0 : i32
    %c0_i32_0 = arith.constant 0 : i32
    %c0_i32_1 = arith.constant 0 : i32
    return %c0_i32, %c0_i32_0 : i32, i32
  }
  func.func @transform_22(%arg0: i32) -> (i32, i32) {
    %c0_i32 = arith.constant 0 : i32
    %c0_i32_0 = arith.constant 0 : i32
    %c0_i32_1 = arith.constant 0 : i32
    return %c0_i32, %c0_i32_0 : i32, i32
  }
  func.func @transform_23(%arg0: i32) -> (i32, i32) {
    %c0_i32 = arith.constant 0 : i32
    %c0_i32_0 = arith.constant 0 : i32
    %c0_i32_1 = arith.constant 0 : i32
    return %c0_i32, %c0_i32_0 : i32, i32
  }
  func.func @transform_24(%arg0: i32) -> (i32, i32) {
    %c0_i32 = arith.constant 0 : i32
    %c0_i32_0 = arith.constant 0 : i32
    %c0_i32_1 = arith.constant 0 : i32
    return %c0_i32, %c0_i32_0 : i32, i32
  }
  func.func @transform_25(%arg0: i32) -> (i32, i32) {
    %c0_i32 = arith.constant 0 : i32
    %c0_i32_0 = arith.constant 0 : i32
    %c0_i32_1 = arith.constant 0 : i32
    return %c0_i32, %c0_i32_0 : i32, i32
  }
  func.func @transform_26(%arg0: i32) -> (i32, i32) {
    %c0_i32 = arith.constant 0 : i32
    %c0_i32_0 = arith.constant 0 : i32
    %c0_i32_1 = arith.constant 0 : i32
    return %c0_i32, %c0_i32_0 : i32, i32
  }
  func.func @transform_27(%arg0: i32) -> (i32, i32) {
    %c0_i32 = arith.constant 0 : i32
    %c0_i32_0 = arith.constant 0 : i32
    %c0_i32_1 = arith.constant 0 : i32
    return %c0_i32, %c0_i32_0 : i32, i32
  }
  func.func @transform_28(%arg0: i32) -> (i32, i32) {
    %c0_i32 = arith.constant 0 : i32
    %c0_i32_0 = arith.constant 0 : i32
    %c0_i32_1 = arith.constant 0 : i32
    return %c0_i32, %c0_i32_0 : i32, i32
  }
  func.func @transform_29(%arg0: i32) -> (i32, i32) {
    %c0_i32 = arith.constant 0 : i32
    %c0_i32_0 = arith.constant 0 : i32
    %c0_i32_1 = arith.constant 0 : i32
    return %c0_i32, %c0_i32_0 : i32, i32
  }
  func.func @transform_30(%arg0: i32) -> (i32, i32) {
    %c0_i32 = arith.constant 0 : i32
    %c0_i32_0 = arith.constant 0 : i32
    %c0_i32_1 = arith.constant 0 : i32
    return %c0_i32, %c0_i32_0 : i32, i32
  }
  func.func @transform_31(%arg0: i32) -> (i32, i32) {
    %c0_i32 = arith.constant 0 : i32
    %c0_i32_0 = arith.constant 0 : i32
    %c0_i32_1 = arith.constant 0 : i32
    return %c0_i32, %c0_i32_0 : i32, i32
  }
  func.func @transform_32(%arg0: i32) -> (i32, i32) {
    %c0_i32 = arith.constant 0 : i32
    %c0_i32_0 = arith.constant 0 : i32
    %c0_i32_1 = arith.constant 0 : i32
    return %c0_i32, %c0_i32_0 : i32, i32
  }
  func.func @transform_33(%arg0: i32) -> (i32, i32) {
    %c0_i32 = arith.constant 0 : i32
    %c0_i32_0 = arith.constant 0 : i32
    %c0_i32_1 = arith.constant 0 : i32
    return %c0_i32, %c0_i32_0 : i32, i32
  }
  func.func @transform_34(%arg0: i32) -> (i32, i32) {
    %c0_i32 = arith.constant 0 : i32
    %c0_i32_0 = arith.constant 0 : i32
    %c0_i32_1 = arith.constant 0 : i32
    return %c0_i32, %c0_i32_0 : i32, i32
  }
  func.func @transform_35(%arg0: i32) -> (i32, i32) {
    %c0_i32 = arith.constant 0 : i32
    %c0_i32_0 = arith.constant 0 : i32
    %c0_i32_1 = arith.constant 0 : i32
    return %c0_i32, %c0_i32_0 : i32, i32
  }
  func.func @transform_36(%arg0: i32) -> (i32, i32) {
    %c0_i32 = arith.constant 0 : i32
    %c0_i32_0 = arith.constant 0 : i32
    %c0_i32_1 = arith.constant 0 : i32
    return %c0_i32, %c0_i32_0 : i32, i32
  }
  func.func @transform_37(%arg0: i32) -> (i32, i32) {
    %c0_i32 = arith.constant 0 : i32
    %c0_i32_0 = arith.constant 0 : i32
    %c0_i32_1 = arith.constant 0 : i32
    return %c0_i32, %c0_i32_0 : i32, i32
  }
  func.func @transform_38(%arg0: i32) -> (i32, i32) {
    %c0_i32 = arith.constant 0 : i32
    %c0_i32_0 = arith.constant 0 : i32
    %c0_i32_1 = arith.constant 0 : i32
    return %c0_i32, %c0_i32_0 : i32, i32
  }
  func.func @transform_39(%arg0: i32) -> (i32, i32) {
    %c0_i32 = arith.constant 0 : i32
    %c0_i32_0 = arith.constant 0 : i32
    %c0_i32_1 = arith.constant 0 : i32
    return %c0_i32, %c0_i32_0 : i32, i32
  }
  func.func @transform_40(%arg0: i32) -> (i32, i32) {
    %c0_i32 = arith.constant 0 : i32
    %c0_i32_0 = arith.constant 0 : i32
    %c0_i32_1 = arith.constant 0 : i32
    return %c0_i32, %c0_i32_0 : i32, i32
  }
  func.func @transform_41(%arg0: i32) -> (i32, i32) {
    %c0_i32 = arith.constant 0 : i32
    %c0_i32_0 = arith.constant 0 : i32
    %c0_i32_1 = arith.constant 0 : i32
    return %c0_i32, %c0_i32_0 : i32, i32
  }
  func.func @transform_42(%arg0: i32) -> (i32, i32) {
    %c0_i32 = arith.constant 0 : i32
    %c0_i32_0 = arith.constant 0 : i32
    %c0_i32_1 = arith.constant 0 : i32
    return %c0_i32, %c0_i32_0 : i32, i32
  }
  func.func @transform_43(%arg0: i32) -> (i32, i32) {
    %c0_i32 = arith.constant 0 : i32
    %c0_i32_0 = arith.constant 0 : i32
    %c0_i32_1 = arith.constant 0 : i32
    return %c0_i32, %c0_i32_0 : i32, i32
  }
  func.func @transform_44(%arg0: i32) -> (i32, i32) {
    %c0_i32 = arith.constant 0 : i32
    %c0_i32_0 = arith.constant 0 : i32
    %c0_i32_1 = arith.constant 0 : i32
    return %c0_i32, %c0_i32_0 : i32, i32
  }
}

</mosaic_0001>

<bundles_post_ra>
// kernel: tpu_custom_call.1
= control target key start
LH: loop header
LB: loop body
LE: loop exit
PB: predicated region body
PF: predicated region fallthrough
CT: control target
= control target key end

     0   :  { %s4559_s6 = smov 1   ;;  %s4560_s10 = smov 2   ;;  %s5294_s0 = inlined_call_operand.smem [shape: u32[45], index: -1, kind: input, shape index: {}] }
   0x1   :  { %s4652_s5 = sld [smem:[%s5294_s0]]   ;;  %s4561_s14 = smov 3  }
   0x2   :  { %s4657_s9 = sld [smem:[%s5294_s0 + %s4559_s6]]   ;;  %s4562_s18 = smov 4  }
   0x3   :  { %s4662_s13 = sld [smem:[%s5294_s0 + %s4560_s10]]   ;;  %s4563_s22 = smov 5  }
   0x4   :  { %s4667_s17 = sld [smem:[%s5294_s0 + %s4561_s14]]   ;;  %s4564_s26 = smov 6  }
   0x5   :  { %s4672_s21 = sld [smem:[%s5294_s0 + %s4562_s18]]   ;;  %s4565_s30 = smov 7  }
   0x6   :  { %s4677_s25 = sld [smem:[%s5294_s0 + %s4563_s22]]   ;;  %s4566_s4 = smov 8  }
   0x7   :  { %5320 = sst [smem:[#allocation72_spill]] %s4652_s5  ;;  %s4567_s10 = smov 9  }
   0x8   :  { %s4682_s29 = sld [smem:[%s5294_s0 + %s4564_s26]]   ;;  %s4568_s15 = smov 10  }
   0x9   :  { %5321 = sst [smem:[#allocation73_spill]] %s4662_s13  ;;  %s4569_s20 = smov 11  }
   0xa   :  { %s4687_s3 = sld [smem:[%s5294_s0 + %s4565_s30]]   ;;  %s4570_s26 = smov 12  }
   0xb   :  { %5322 = sst [smem:[#allocation74_spill]] %s4672_s21  ;;  %s4571_s1 = smov 13  }
   0xc   :  { %s4692_s8 = sld [smem:[%s5294_s0 + %s4566_s4]]   ;;  %s4572_s7 = smov 14  }
   0xd   :  { %s4697_s14 = sld [smem:[%s5294_s0 + %s4567_s10]]   ;;  %s4574_s22 = smov 16  }
   0xe   :  { %5323 = sst [smem:[#allocation75_spill]] %s4682_s29  ;;  %s4575_s28 = smov 17  }
   0xf   :  { %s4702_s19 = sld [smem:[%s5294_s0 + %s4568_s15]]   ;;  %s4573_s15 = smov 15  }
  0x10   :  { %s4707_s24 = sld [smem:[%s5294_s0 + %s4569_s20]]  }
  0x11   :  { %s4712_s30 = sld [smem:[%s5294_s0 + %s4570_s26]]  }
  0x12   :  { %5324 = sst [smem:[#allocation76_spill]] %s4692_s8 }
  0x13   :  { %s4717_s6 = sld [smem:[%s5294_s0 + %s4571_s1]]  }
  0x14   :  { %s4722_s12 = sld [smem:[%s5294_s0 + %s4572_s7]]   ;;  %s4576_s7 = smov 18  }
  0x15   :  { %5325 = sst [smem:[#allocation77_spill]] %s4702_s19 }
  0x16   :  { %5326 = sst [smem:[#allocation78_spill]] %s4707_s24 }
  0x17   :  { %5327 = sst [smem:[#allocation79_spill]] %s4712_s30 }
  0x18   :  { %s4727_s20 = sld [smem:[%s5294_s0 + %s4573_s15]]   ;;  %s4577_s15 = smov 19  }
  0x19   :  { %s4732_s27 = sld [smem:[%s5294_s0 + %s4574_s22]]   ;;  %s4578_s22 = smov 20  }
  0x1a   :  { %5328 = sst [smem:[#allocation80_spill]] %s4722_s12 }
  0x1b   :  { %s4737_s4 = sld [smem:[%s5294_s0 + %s4575_s28]]   ;;  %s4579_s28 = smov 21  }
  0x1c   :  { %s4742_s30 = sld [smem:[%s5294_s0 + %s4576_s7]]   ;;  %s4580_s7 = smov 22  }
  0x1d   :  { %s4747_s19 = sld [smem:[%s5294_s0 + %s4577_s15]]   ;;  %s4581_s15 = smov 23  }
  0x1e   :  { %s4757_s12 = sld [smem:[%s5294_s0 + %s4579_s28]]   ;;  %s4583_s28 = smov 25  }
  0x1f   :  { %5329 = sst [smem:[#allocation81_spill]] %s4732_s27 }
  0x20   :  { %s4752_s27 = sld [smem:[%s5294_s0 + %s4578_s22]]   ;;  %s4582_s22 = smov 24  }
  0x21   :  { %s4767_s24 = sld [smem:[%s5294_s0 + %s4581_s15]]   ;;  %s4585_s15 = smov 27  }
  0x22   :  { %5330 = sst [smem:[#allocation82_spill]] %s4742_s30 }
  0x23   :  { %s4762_s30 = sld [smem:[%s5294_s0 + %s4580_s7]]   ;;  %s4584_s7 = smov 26  }
  0x24   :  { %s4777_s8 = sld [smem:[%s5294_s0 + %s4583_s28]]   ;;  %s4587_s28 = smov 29  }
  0x25   :  { %s4787_s29 = sld [smem:[%s5294_s0 + %s4585_s15]]   ;;  %s4589_s15 = smov 31  }
  0x26   :  { %5331 = sst [smem:[#allocation83_spill]] %s4752_s27 }
  0x27   :  { %s4772_s27 = sld [smem:[%s5294_s0 + %s4582_s22]]   ;;  %s4586_s22 = smov 28  }
  0x29   :  { %5332 = sst [smem:[#allocation84_spill]] %s4762_s30 }
  0x2a   :  { %5334 = sst [smem:[#allocation86_spill]] %s4777_s8 }
  0x2b   :  { %s4782_s30 = sld [smem:[%s5294_s0 + %s4584_s7]]   ;;  %s4588_s7 = smov 30  }
  0x2c   :  { %5335 = sst [smem:[#allocation87_spill]] %s4787_s29 }
  0x2d   :  { %5333 = sst [smem:[#allocation85_spill]] %s4772_s27 }
  0x2e   :  { %s4792_s27 = sld [smem:[%s5294_s0 + %s4586_s22]]   ;;  %s4590_s22 = smov 32  }
  0x2f   :  { %s4797_s8 = sld [smem:[%s5294_s0 + %s4587_s28]]   ;;  %s4591_s28 = smov 33  }
  0x30   :  { %s4802_s21 = sld [smem:[%s5294_s0 + %s4588_s7]]   ;;  %s4592_s7 = smov 34  }
  0x31   :  { %s4807_s29 = sld [smem:[%s5294_s0 + %s4589_s15]]   ;;  %s4593_s15 = smov 35  }
  0x32   :  { %s4812_s13 = sld [smem:[%s5294_s0 + %s4590_s22]]   ;;  %s4594_s22 = smov 36  }
  0x33   :  { %s4827_s5 = sld [smem:[%s5294_s0 + %s4593_s15]]   ;;  %s4597_s15 = smov 39  }
  0x35   :  { %5336 = sst [smem:[#allocation88_spill]] %s4797_s8 }
  0x36   :  { %5337 = sst [smem:[#allocation89_spill]] %s4802_s21 }
  0x37   :  { %s4817_s8 = sld [smem:[%s5294_s0 + %s4591_s28]]   ;;  %s4595_s28 = smov 37  }
  0x38   :  { %5338 = sst [smem:[#allocation90_spill]] %s4812_s13 }
  0x39   :  { %s4822_s21 = sld [smem:[%s5294_s0 + %s4592_s7]]   ;;  %s4596_s7 = smov 38  }
  0x3a   :  { %5341 = sst [smem:[#allocation93_spill]] %s4827_s5 }
  0x3b   :  { %s4832_s13 = sld [smem:[%s5294_s0 + %s4594_s22]]   ;;  %s4598_s22 = smov 40  }
  0x3c   :  { %s4847_s5 = sld [smem:[%s5294_s0 + %s4597_s15]]   ;;  %s4601_s15 = smov 43  }
  0x3d   :  { %5339 = sst [smem:[#allocation91_spill]] %s4817_s8 }
  0x3e   :  { %s4837_s8 = sld [smem:[%s5294_s0 + %s4595_s28]]   ;;  %s4599_s28 = smov 41  }
  0x3f   :  { %5340 = sst [smem:[#allocation92_spill]] %s4822_s21 }
  0x40   :  { %s4842_s21 = sld [smem:[%s5294_s0 + %s4596_s7]]   ;;  %s4600_s7 = smov 42  }
  0x41   :  { %5342 = sst [smem:[#allocation94_spill]] %s4832_s13 }
  0x42   :  { %5345 = sst [smem:[#allocation97_spill]] %s4847_s5 }
  0x43   :  { %s4852_s13 = sld [smem:[%s5294_s0 + %s4598_s22]]   ;;  %s4602_s22 = smov 44  }
  0x44   :  { %5343 = sst [smem:[#allocation95_spill]] %s4837_s8 }
  0x45   :  { %s4857_s8 = sld [smem:[%s5294_s0 + %s4599_s28]]  }
  0x46   :  { %5344 = sst [smem:[#allocation96_spill]] %s4842_s21 }
  0x47   :  { %s4862_s21 = sld [smem:[%s5294_s0 + %s4600_s7]]  }
  0x48   :  { %s4867_s5 = sld [smem:[%s5294_s0 + %s4601_s15]]  }
  0x49   :  { %5346 = sst [smem:[#allocation98_spill]] %s4852_s13 }
  0x4a   :  { %s4872_s13 = sld [smem:[%s5294_s0 + %s4602_s22]]  }
  0x4b   :  { %94 = vsyncpa [#allocation3], 0 }
  0x4c   :  { %95 = vsyncpa [#allocation5], 0 }
  0x4d   :  { %96 = vsyncpa [#allocation8], 0 }
  0x4e   :  { %97 = vsyncpa [#allocation11], 0 }
  0x4f   :  { %98 = vsyncpa [#allocation14], 0 }
  0x50   :  { %99 = vsyncpa [#allocation17], 0 }
  0x51   :  { %100 = vsyncpa [#allocation20], 0 }
  0x52   :  { %101 = vsyncpa [#allocation23], 0 }
  0x53   :  { %102 = vsyncpa [#allocation26], 0 }
  0x54   :  { %103 = vsyncpa [#allocation29], 0 }
  0x55   :  { %104 = vsyncpa [#allocation32], 0 }
  0x56   :  { %105 = vsyncpa [#allocation35], 0 }
  0x57   :  { %106 = vsyncpa [#allocation38], 0 }
  0x58   :  { %107 = vsyncpa [#allocation41], 0 }
  0x59   :  { %108 = vsyncpa [#allocation44], 0 }
  0x5a   :  { %109 = vsyncpa [#allocation47], 0 }
  0x5b   :  { %110 = vsyncpa [#allocation50], 0  ;;  %s129_s0 = sshll.u32 %s4657_s9, 4  ;;  %s130_s0 = int_to_ptr.hbm [resolvable:$true] %s129_s0 }
  0x5c   :  { %111 = vsyncpa [#allocation53], 0  ;;  %s4603_s28 = smov [#allocation4]   ;;  %s3707_s2 = sshra.s32 %s130_s0, 4  ;;  %s3708_s2 = int_to_ptr.hbm [resolvable:$true] %s3707_s2 }
  0x5d   :  { %s131_s1 = sshll.u32 %s4603_s28, 4  ;;  %s3709_s7 = scalar_lea.hbm %s3708_s2, 48  ;;  %s132_s1 = int_to_ptr.vmem [resolvable:$true] %s131_s1 }
  0x5e   :  { %p3710_p0 = scmp.ne.s32.totalorder %s3708_s2, %s3709_s7  ;;  %s3711_s10 = scalar_lea.hbm %s4657_s9, 48 }
  0x5f   :  { %p3712_p1 = scmp.lt.s32.totalorder %s3708_s2, %s4657_s9  ;;  %p3713_p2 = scmp.lt.s32.totalorder %s3711_s10, %s3709_s7 }
  0x61   :  { %p3714_p3 = por %p3713_p2, %p3712_p1 }
  0x63   :  { %p3715_p4 = pnand %p3714_p3, %p3710_p0 }
  0x65   :  { %3718 = shalt.err (!%p3715_p4)
}
  0x66   :  { %s4604_s11 = smov 384   ;;  %s4605_s15 = smov 24  }
  0x67   :  { %137 = dma.hbm_to_vmem [thread:$0]  %s130_s0, 768, %s132_s1, [#allocation5], %s4604_s11, %s4604_s11, %s4605_s15  }
  0x68   :  { %s155_s16 = sshll.u32 %s4667_s17, 4  ;;  %s4606_s18 = smov [#allocation7]   ;;  %s156_s16 = int_to_ptr.hbm [resolvable:$true] %s155_s16 }
  0x69   :  { %s157_s22 = sshll.u32 %s4606_s18, 4  ;;  %s182_s23 = sshll.u32 %s4677_s25, 4  ;;  %s158_s22 = int_to_ptr.vmem [resolvable:$true] %s157_s22  ;;  %s4879_s23 = int_to_ptr.hbm [resolvable:$true] %s182_s23 }
  0x6a   :  { %s3731_s9 = sshra.s32 %s156_s16, 4  ;;  %s3735_s28 = scalar_lea.hbm %s4667_s17, 16  ;;  %s3732_s9 = int_to_ptr.hbm [resolvable:$true] %s3731_s9 }
  0x6b   :  { %s3733_s26 = scalar_lea.hbm %s3732_s9, 16  ;;  %p3736_p6 = scmp.lt.s32.totalorder %s3732_s9, %s4667_s17 }
  0x6c   :  { %p3734_p5 = scmp.ne.s32.totalorder %s3732_s9, %s3733_s26  ;;  %p3737_p7 = scmp.lt.s32.totalorder %s3735_s28, %s3733_s26 }
  0x6e   :  { %p3738_p8 = por %p3737_p7, %p3736_p6 }
  0x70   :  { %p3739_p9 = pnand %p3738_p8, %p3734_p5 }
  0x72   :  { %3742 = shalt.err (!%p3739_p9)
}
  0x73   :  { %s4607_s2 = smov 128   ;;  %s4608_s0 = smov 8  }
  0x74   :  { %163 = dma.hbm_to_vmem [thread:$0]  %s156_s16, 256, %s158_s22, [#allocation8], %s4607_s2, %s4607_s2, %s4608_s0  }
  0x75   :  { %s206_s1 = sshll.u32 %s4687_s3, 4  ;;  %s4609_s7 = smov [#allocation10]   ;;  %s207_s1 = int_to_ptr.hbm [resolvable:$true] %s206_s1 }
  0x76   :  { %s184_s10 = sshll.u32 %s4609_s7, 4  ;;  %s3755_s17 = sshra.s32 %s4879_s23, 4  ;;  %s185_s10 = int_to_ptr.vmem [resolvable:$true] %s184_s10  ;;  %s3756_s17 = int_to_ptr.hbm [resolvable:$true] %s3755_s17 }
  0x77   :  { %s3757_s11 = scalar_lea.hbm %s3756_s17, 1  ;;  %s3759_s15 = scalar_lea.hbm %s4677_s25, 1 }
  0x78   :  { %p3758_p10 = scmp.ne.s32.totalorder %s3756_s17, %s3757_s11  ;;  %p3760_p11 = scmp.lt.s32.totalorder %s3756_s17, %s4677_s25 }
  0x79   :  { %p3761_p12 = scmp.lt.s32.totalorder %s3759_s15, %s3757_s11 }
  0x7b   :  { %p3762_p13 = por %p3761_p12, %p3760_p11 }
  0x7d   :  { %p3763_p0 = pnand %p3762_p13, %p3758_p10 }
  0x7f   :  { %3766 = shalt.err (!%p3763_p0)
}
  0x80   :  { %187 = dma.hbm_to_vmem [thread:$0]  %s4879_s23, 16, %s185_s10, [#allocation11]  }
  0x81   :  { %s4610_s16 = smov [#allocation13]   ;;  %s230_s22 = sshll.u32 %s4697_s14, 4  ;;  %s231_s22 = int_to_ptr.hbm [resolvable:$true] %s230_s22 }
  0x82   :  { %s208_s18 = sshll.u32 %s4610_s16, 4  ;;  %s3779_s9 = sshra.s32 %s207_s1, 4  ;;  %s209_s18 = int_to_ptr.vmem [resolvable:$true] %s208_s18  ;;  %s3780_s9 = int_to_ptr.hbm [resolvable:$true] %s3779_s9 }
  0x83   :  { %s3781_s26 = scalar_lea.hbm %s3780_s9, 1  ;;  %s3783_s28 = scalar_lea.hbm %s4687_s3, 1 }
  0x84   :  { %p3782_p1 = scmp.ne.s32.totalorder %s3780_s9, %s3781_s26  ;;  %p3784_p2 = scmp.lt.s32.totalorder %s3780_s9, %s4687_s3 }
  0x85   :  { %p3785_p3 = scmp.lt.s32.totalorder %s3783_s28, %s3781_s26 }
  0x87   :  { %p3786_p4 = por %p3785_p3, %p3784_p2 }
  0x89   :  { %p3787_p5 = pnand %p3786_p4, %p3782_p1 }
  0x8b   :  { %3790 = shalt.err (!%p3787_p5)
}
  0x8c   :  { %211 = dma.hbm_to_vmem [thread:$0]  %s207_s1, 16, %s209_s18, [#allocation14]  }
  0x8d   :  { %s256_s25 = sshll.u32 %s4717_s6, 4  ;;  %s4611_s23 = smov [#allocation16]   ;;  %s257_s25 = int_to_ptr.hbm [resolvable:$true] %s256_s25 }
  0x8e   :  { %s232_s7 = sshll.u32 %s4611_s23, 4  ;;  %s3803_s10 = sshra.s32 %s231_s22, 4  ;;  %s233_s7 = int_to_ptr.vmem [resolvable:$true] %s232_s7  ;;  %s3804_s10 = int_to_ptr.hbm [resolvable:$true] %s3803_s10 }
  0x8f   :  { %s3805_s17 = scalar_lea.hbm %s3804_s10, 1  ;;  %s3807_s11 = scalar_lea.hbm %s4697_s14, 1 }
  0x90   :  { %p3806_p6 = scmp.ne.s32.totalorder %s3804_s10, %s3805_s17  ;;  %p3808_p7 = scmp.lt.s32.totalorder %s3804_s10, %s4697_s14 }
  0x91   :  { %p3809_p8 = scmp.lt.s32.totalorder %s3807_s11, %s3805_s17 }
  0x93   :  { %p3810_p9 = por %p3809_p8, %p3808_p7 }
  0x95   :  { %p3811_p10 = pnand %p3810_p9, %p3806_p6 }
  0x97   :  { %3814 = shalt.err (!%p3811_p10)
}
  0x98   :  { %235 = dma.hbm_to_vmem [thread:$0]  %s231_s22, 16, %s233_s7, [#allocation17]  }
  0x99   :  { %s4612_s3 = smov [#allocation19]   ;;  %s280_s15 = sshll.u32 %s4727_s20, 4  ;;  %s281_s15 = int_to_ptr.hbm [resolvable:$true] %s280_s15 }
  0x9a   :  { %s258_s1 = sshll.u32 %s4612_s3, 4  ;;  %s3827_s16 = sshra.s32 %s257_s25, 4  ;;  %s259_s1 = int_to_ptr.vmem [resolvable:$true] %s258_s1  ;;  %s3828_s16 = int_to_ptr.hbm [resolvable:$true] %s3827_s16 }
  0x9b   :  { %s3829_s18 = scalar_lea.hbm %s3828_s16, 1  ;;  %s3831_s9 = scalar_lea.hbm %s4717_s6, 1 }
  0x9c   :  { %p3830_p11 = scmp.ne.s32.totalorder %s3828_s16, %s3829_s18  ;;  %p3832_p12 = scmp.lt.s32.totalorder %s3828_s16, %s4717_s6 }
  0x9d   :  { %p3833_p13 = scmp.lt.s32.totalorder %s3831_s9, %s3829_s18 }
  0x9f   :  { %p3834_p0 = por %p3833_p13, %p3832_p12 }
  0xa1   :  { %p3835_p1 = pnand %p3834_p0, %p3830_p11 }
  0xa3   :  { %3838 = shalt.err (!%p3835_p1)
}
  0xa4   :  { %261 = dma.hbm_to_vmem [thread:$0]  %s257_s25, 16, %s259_s1, [#allocation20]  }
  0xa5   :  { %s304_s14 = sshll.u32 %s4737_s4, 4  ;;  %s4613_s22 = smov [#allocation22]   ;;  %s305_s14 = int_to_ptr.hbm [resolvable:$true] %s304_s14 }
  0xa6   :  { %s282_s26 = sshll.u32 %s4613_s22, 4  ;;  %s3851_s28 = sshra.s32 %s281_s15, 4  ;;  %s283_s26 = int_to_ptr.vmem [resolvable:$true] %s282_s26  ;;  %s3852_s28 = int_to_ptr.hbm [resolvable:$true] %s3851_s28 }
  0xa7   :  { %s3853_s23 = scalar_lea.hbm %s3852_s28, 1  ;;  %s3855_s7 = scalar_lea.hbm %s4727_s20, 1 }
  0xa8   :  { %p3854_p2 = scmp.ne.s32.totalorder %s3852_s28, %s3853_s23  ;;  %p3856_p3 = scmp.lt.s32.totalorder %s3852_s28, %s4727_s20 }
  0xa9   :  { %p3857_p4 = scmp.lt.s32.totalorder %s3855_s7, %s3853_s23 }
  0xab   :  { %p3858_p5 = por %p3857_p4, %p3856_p3 }
  0xad   :  { %p3859_p6 = pnand %p3858_p5, %p3854_p2 }
  0xaf   :  { %3862 = shalt.err (!%p3859_p6)
}
  0xb0   :  { %285 = dma.hbm_to_vmem [thread:$0]  %s281_s15, 16, %s283_s26, [#allocation23]  }
  0xb1   :  { %s4614_s6 = smov [#allocation25]   ;;  %s326_s10 = sshll.u32 %s4747_s19, 4  ;;  %s327_s10 = int_to_ptr.hbm [resolvable:$true] %s326_s10 }
  0xb2   :  { %s306_s25 = sshll.u32 %s4614_s6, 4  ;;  %s3875_s17 = sshra.s32 %s305_s14, 4  ;;  %s307_s25 = int_to_ptr.vmem [resolvable:$true] %s306_s25  ;;  %s3876_s17 = int_to_ptr.hbm [resolvable:$true] %s3875_s17 }
  0xb3   :  { %s3877_s11 = scalar_lea.hbm %s3876_s17, 1  ;;  %s3879_s3 = scalar_lea.hbm %s4737_s4, 1 }
  0xb4   :  { %p3878_p7 = scmp.ne.s32.totalorder %s3876_s17, %s3877_s11  ;;  %p3880_p8 = scmp.lt.s32.totalorder %s3876_s17, %s4737_s4 }
  0xb5   :  { %p3881_p9 = scmp.lt.s32.totalorder %s3879_s3, %s3877_s11 }
  0xb7   :  { %p3882_p10 = por %p3881_p9, %p3880_p8 }
  0xb9   :  { %p3883_p11 = pnand %p3882_p10, %p3878_p7 }
  0xbb   :  { %3886 = shalt.err (!%p3883_p11)
}
  0xbc   :  { %309 = dma.hbm_to_vmem [thread:$0]  %s305_s14, 16, %s307_s25, [#allocation26]  }
  0xbd   :  { %s350_s20 = sshll.u32 %s4757_s12, 4  ;;  %s4615_s1 = smov [#allocation28]   ;;  %s351_s20 = int_to_ptr.hbm [resolvable:$true] %s350_s20 }
  0xbe   :  { %s328_s15 = sshll.u32 %s4615_s1, 4  ;;  %s3899_s16 = sshra.s32 %s327_s10, 4  ;;  %s329_s15 = int_to_ptr.vmem [resolvable:$true] %s328_s15  ;;  %s3900_s16 = int_to_ptr.hbm [resolvable:$true] %s3899_s16 }
  0xbf   :  { %s3901_s18 = scalar_lea.hbm %s3900_s16, 1  ;;  %s3903_s9 = scalar_lea.hbm %s4747_s19, 1 }
  0xc0   :  { %p3902_p12 = scmp.ne.s32.totalorder %s3900_s16, %s3901_s18  ;;  %p3904_p13 = scmp.lt.s32.totalorder %s3900_s16, %s4747_s19 }
  0xc1   :  { %p3905_p0 = scmp.lt.s32.totalorder %s3903_s9, %s3901_s18 }
  0xc3   :  { %p3906_p1 = por %p3905_p0, %p3904_p13 }
  0xc5   :  { %p3907_p2 = pnand %p3906_p1, %p3902_p12 }
  0xc7   :  { %3910 = shalt.err (!%p3907_p2)
}
  0xc8   :  { %331 = dma.hbm_to_vmem [thread:$0]  %s327_s10, 16, %s329_s15, [#allocation29]  }
  0xc9   :  { %s4616_s4 = smov [#allocation31]   ;;  %s372_s22 = sshll.u32 %s4767_s24, 4  ;;  %s373_s22 = int_to_ptr.hbm [resolvable:$true] %s372_s22 }
  0xca   :  { %s352_s14 = sshll.u32 %s4616_s4, 4  ;;  %s3923_s26 = sshra.s32 %s351_s20, 4  ;;  %s353_s14 = int_to_ptr.vmem [resolvable:$true] %s352_s14  ;;  %s3924_s26 = int_to_ptr.hbm [resolvable:$true] %s3923_s26 }
  0xcb   :  { %s3925_s28 = scalar_lea.hbm %s3924_s26, 1  ;;  %s3927_s23 = scalar_lea.hbm %s4757_s12, 1 }
  0xcc   :  { %p3926_p3 = scmp.ne.s32.totalorder %s3924_s26, %s3925_s28  ;;  %p3928_p4 = scmp.lt.s32.totalorder %s3924_s26, %s4757_s12 }
  0xcd   :  { %p3929_p5 = scmp.lt.s32.totalorder %s3927_s23, %s3925_s28 }
  0xcf   :  { %p3930_p6 = por %p3929_p5, %p3928_p4 }
  0xd1   :  { %p3931_p7 = pnand %p3930_p6, %p3926_p3 }
  0xd3   :  { %3934 = shalt.err (!%p3931_p7)
}
  0xd4   :  { %355 = dma.hbm_to_vmem [thread:$0]  %s351_s20, 16, %s353_s14, [#allocation32]  }
  0xd5   :  { %s396_s19 = sshll.u32 %s4782_s30, 4  ;;  %s4617_s7 = smov [#allocation34]   ;;  %s397_s19 = int_to_ptr.hbm [resolvable:$true] %s396_s19 }
  0xd6   :  { %s374_s6 = sshll.u32 %s4617_s7, 4  ;;  %s3947_s25 = sshra.s32 %s373_s22, 4  ;;  %s375_s6 = int_to_ptr.vmem [resolvable:$true] %s374_s6  ;;  %s3948_s25 = int_to_ptr.hbm [resolvable:$true] %s3947_s25 }
  0xd7   :  { %s3949_s10 = scalar_lea.hbm %s3948_s25, 1  ;;  %s3951_s17 = scalar_lea.hbm %s4767_s24, 1 }
  0xd8   :  { %p3950_p8 = scmp.ne.s32.totalorder %s3948_s25, %s3949_s10  ;;  %p3952_p9 = scmp.lt.s32.totalorder %s3948_s25, %s4767_s24 }
  0xd9   :  { %p3953_p10 = scmp.lt.s32.totalorder %s3951_s17, %s3949_s10 }
  0xdb   :  { %p3954_p11 = por %p3953_p10, %p3952_p9 }
  0xdd   :  { %p3955_p12 = pnand %p3954_p11, %p3950_p8 }
  0xdf   :  { %3958 = shalt.err (!%p3955_p12)
}
  0xe0   :  { %377 = dma.hbm_to_vmem [thread:$0]  %s373_s22, 16, %s375_s6, [#allocation35]  }
  0xe1   :  { %s4618_s12 = smov [#allocation37]   ;;  %s417_s3 = sshll.u32 %s4792_s27, 4  ;;  %s4916_s3 = int_to_ptr.hbm [resolvable:$true] %s417_s3 }
  0xe2   :  { %s398_s11 = sshll.u32 %s4618_s12, 4  ;;  %s3971_s20 = sshra.s32 %s397_s19, 4  ;;  %s399_s11 = int_to_ptr.vmem [resolvable:$true] %s398_s11  ;;  %s3972_s20 = int_to_ptr.hbm [resolvable:$true] %s3971_s20 }
  0xe3   :  { %s3973_s1 = scalar_lea.hbm %s3972_s20, 1  ;;  %s3975_s15 = scalar_lea.hbm %s4782_s30, 1 }
  0xe4   :  { %p3974_p13 = scmp.ne.s32.totalorder %s3972_s20, %s3973_s1  ;;  %p3976_p0 = scmp.lt.s32.totalorder %s3972_s20, %s4782_s30 }
  0xe5   :  { %p3977_p1 = scmp.lt.s32.totalorder %s3975_s15, %s3973_s1 }
  0xe7   :  { %p3978_p2 = por %p3977_p1, %p3976_p0 }
  0xe9   :  { %p3979_p3 = pnand %p3978_p2, %p3974_p13 }
  0xeb   :  { %3982 = shalt.err (!%p3979_p3)
}
  0xec   :  { %401 = dma.hbm_to_vmem [thread:$0]  %s397_s19, 16, %s399_s11, [#allocation38]  }
  0xed   :  { %s446_s24 = sshll.u32 %s4807_s29, 4  ;;  %s4619_s16 = smov [#allocation40]   ;;  %s447_s24 = int_to_ptr.hbm [resolvable:$true] %s446_s24 }
  0xee   :  { %s419_s18 = sshll.u32 %s4619_s16, 4  ;;  %s3995_s9 = sshra.s32 %s4916_s3, 4  ;;  %s420_s18 = int_to_ptr.vmem [resolvable:$true] %s419_s18  ;;  %s3996_s9 = int_to_ptr.hbm [resolvable:$true] %s3995_s9 }
  0xef   :  { %s3997_s4 = scalar_lea.hbm %s3996_s9, 24  ;;  %s3999_s14 = scalar_lea.hbm %s4792_s27, 24 }
  0xf0   :  { %p3998_p4 = scmp.ne.s32.totalorder %s3996_s9, %s3997_s4  ;;  %p4000_p5 = scmp.lt.s32.totalorder %s3996_s9, %s4792_s27 }
  0xf1   :  { %p4001_p6 = scmp.lt.s32.totalorder %s3999_s14, %s3997_s4 }
  0xf3   :  { %p4002_p7 = por %p4001_p6, %p4000_p5 }
  0xf5   :  { %p4003_p8 = pnand %p4002_p7, %p3998_p4 }
  0xf7   :  { %4006 = shalt.err (!%p4003_p8)
}
  0xf8   :  { %s5347_s30 = sld [smem:[#allocation91_spill]]  ;;  %s4620_s22 = smov [#allocation43]  }
  0xf9   :  { %425 = dma.hbm_to_vmem [thread:$0]  %s4916_s3, 384, %s420_s18, [#allocation41], %s4607_s2, %s4607_s2, %s4608_s0  }
  0xfa   :  { %s448_s26 = sshll.u32 %s4620_s22, 4  ;;  %s4019_s23 = sshra.s32 %s447_s24, 4  ;;  %s449_s26 = int_to_ptr.vmem [resolvable:$true] %s448_s26  ;;  %s4020_s23 = int_to_ptr.hbm [resolvable:$true] %s4019_s23 }
  0xfb   :  { %s4021_s27 = scalar_lea.hbm %s4020_s23, 2  ;;  %s4023_s19 = scalar_lea.hbm %s4807_s29, 2 }
  0xfc   :  { %p4022_p9 = scmp.ne.s32.totalorder %s4020_s23, %s4021_s27  ;;  %p4024_p10 = scmp.lt.s32.totalorder %s4020_s23, %s4807_s29 }
  0xfd   :  { %p4025_p11 = scmp.lt.s32.totalorder %s4023_s19, %s4021_s27 }
  0xfe   :  { %s470_s28 = sshll.u32 %s5347_s30, 4  ;;  %s471_s28 = int_to_ptr.hbm [resolvable:$true] %s470_s28 }
  0xff   :  { %p4026_p12 = por %p4025_p11, %p4024_p10 }
 0x101   :  { %p4027_p13 = pnand %p4026_p12, %p4022_p9 }
 0x103   :  { %4030 = shalt.err (!%p4027_p13)
}
 0x104   :  { %451 = dma.hbm_to_vmem [thread:$0]  %s447_s24, 32, %s449_s26, [#allocation44]  }
 0x105   :  { %s5348_s7 = sld [smem:[#allocation93_spill]]  ;;  %s4621_s25 = smov [#allocation46]  }
 0x106   :  { %s472_s10 = sshll.u32 %s4621_s25, 4  ;;  %s4043_s17 = sshra.s32 %s471_s28, 4  ;;  %s473_s10 = int_to_ptr.vmem [resolvable:$true] %s472_s10  ;;  %s4044_s17 = int_to_ptr.hbm [resolvable:$true] %s4043_s17 }
 0x107   :  { %s4045_s12 = scalar_lea.hbm %s4044_s17, 2  ;;  %s4047_s11 = scalar_lea.hbm %s5347_s30, 2 }
 0x108   :  { %p4046_p0 = scmp.ne.s32.totalorder %s4044_s17, %s4045_s12  ;;  %p4048_p1 = scmp.lt.s32.totalorder %s4044_s17, %s5347_s30 }
 0x109   :  { %p4049_p2 = scmp.lt.s32.totalorder %s4047_s11, %s4045_s12 }
 0x10b   :  { %s494_s6 = sshll.u32 %s5348_s7, 4  ;;  %p4050_p3 = por %p4049_p2, %p4048_p1  ;;  %s495_s6 = int_to_ptr.hbm [resolvable:$true] %s494_s6 }
 0x10d   :  { %p4051_p4 = pnand %p4050_p3, %p4046_p0 }
 0x10f   :  { %4054 = shalt.err (!%p4051_p4)
}
 0x110   :  { %475 = dma.hbm_to_vmem [thread:$0]  %s471_s28, 32, %s473_s10, [#allocation47]  }
 0x111   :  { %s5349_s29 = sld [smem:[#allocation72_spill]]  ;;  %s4622_s3 = smov [#allocation49]  }
 0x112   :  { %s496_s20 = sshll.u32 %s4622_s3, 4  ;;  %s4067_s15 = sshra.s32 %s495_s6, 4  ;;  %s497_s20 = int_to_ptr.vmem [resolvable:$true] %s496_s20  ;;  %s4068_s15 = int_to_ptr.hbm [resolvable:$true] %s4067_s15 }
 0x113   :  { %s4069_s24 = scalar_lea.hbm %s4068_s15, 1  ;;  %s4071_s16 = scalar_lea.hbm %s5348_s7, 1 }
 0x114   :  { %p4070_p5 = scmp.ne.s32.totalorder %s4068_s15, %s4069_s24  ;;  %p4072_p6 = scmp.lt.s32.totalorder %s4068_s15, %s5348_s7 }
 0x115   :  { %p4073_p7 = scmp.lt.s32.totalorder %s4071_s16, %s4069_s24 }
 0x117   :  { %s116_s1 = sshll.u32 %s5349_s29, 4  ;;  %p4074_p8 = por %p4073_p7, %p4072_p6  ;;  %s4935_s1 = int_to_ptr.hbm [resolvable:$true] %s116_s1 }
 0x119   :  { %p4075_p9 = pnand %p4074_p8, %p4070_p5 }
 0x11b   :  { %4078 = shalt.err (!%p4075_p9)
}
 0x11c   :  { %499 = dma.hbm_to_vmem [thread:$0]  %s495_s6, 16, %s497_s20, [#allocation50]  }
 0x11d   :  { %s5350_s18 = sld [smem:[#allocation73_spill]]  ;;  %s4623_s4 = smov [#allocation2]  }
 0x11e   :  { %s118_s14 = sshll.u32 %s4623_s4, 4  ;;  %s4091_s30 = sshra.s32 %s4935_s1, 4  ;;  %s119_s14 = int_to_ptr.vmem [resolvable:$true] %s118_s14  ;;  %s4092_s30 = int_to_ptr.hbm [resolvable:$true] %s4091_s30 }
 0x11f   :  { %s4093_s22 = scalar_lea.hbm %s4092_s30, 16  ;;  %s4095_s26 = scalar_lea.hbm %s5349_s29, 16 }
 0x120   :  { %p4094_p10 = scmp.ne.s32.totalorder %s4092_s30, %s4093_s22  ;;  %p4096_p11 = scmp.lt.s32.totalorder %s4092_s30, %s5349_s29 }
 0x121   :  { %p4097_p12 = scmp.lt.s32.totalorder %s4095_s26, %s4093_s22 }
 0x123   :  { %s142_s9 = sshll.u32 %s5350_s18, 4  ;;  %p4098_p13 = por %p4097_p12, %p4096_p11  ;;  %s4940_s9 = int_to_ptr.hbm [resolvable:$true] %s142_s9 }
 0x125   :  { %p4099_p0 = pnand %p4098_p13, %p4094_p10 }
 0x127   :  { %4102 = shalt.err (!%p4099_p0)
}
 0x128   :  { %s5351_s28 = sld [smem:[#allocation74_spill]]  ;;  %s4624_s23 = smov [#allocation6]  }
 0x129   :  { %124 = dma.hbm_to_vmem [thread:$0]  %s4935_s1, 256, %s119_s14, [#allocation3], %s4607_s2, %s4607_s2, %s4608_s0  }
 0x12a   :  { %s144_s27 = sshll.u32 %s4624_s23, 4  ;;  %s4115_s7 = sshra.s32 %s4940_s9, 4  ;;  %s145_s27 = int_to_ptr.vmem [resolvable:$true] %s144_s27  ;;  %s4116_s7 = int_to_ptr.hbm [resolvable:$true] %s4115_s7 }
 0x12b   :  { %s4117_s6 = scalar_lea.hbm %s4116_s7, 16  ;;  %s4119_s25 = scalar_lea.hbm %s5350_s18, 16 }
 0x12c   :  { %p4118_p1 = scmp.ne.s32.totalorder %s4116_s7, %s4117_s6  ;;  %p4120_p2 = scmp.lt.s32.totalorder %s4116_s7, %s5350_s18 }
 0x12d   :  { %p4121_p3 = scmp.lt.s32.totalorder %s4119_s25, %s4117_s6 }
 0x12e   :  { %s168_s19 = sshll.u32 %s5351_s28, 4  ;;  %s4950_s19 = int_to_ptr.hbm [resolvable:$true] %s168_s19 }
 0x12f   :  { %p4122_p4 = por %p4121_p3, %p4120_p2 }
 0x131   :  { %p4123_p5 = pnand %p4122_p4, %p4118_p1 }
 0x133   :  { %4126 = shalt.err (!%p4123_p5)
}
 0x134   :  { %s5352_s10 = sld [smem:[#allocation75_spill]]  ;;  %s4625_s17 = smov [#allocation9]  }
 0x135   :  { %150 = dma.hbm_to_vmem [thread:$0]  %s4940_s9, 256, %s145_s27, [#allocation5], %s4607_s2, %s4607_s2, %s4608_s0  }
 0x136   :  { %s170_s12 = sshll.u32 %s4625_s17, 4  ;;  %s4139_s29 = sshra.s32 %s4950_s19, 4  ;;  %s171_s12 = int_to_ptr.vmem [resolvable:$true] %s170_s12  ;;  %s4140_s29 = int_to_ptr.hbm [resolvable:$true] %s4139_s29 }
 0x137   :  { %s4141_s3 = scalar_lea.hbm %s4140_s29, 8  ;;  %s4143_s20 = scalar_lea.hbm %s5351_s28, 8 }
 0x138   :  { %p4142_p6 = scmp.ne.s32.totalorder %s4140_s29, %s4141_s3  ;;  %p4144_p7 = scmp.lt.s32.totalorder %s4140_s29, %s5351_s28 }
 0x139   :  { %p4145_p8 = scmp.lt.s32.totalorder %s4143_s20, %s4141_s3 }
 0x13a   :  { %s192_s11 = sshll.u32 %s5352_s10, 4  ;;  %s193_s11 = int_to_ptr.hbm [resolvable:$true] %s192_s11 }
 0x13b   :  { %p4146_p9 = por %p4145_p8, %p4144_p7 }
 0x13d   :  { %p4147_p10 = pnand %p4146_p9, %p4142_p6 }
 0x13f   :  { %4150 = shalt.err (!%p4147_p10)
}
 0x140   :  { %s4626_s1 = smov 64   ;;  %s5353_s15 = sld [smem:[#allocation76_spill]] }
 0x141   :  { %s4627_s24 = smov 4   ;;  %s4628_s16 = smov [#allocation12]  }
 0x142   :  { %176 = dma.hbm_to_vmem [thread:$0]  %s4950_s19, 128, %s171_s12, [#allocation8], %s4626_s1, %s4626_s1, %s4627_s24  }
 0x143   :  { %s194_s18 = sshll.u32 %s4628_s16, 4  ;;  %s4163_s4 = sshra.s32 %s193_s11, 4  ;;  %s195_s18 = int_to_ptr.vmem [resolvable:$true] %s194_s18  ;;  %s4164_s4 = int_to_ptr.hbm [resolvable:$true] %s4163_s4 }
 0x144   :  { %s4165_s14 = scalar_lea.hbm %s4164_s4, 32  ;;  %s4167_s30 = scalar_lea.hbm %s5352_s10, 32 }
 0x145   :  { %p4166_p11 = scmp.ne.s32.totalorder %s4164_s4, %s4165_s14  ;;  %p4168_p12 = scmp.lt.s32.totalorder %s4164_s4, %s5352_s10 }
 0x146   :  { %s216_s9 = sshll.u32 %s5353_s15, 4  ;;  %p4169_p13 = scmp.lt.s32.totalorder %s4167_s30, %s4165_s14  ;;  %s4968_s9 = int_to_ptr.hbm [resolvable:$true] %s216_s9 }
 0x148   :  { %p4170_p0 = por %p4169_p13, %p4168_p12 }
 0x14a   :  { %p4171_p1 = pnand %p4170_p0, %p4166_p11 }
 0x14c   :  { %4174 = shalt.err (!%p4171_p1)
}
 0x14d   :  { %s5354_s22 = sld [smem:[#allocation78_spill]]  ;;  %s4629_s28 = smov [#allocation15]  }
 0x14e   :  { %200 = dma.hbm_to_vmem [thread:$0]  %s193_s11, 512, %s195_s18, [#allocation11], %s4626_s1, %s4626_s1, %s4627_s24  }
 0x14f   :  { %s218_s23 = sshll.u32 %s4629_s28, 4  ;;  %s4187_s27 = sshra.s32 %s4968_s9, 4  ;;  %s219_s23 = int_to_ptr.vmem [resolvable:$true] %s218_s23  ;;  %s4188_s27 = int_to_ptr.hbm [resolvable:$true] %s4187_s27 }
 0x150   :  { %s4189_s19 = scalar_lea.hbm %s4188_s27, 184  ;;  %s4191_s7 = scalar_lea.hbm %s5353_s15, 184 }
 0x151   :  { %p4190_p2 = scmp.ne.s32.totalorder %s4188_s27, %s4189_s19  ;;  %p4192_p3 = scmp.lt.s32.totalorder %s4188_s27, %s5353_s15 }
 0x152   :  { %p4193_p4 = scmp.lt.s32.totalorder %s4191_s7, %s4189_s19 }
 0x153   :  { %s243_s26 = sshll.u32 %s5354_s22, 4  ;;  %s244_s26 = int_to_ptr.hbm [resolvable:$true] %s243_s26 }
 0x154   :  { %p4194_p5 = por %p4193_p4, %p4192_p3 }
 0x156   :  { %p4195_p6 = pnand %p4194_p5, %p4190_p2 }
 0x158   :  { %4198 = shalt.err (!%p4195_p6)
}
 0x159   :  { %s5355_s6 = sld [smem:[#allocation80_spill]]  ;;  %s4630_s25 = smov [#allocation18]  }
 0x15a   :  { %224 = dma.hbm_to_vmem [thread:$0]  %s4968_s9, 2944, %s219_s23, [#allocation14], %s4626_s1, %s4626_s1, %s4627_s24  }
 0x15b   :  { %s245_s10 = sshll.u32 %s4630_s25, 4  ;;  %s4211_s12 = sshra.s32 %s244_s26, 4  ;;  %s246_s10 = int_to_ptr.vmem [resolvable:$true] %s245_s10  ;;  %s4212_s12 = int_to_ptr.hbm [resolvable:$true] %s4211_s12 }
 0x15c   :  { %s4213_s11 = scalar_lea.hbm %s4212_s12, 1  ;;  %s4215_s29 = scalar_lea.hbm %s5354_s22, 1 }
 0x15d   :  { %p4214_p7 = scmp.ne.s32.totalorder %s4212_s12, %s4213_s11  ;;  %p4216_p8 = scmp.lt.s32.totalorder %s4212_s12, %s5354_s22 }
 0x15e   :  { %p4217_p9 = scmp.lt.s32.totalorder %s4215_s29, %s4213_s11 }
 0x15f   :  { %s266_s17 = sshll.u32 %s5355_s6, 4  ;;  %s4984_s17 = int_to_ptr.hbm [resolvable:$true] %s266_s17 }
 0x160   :  { %p4218_p10 = por %p4217_p9, %p4216_p8 }
 0x162   :  { %p4219_p11 = pnand %p4218_p10, %p4214_p7 }
 0x164   :  { %4222 = shalt.err (!%p4219_p11)
}
 0x165   :  { %248 = dma.hbm_to_vmem [thread:$0]  %s244_s26, 16, %s246_s10, [#allocation17]  }
 0x166   :  { %s5356_s3 = sld [smem:[#allocation81_spill]]  ;;  %s4631_s15 = smov [#allocation21]  }
 0x167   :  { %s268_s16 = sshll.u32 %s4631_s15, 4  ;;  %s4235_s18 = sshra.s32 %s4984_s17, 4  ;;  %s269_s16 = int_to_ptr.vmem [resolvable:$true] %s268_s16  ;;  %s4236_s18 = int_to_ptr.hbm [resolvable:$true] %s4235_s18 }
 0x168   :  { %s4237_s9 = scalar_lea.hbm %s4236_s18, 64  ;;  %s4239_s4 = scalar_lea.hbm %s5355_s6, 64 }
 0x169   :  { %p4238_p12 = scmp.ne.s32.totalorder %s4236_s18, %s4237_s9  ;;  %p4240_p13 = scmp.lt.s32.totalorder %s4236_s18, %s5355_s6 }
 0x16a   :  { %p4241_p0 = scmp.lt.s32.totalorder %s4239_s4, %s4237_s9 }
 0x16c   :  { %s290_s20 = sshll.u32 %s5356_s3, 4  ;;  %p4242_p1 = por %p4241_p0, %p4240_p13  ;;  %s4989_s20 = int_to_ptr.hbm [resolvable:$true] %s290_s20 }
 0x16e   :  { %p4243_p2 = pnand %p4242_p1, %p4238_p12 }
 0x170   :  { %4246 = shalt.err (!%p4243_p2)
}
 0x171   :  { %s5357_s14 = sld [smem:[#allocation82_spill]]  ;;  %s4632_s30 = smov [#allocation24]  }
 0x172   :  { %274 = dma.hbm_to_vmem [thread:$0]  %s4984_s17, 1024, %s269_s16, [#allocation20], %s4626_s1, %s4626_s1, %s4627_s24  }
 0x173   :  { %s292_s22 = sshll.u32 %s4632_s30, 4  ;;  %s4259_s28 = sshra.s32 %s4989_s20, 4  ;;  %s293_s22 = int_to_ptr.vmem [resolvable:$true] %s292_s22  ;;  %s4260_s28 = int_to_ptr.hbm [resolvable:$true] %s4259_s28 }
 0x174   :  { %s4261_s23 = scalar_lea.hbm %s4260_s28, 64  ;;  %s4263_s27 = scalar_lea.hbm %s5356_s3, 64 }
 0x175   :  { %p4262_p3 = scmp.ne.s32.totalorder %s4260_s28, %s4261_s23  ;;  %p4264_p4 = scmp.lt.s32.totalorder %s4260_s28, %s5356_s3 }
 0x176   :  { %p4265_p5 = scmp.lt.s32.totalorder %s4263_s27, %s4261_s23 }
 0x177   :  { %s315_s26 = sshll.u32 %s5357_s14, 4  ;;  %s316_s26 = int_to_ptr.hbm [resolvable:$true] %s315_s26 }
 0x178   :  { %p4266_p6 = por %p4265_p5, %p4264_p4 }
 0x17a   :  { %p4267_p7 = pnand %p4266_p6, %p4262_p3 }
 0x17c   :  { %4270 = shalt.err (!%p4267_p7)
}
 0x17d   :  { %s5358_s19 = sld [smem:[#allocation83_spill]]  ;;  %s4633_s6 = smov [#allocation27]  }
 0x17e   :  { %298 = dma.hbm_to_vmem [thread:$0]  %s4989_s20, 1024, %s293_s22, [#allocation23], %s4626_s1, %s4626_s1, %s4627_s24  }
 0x17f   :  { %s317_s25 = sshll.u32 %s4633_s6, 4  ;;  %s4283_s10 = sshra.s32 %s316_s26, 4  ;;  %s318_s25 = int_to_ptr.vmem [resolvable:$true] %s317_s25  ;;  %s4284_s10 = int_to_ptr.hbm [resolvable:$true] %s4283_s10 }
 0x180   :  { %s4285_s17 = scalar_lea.hbm %s4284_s10, 1  ;;  %s4287_s12 = scalar_lea.hbm %s5357_s14, 1 }
 0x181   :  { %p4286_p8 = scmp.ne.s32.totalorder %s4284_s10, %s4285_s17  ;;  %p4288_p9 = scmp.lt.s32.totalorder %s4284_s10, %s5357_s14 }
 0x182   :  { %p4289_p10 = scmp.lt.s32.totalorder %s4287_s12, %s4285_s17 }
 0x183   :  { %s336_s7 = sshll.u32 %s5358_s19, 4  ;;  %s5007_s7 = int_to_ptr.hbm [resolvable:$true] %s336_s7 }
 0x184   :  { %p4290_p11 = por %p4289_p10, %p4288_p9 }
 0x186   :  { %p4291_p12 = pnand %p4290_p11, %p4286_p8 }
 0x188   :  { %4294 = shalt.err (!%p4291_p12)
}
 0x189   :  { %320 = dma.hbm_to_vmem [thread:$0]  %s316_s26, 16, %s318_s25, [#allocation26]  }
 0x18a   :  { %s5359_s11 = sld [smem:[#allocation84_spill]]  ;;  %s4634_s29 = smov [#allocation30]  }
 0x18b   :  { %s338_s3 = sshll.u32 %s4634_s29, 4  ;;  %s4307_s15 = sshra.s32 %s5007_s7, 4  ;;  %s339_s3 = int_to_ptr.vmem [resolvable:$true] %s338_s3  ;;  %s4308_s15 = int_to_ptr.hbm [resolvable:$true] %s4307_s15 }
 0x18c   :  { %s4309_s16 = scalar_lea.hbm %s4308_s15, 64  ;;  %s4311_s18 = scalar_lea.hbm %s5358_s19, 64 }
 0x18d   :  { %p4310_p13 = scmp.ne.s32.totalorder %s4308_s15, %s4309_s16  ;;  %p4312_p0 = scmp.lt.s32.totalorder %s4308_s15, %s5358_s19 }
 0x18e   :  { %p4313_p1 = scmp.lt.s32.totalorder %s4311_s18, %s4309_s16 }
 0x190   :  { %s361_s20 = sshll.u32 %s5359_s11, 4  ;;  %p4314_p2 = por %p4313_p1, %p4312_p0  ;;  %s362_s20 = int_to_ptr.hbm [resolvable:$true] %s361_s20 }
 0x192   :  { %p4315_p3 = pnand %p4314_p2, %p4310_p13 }
 0x194   :  { %4318 = shalt.err (!%p4315_p3)
}
 0x195   :  { %s5360_s9 = sld [smem:[#allocation86_spill]]  ;;  %s4635_s14 = smov [#allocation33]  }
 0x196   :  { %344 = dma.hbm_to_vmem [thread:$0]  %s5007_s7, 1024, %s339_s3, [#allocation29], %s4626_s1, %s4626_s1, %s4627_s24  }
 0x197   :  { %s363_s30 = sshll.u32 %s4635_s14, 4  ;;  %s4331_s22 = sshra.s32 %s362_s20, 4  ;;  %s364_s30 = int_to_ptr.vmem [resolvable:$true] %s363_s30  ;;  %s4332_s22 = int_to_ptr.hbm [resolvable:$true] %s4331_s22 }
 0x198   :  { %s4333_s26 = scalar_lea.hbm %s4332_s22, 1  ;;  %s4335_s28 = scalar_lea.hbm %s5359_s11, 1 }
 0x199   :  { %p4334_p4 = scmp.ne.s32.totalorder %s4332_s22, %s4333_s26  ;;  %p4336_p5 = scmp.lt.s32.totalorder %s4332_s22, %s5359_s11 }
 0x19a   :  { %p4337_p6 = scmp.lt.s32.totalorder %s4335_s28, %s4333_s26 }
 0x19b   :  { %s385_s4 = sshll.u32 %s5360_s9, 4  ;;  %s386_s4 = int_to_ptr.hbm [resolvable:$true] %s385_s4 }
 0x19c   :  { %p4338_p7 = por %p4337_p6, %p4336_p5 }
 0x19e   :  { %p4339_p8 = pnand %p4338_p7, %p4334_p4 }
 0x1a0   :  { %4342 = shalt.err (!%p4339_p8)
}
 0x1a1   :  { %366 = dma.hbm_to_vmem [thread:$0]  %s362_s20, 16, %s364_s30, [#allocation32]  }
 0x1a2   :  { %s5361_s23 = sld [smem:[#allocation87_spill]]  ;;  %s4636_s27 = smov [#allocation36]  }
 0x1a3   :  { %s387_s19 = sshll.u32 %s4636_s27, 4  ;;  %s4355_s6 = sshra.s32 %s386_s4, 4  ;;  %s388_s19 = int_to_ptr.vmem [resolvable:$true] %s387_s19  ;;  %s4356_s6 = int_to_ptr.hbm [resolvable:$true] %s4355_s6 }
 0x1a4   :  { %s4357_s25 = scalar_lea.hbm %s4356_s6, 1  ;;  %s4359_s10 = scalar_lea.hbm %s5360_s9, 1 }
 0x1a5   :  { %p4358_p9 = scmp.ne.s32.totalorder %s4356_s6, %s4357_s25  ;;  %p4360_p10 = scmp.lt.s32.totalorder %s4356_s6, %s5360_s9 }
 0x1a6   :  { %p4361_p11 = scmp.lt.s32.totalorder %s4359_s10, %s4357_s25 }
 0x1a8   :  { %s407_s7 = sshll.u32 %s5361_s23, 4  ;;  %p4362_p12 = por %p4361_p11, %p4360_p10  ;;  %s408_s7 = int_to_ptr.hbm [resolvable:$true] %s407_s7 }
 0x1aa   :  { %p4363_p13 = pnand %p4362_p12, %p4358_p9 }
 0x1ac   :  { %4366 = shalt.err (!%p4363_p13)
}
 0x1ad   :  { %390 = dma.hbm_to_vmem [thread:$0]  %s386_s4, 16, %s388_s19, [#allocation35]  }
 0x1ae   :  { %s5362_s17 = sld [smem:[#allocation89_spill]]  ;;  %s4637_s11 = smov [#allocation39]  }
 0x1af   :  { %s409_s29 = sshll.u32 %s4637_s11, 4  ;;  %s4379_s3 = sshra.s32 %s408_s7, 4  ;;  %s410_s29 = int_to_ptr.vmem [resolvable:$true] %s409_s29  ;;  %s4380_s3 = int_to_ptr.hbm [resolvable:$true] %s4379_s3 }
 0x1b0   :  { %s4381_s20 = scalar_lea.hbm %s4380_s3, 1  ;;  %s4383_s15 = scalar_lea.hbm %s5361_s23, 1 }
 0x1b1   :  { %p4382_p0 = scmp.ne.s32.totalorder %s4380_s3, %s4381_s20  ;;  %p4384_p1 = scmp.lt.s32.totalorder %s4380_s3, %s5361_s23 }
 0x1b2   :  { %p4385_p2 = scmp.lt.s32.totalorder %s4383_s15, %s4381_s20 }
 0x1b4   :  { %s432_s12 = sshll.u32 %s5362_s17, 4  ;;  %p4386_p3 = por %p4385_p2, %p4384_p1  ;;  %s5026_s12 = int_to_ptr.hbm [resolvable:$true] %s432_s12 }
 0x1b6   :  { %p4387_p4 = pnand %p4386_p3, %p4382_p0 }
 0x1b8   :  { %4390 = shalt.err (!%p4387_p4)
}
 0x1b9   :  { %412 = dma.hbm_to_vmem [thread:$0]  %s408_s7, 16, %s410_s29, [#allocation38]  }
 0x1ba   :  { %s5363_s16 = sld [smem:[#allocation90_spill]]  ;;  %s4638_s18 = smov [#allocation42]  }
 0x1bb   :  { %s434_s9 = sshll.u32 %s4638_s18, 4  ;;  %s4403_s14 = sshra.s32 %s5026_s12, 4  ;;  %s435_s9 = int_to_ptr.vmem [resolvable:$true] %s434_s9  ;;  %s4404_s14 = int_to_ptr.hbm [resolvable:$true] %s4403_s14 }
 0x1bc   :  { %s4405_s30 = scalar_lea.hbm %s4404_s14, 64  ;;  %s4407_s22 = scalar_lea.hbm %s5362_s17, 64 }
 0x1bd   :  { %p4406_p5 = scmp.ne.s32.totalorder %s4404_s14, %s4405_s30  ;;  %p4408_p6 = scmp.lt.s32.totalorder %s4404_s14, %s5362_s17 }
 0x1be   :  { %p4409_p7 = scmp.lt.s32.totalorder %s4407_s22, %s4405_s30 }
 0x1c0   :  { %s456_s4 = sshll.u32 %s5363_s16, 4  ;;  %p4410_p8 = por %p4409_p7, %p4408_p6  ;;  %s5031_s4 = int_to_ptr.hbm [resolvable:$true] %s456_s4 }
 0x1c2   :  { %p4411_p9 = pnand %p4410_p8, %p4406_p5 }
 0x1c4   :  { %4414 = shalt.err (!%p4411_p9)
}
 0x1c5   :  { %s5364_s26 = sld [smem:[#allocation92_spill]]  ;;  %s4639_s23 = smov [#allocation45]  }
 0x1c6   :  { %440 = dma.hbm_to_vmem [thread:$0]  %s5026_s12, 1024, %s435_s9, [#allocation41], %s4607_s2, %s4607_s2, %s4608_s0  }
 0x1c7   :  { %s458_s27 = sshll.u32 %s4639_s23, 4  ;;  %s4427_s19 = sshra.s32 %s5031_s4, 4  ;;  %s459_s27 = int_to_ptr.vmem [resolvable:$true] %s458_s27  ;;  %s4428_s19 = int_to_ptr.hbm [resolvable:$true] %s4427_s19 }
 0x1c8   :  { %s4429_s7 = scalar_lea.hbm %s4428_s19, 64  ;;  %s4431_s6 = scalar_lea.hbm %s5363_s16, 64 }
 0x1c9   :  { %p4430_p10 = scmp.ne.s32.totalorder %s4428_s19, %s4429_s7  ;;  %p4432_p11 = scmp.lt.s32.totalorder %s4428_s19, %s5363_s16 }
 0x1ca   :  { %p4433_p12 = scmp.lt.s32.totalorder %s4431_s6, %s4429_s7 }
 0x1cb   :  { %s480_s28 = sshll.u32 %s5364_s26, 4  ;;  %s5041_s28 = int_to_ptr.hbm [resolvable:$true] %s480_s28 }
 0x1cc   :  { %p4434_p13 = por %p4433_p12, %p4432_p11 }
 0x1ce   :  { %p4435_p0 = pnand %p4434_p13, %p4430_p10 }
 0x1d0   :  { %4438 = shalt.err (!%p4435_p0)
}
 0x1d1   :  { %s5365_s25 = sld [smem:[#allocation95_spill]]  ;;  %s4640_s10 = smov [#allocation48]  }
 0x1d2   :  { %464 = dma.hbm_to_vmem [thread:$0]  %s5031_s4, 1024, %s459_s27, [#allocation44], %s4607_s2, %s4607_s2, %s4608_s0  }
 0x1d3   :  { %s482_s17 = sshll.u32 %s4640_s10, 4  ;;  %s4451_s11 = sshra.s32 %s5041_s28, 4  ;;  %s483_s17 = int_to_ptr.vmem [resolvable:$true] %s482_s17  ;;  %s4452_s11 = int_to_ptr.hbm [resolvable:$true] %s4451_s11 }
 0x1d4   :  { %s4453_s29 = scalar_lea.hbm %s4452_s11, 32  ;;  %s4455_s3 = scalar_lea.hbm %s5364_s26, 32 }
 0x1d5   :  { %p4454_p1 = scmp.ne.s32.totalorder %s4452_s11, %s4453_s29  ;;  %p4456_p2 = scmp.lt.s32.totalorder %s4452_s11, %s5364_s26 }
 0x1d6   :  { %p4457_p3 = scmp.lt.s32.totalorder %s4455_s3, %s4453_s29 }
 0x1d7   :  { %s507_s12 = sshll.u32 %s5365_s25, 4  ;;  %s508_s12 = int_to_ptr.hbm [resolvable:$true] %s507_s12 }
 0x1d8   :  { %p4458_p4 = por %p4457_p3, %p4456_p2 }
 0x1da   :  { %p4459_p5 = pnand %p4458_p4, %p4454_p1 }
 0x1dc   :  { %4462 = shalt.err (!%p4459_p5)
}
 0x1dd   :  { %s5366_s2 = sld [smem:[#allocation98_spill]]  ;;  %s4641_s20 = smov [#allocation51]  }
 0x1de   :  { %488 = dma.hbm_to_vmem [thread:$0]  %s5041_s28, 512, %s483_s17, [#allocation47], %s4626_s1, %s4626_s1, %s4627_s24  }
 0x1df   :  { %s509_s15 = sshll.u32 %s4641_s20, 4  ;;  %s4475_s16 = sshra.s32 %s508_s12, 4  ;;  %s510_s15 = int_to_ptr.vmem [resolvable:$true] %s509_s15  ;;  %s4476_s16 = int_to_ptr.hbm [resolvable:$true] %s4475_s16 }
 0x1e0   :  { %s4477_s18 = scalar_lea.hbm %s4476_s16, 1  ;;  %s4479_s9 = scalar_lea.hbm %s5365_s25, 1 }
 0x1e1   :  { %p4478_p6 = scmp.ne.s32.totalorder %s4476_s16, %s4477_s18  ;;  %p4480_p7 = scmp.lt.s32.totalorder %s4476_s16, %s5365_s25 }
 0x1e2   :  { %p4481_p8 = scmp.lt.s32.totalorder %s4479_s9, %s4477_s18 }
 0x1e3   :  { %s521_s0 = sshll.u32 %s5366_s2, 4  ;;  %s5059_s0 = int_to_ptr.hbm [resolvable:$true] %s521_s0 }
 0x1e4   :  { %p4482_p9 = por %p4481_p8, %p4480_p7 }
 0x1e6   :  { %p4483_p10 = pnand %p4482_p9, %p4478_p6 }
 0x1e8   :  { %4486 = shalt.err (!%p4483_p10)
}
 0x1e9   :  { %512 = dma.hbm_to_vmem [thread:$0]  %s508_s12, 16, %s510_s15, [#allocation50]  }
 0x1ea   :  { %s4642_s4 = smov [#allocation52]   ;;  %s4499_s30 = sshra.s32 %s5059_s0, 4  ;;  %s4500_s30 = int_to_ptr.hbm [resolvable:$true] %s4499_s30 }
 0x1eb   :  { %s523_s14 = sshll.u32 %s4642_s4, 4  ;;  %s4501_s22 = scalar_lea.hbm %s4500_s30, 32  ;;  %s524_s14 = int_to_ptr.vmem [resolvable:$true] %s523_s14 }
 0x1ec   :  { %p4502_p11 = scmp.ne.s32.totalorder %s4500_s30, %s4501_s22  ;;  %s4503_s26 = scalar_lea.hbm %s5366_s2, 32 }
 0x1ed   :  { %p4504_p12 = scmp.lt.s32.totalorder %s4500_s30, %s5366_s2  ;;  %p4505_p13 = scmp.lt.s32.totalorder %s4503_s26, %s4501_s22 }
 0x1ef   :  { %p4506_p0 = por %p4505_p13, %p4504_p12 }
 0x1f1   :  { %p4507_p1 = pnand %p4506_p0, %p4502_p11 }
 0x1f3   :  { %4510 = shalt.err (!%p4507_p1)
}
 0x1f4   :  { %529 = dma.hbm_to_vmem [thread:$0]  %s5059_s0, 512, %s524_s14, [#allocation53], %s4626_s1, %s4626_s1, %s4627_s24  }
 0x1f5   :  { %4523 = dma.done.wait [#allocation3], 256  }
 0x1f6   :  { %4524 = vsyncadd [#allocation3], 4294967040 }
 0x1f7   :  { %4525 = dma.done.wait [#allocation5], 1024  }
 0x1f8   :  { %4526 = vsyncadd [#allocation5], 4294966272 }
 0x1f9   :  { %4527 = dma.done.wait [#allocation8], 384  }
 0x1fa   :  { %4528 = vsyncadd [#allocation8], 4294966912 }
 0x1fb   :  { %4529 = dma.done.wait [#allocation11], 528  }
 0x1fc   :  { %4530 = vsyncadd [#allocation11], 4294966768 }
 0x1fd   :  { %4531 = dma.done.wait [#allocation14], 2960  }
 0x1fe   :  { %4532 = vsyncadd [#allocation14], 4294964336 }
 0x1ff   :  { %4533 = dma.done.wait [#allocation17], 32  }
 0x200   :  { %4534 = vsyncadd [#allocation17], 4294967264 }
 0x201   :  { %4535 = dma.done.wait [#allocation20], 1040  }
 0x202   :  { %4536 = vsyncadd [#allocation20], 4294966256 }
 0x203   :  { %4537 = dma.done.wait [#allocation23], 1040  }
 0x204   :  { %4538 = vsyncadd [#allocation23], 4294966256 }
 0x205   :  { %4539 = dma.done.wait [#allocation26], 32  }
 0x206   :  { %4540 = vsyncadd [#allocation26], 4294967264 }
 0x207   :  { %4541 = dma.done.wait [#allocation29], 1040  }
 0x208   :  { %4542 = vsyncadd [#allocation29], 4294966256 }
 0x209   :  { %4543 = dma.done.wait [#allocation32], 32  }
 0x20a   :  { %4544 = vsyncadd [#allocation32], 4294967264 }
 0x20b   :  { %4545 = dma.done.wait [#allocation35], 32  }
 0x20c   :  { %4546 = vsyncadd [#allocation35], 4294967264 }
 0x20d   :  { %4547 = dma.done.wait [#allocation38], 32  }
 0x20e   :  { %4548 = vsyncadd [#allocation38], 4294967264 }
 0x20f   :  { %4549 = dma.done.wait [#allocation41], 1408  }
 0x210   :  { %4550 = vsyncadd [#allocation41], 4294965888 }
 0x211   :  { %4551 = dma.done.wait [#allocation44], 1056  }
 0x212   :  { %4552 = vsyncadd [#allocation44], 4294966240 }
 0x213   :  { %4553 = dma.done.wait [#allocation47], 544  }
 0x214   :  { %4554 = vsyncadd [#allocation47], 4294966752 }
 0x215   :  { %4555 = dma.done.wait [#allocation50], 32  }
 0x216   :  { %4556 = vsyncadd [#allocation50], 4294967264 }
 0x217   :  { %4557 = dma.done.wait [#allocation53], 512  }
 0x218   :  { %4558 = vsyncadd [#allocation53], 4294966784  ;;  %vm695_vm0 = vcmask 1045504   ;;  %vm696_vm1 = vcmask 1046528   ;;  %v4643_v0 = vmov 65535   ;;  %v3395_v2 = vld [vmem:[#allocation15 + $0x38] sm:$0xff] }
 0x219   :  { %v697_v1 = vsel %vm695_vm0, 4294967295, %v4643_v0  ;;  %v2866_v3 = vld [vmem:[#allocation9] sm:$0xf]  ;;  %v3383_v4 = vld [vmem:[#allocation9] sm:$0x70]  ;;  %986 = vmatpush.bf16.msra.mxu2 %v3395_v2  ;;  %v678_v10 = vld [vmem:[#allocation2 + $0x8] sm:$0xff] }
 0x21a   :  { %v698_v5 = vsel %vm696_vm1, %v697_v1, 0  ;;  %v2867_v6 = vor.u32 %v3383_v4, %v2866_v3  ;;  %v3403_v7 = vld [vmem:[#allocation15 + $0x78] sm:$0xff]  ;;  %v3394_v9 = vld [vmem:[#allocation15 + $0x30] sm:$0xff]  ;;  %vm691_vm2 = vcmask 105472   ;;  %v3393_v18 = vld [vmem:[#allocation15 + $0x28] sm:$0xff]  ;;  %s5367_s24 = sld [smem:[#allocation77_spill]] }
 0x21b   :  { %v677_v8 = vld [vmem:[#allocation2] sm:$0xff]  ;;  %v2976_v11 = vld [vmem:[#allocation15 + $0xb0] sm:$0xf]  ;;  %v3409_v19 = vld [vmem:[#allocation15 + $0xa8] sm:$0xff]  ;;  %vm979_vm3 = vcmask 891904   ;;  %vm759_vm6 = vcmask 523264  }
 0x21c   :  { %v700_v12 = vand.u32 %v2867_v6, %v698_v5  ;;  %v3410_v13 = vld [vmem:[#allocation15 + $0xb0] sm:$0x70]  ;;  %v681_v14 = vpack.c.bf16 %v678_v10, %v677_v8  ;;  %v3401_v20 = vld [vmem:[#allocation15 + $0x68] sm:$0xff]  ;;  %v3392_v21 = vld [vmem:[#allocation15 + $0x20] sm:$0xff]  ;;  %s5368_s28 = sld [smem:[#allocation79_spill]] }
 0x21d   :  { %v2977_v15 = vor.u32 %v3410_v13, %v2976_v11  ;;  %987 = vmatpush.bf16.msra.mxu2 %v3394_v9  ;;  %v3402_v16 = vld [vmem:[#allocation15 + $0x70] sm:$0xff]  ;;  %v3408_v22 = vld [vmem:[#allocation15 + $0xa0] sm:$0xff]  ;;  %v3391_v24 = vld [vmem:[#allocation15 + $0x18] sm:$0xff]  ;;  %s5369_s23 = sld [smem:[#allocation85_spill]] }
 0x21e   :  { %709 = vmatpush.bf16.msra.mxu3 %v700_v12  ;;  %v3400_v23 = vld [vmem:[#allocation15 + $0x60] sm:$0xff]  ;;  %v3407_v25 = vld [vmem:[#allocation15 + $0x98] sm:$0xff]  ;;  %v3390_v27 = vld [vmem:[#allocation15 + $0x10] sm:$0xff]  ;;  %s5370_s27 = sld [smem:[#allocation88_spill]] }
 0x21f   :  { %v984_v17 = vand.u32 %v2977_v15, %v698_v5  ;;  %v3399_v26 = vld [vmem:[#allocation15 + $0x58] sm:$0xff]  ;;  %v3406_v28 = vld [vmem:[#allocation15 + $0x90] sm:$0xff]  ;;  %v3389_v30 = vld [vmem:[#allocation15 + $0x8] sm:$0xff]  ;;  %s5377_s19 = sld [smem:[#allocation96_spill]] }
 0x220   :  { %v3398_v29 = vld [vmem:[#allocation15 + $0x50] sm:$0xff]  ;;  %v3405_v31 = vld [vmem:[#allocation15 + $0x88] sm:$0xff]  ;;  %v3388_v33 = vld [vmem:[#allocation15] sm:$0xff]  ;;  %s5379_s7 = sld [smem:[#allocation97_spill]] }
 0x221   :  { %2868 = vmatmul.msk.bf16.vlgmr.msra.gmra.mxu3 %vm691_vm2, %v681_v14  ;;  %1015 = vmatpush.bf16.msra.mxu0 %v984_v17  ;;  %v3397_v32 = vld [vmem:[#allocation15 + $0x48] sm:$0xff]  ;;  %v786_v35 = vld [vmem:[#allocation4 + $0x18] sm:$0xff]  ;;  %v785_v37 = vld [vmem:[#allocation4 + $0x10] sm:$0xff] }
 0x222   :  { %1000 = vmatpush.bf16.msrb.mxu3 %v3403_v7  ;;  %988 = vmatpush.bf16.msra.mxu2 %v3393_v18  ;;  %v783_v34 = vld [vmem:[#allocation4] sm:$0xff]  ;;  %v788_v38 = vld [vmem:[#allocation4 + $0x28] sm:$0xff]  ;;  %v3387_v45 = vld [vmem:[#allocation12 + $0x18] sm:$0xff] }
 0x223   :  { %v3404_v36 = vld [vmem:[#allocation15 + $0x80] sm:$0xff]  ;;  %v835_v39 = vpack.c.bf16 %v786_v35, %v783_v34  ;;  %v784_v41 = vld [vmem:[#allocation4 + $0x8] sm:$0xff]  ;;  %v837_v43 = vpack.c.bf16 %v788_v38, %v785_v37  ;;  %767 = vmatpush.bf16.msra.mxu1 %v3387_v45  ;;  %v3415_v52 = vld [vmem:[%s5367_s24 + $0x20] sm:$0xff] }
 0x224   :  { %v3396_v40 = vld [vmem:[#allocation15 + $0x40] sm:$0xff]  ;;  %v3386_v46 = vld [vmem:[#allocation12 + $0x10] sm:$0xff]  ;;  %v3591_v54 = vld [vmem:[#allocation10] ss:$0 sm:$0xff] }
 0x225   :  { %1016 = vmatpush.bf16.msra.mxu0 %v3409_v19  ;;  %v787_v42 = vld [vmem:[#allocation4 + $0x20] sm:$0xff]  ;;  %v3418_v49 = vld [vmem:[%s5367_s24 + $0x38] sm:$0xff]  ;;  %v3416_v51 = vld [vmem:[%s5367_s24 + $0x28] sm:$0xff] }
 0x226   :  { %1001 = vmatpush.bf16.msrb.mxu3 %v3402_v16  ;;  %989 = vmatpush.bf16.msra.mxu2 %v3392_v21  ;;  %v836_v44 = vpack.c.bf16 %v787_v42, %v784_v41  ;;  %v3385_v47 = vld [vmem:[#allocation12 + $0x8] sm:$0xff]  ;;  %v3384_v48 = vld [vmem:[#allocation12] sm:$0xff]  ;;  %v3411_v62 = vld [vmem:[%s5367_s24] sm:$0xff] }
 0x227   :  { %768 = vmatpush.bf16.msra.mxu1 %v3386_v46  ;;  %v3417_v50 = vld [vmem:[%s5367_s24 + $0x30] sm:$0xff]  ;;  %v3414_v53 = vld [vmem:[%s5367_s24 + $0x18] sm:$0xff]  ;;  %v3412_v58 = vld [vmem:[%s5367_s24 + $0x8] sm:$0xff] }
 0x228   :  { %v3413_v56 = vld [vmem:[%s5367_s24 + $0x10] sm:$0xff]  ;;  %v3592_v3 = vld [vmem:[#allocation16] ss:$0 sm:$0xff]  ;;  %v3422_v21 = vld [vmem:[%s5368_s28 + $0x18] sm:$0xff] }
 0x229   :  { %1017 = vmatpush.bf16.msra.mxu0 %v3408_v22  ;;  %v3421_v22 = vld [vmem:[%s5368_s28 + $0x10] sm:$0xff]  ;;  %v3424_v34 = vld [vmem:[%s5368_s28 + $0x28] sm:$0xff]  ;;  %v3423_v38 = vld [vmem:[%s5368_s28 + $0x20] sm:$0xff] }
 0x22a   :  { %1002 = vmatpush.bf16.msrb.mxu3 %v3401_v20  ;;  %990 = vmatpush.bf16.msra.mxu2 %v3391_v24  ;;  %v3419_v24 = vld [vmem:[%s5368_s28] sm:$0xff] }
 0x22b   :  { %769 = vmatpush.bf16.msra.mxu1 %v3385_v47 }
 0x22d   :  { %1018 = vmatpush.bf16.msra.mxu0 %v3407_v25  ;;  %v3430_v25 = vld [vmem:[%s5368_s28 + $0x58] sm:$0xff] }
 0x22e   :  { %1003 = vmatpush.bf16.msrb.mxu3 %v3400_v23  ;;  %991 = vmatpush.bf16.msra.mxu2 %v3390_v27  ;;  %v3420_v23 = vld [vmem:[%s5368_s28 + $0x8] sm:$0xff] }
 0x22f   :  { %770 = vmatpush.bf16.msra.mxu1 %v3384_v48  ;;  %v3428_v27 = vld [vmem:[%s5368_s28 + $0x48] sm:$0xff] }
 0x231   :  { %1019 = vmatpush.bf16.msra.mxu0 %v3406_v28  ;;  %v3427_v28 = vld [vmem:[%s5368_s28 + $0x40] sm:$0xff] }
 0x232   :  { %1004 = vmatpush.bf16.msrb.mxu3 %v3399_v26  ;;  %992 = vmatpush.bf16.msra.mxu2 %v3389_v30  ;;  %v3429_v26 = vld [vmem:[%s5368_s28 + $0x50] sm:$0xff] }
 0x233   :  { %1103 = vmatpush.bf16.msrb.mxu1 %v3418_v49 }
 0x235   :  { %1020 = vmatpush.bf16.msra.mxu0 %v3405_v31  ;;  %v3593_v31 = vld [vmem:[#allocation13] ss:$0 sm:$0xff] }
 0x236   :  { %1005 = vmatpush.bf16.msrb.mxu3 %v3398_v29  ;;  %993 = vmatpush.bf16.msra.mxu2 %v3388_v33  ;;  %v3426_v29 = vld [vmem:[%s5368_s28 + $0x38] sm:$0xff] }
 0x237   :  { %1104 = vmatpush.bf16.msrb.mxu1 %v3417_v50 }
 0x239   :  { %1021 = vmatpush.bf16.msra.mxu0 %v3404_v36  ;;  %994 = vmatmul.bf16.vlgmr.msra.gmra.mxu2 %v835_v39 }
 0x23a   :  { %1006 = vmatpush.bf16.msrb.mxu3 %v3397_v32  ;;  %1242 = vmatpush.bf16.msrb.mxu2 %v3422_v21  ;;  %v3425_v32 = vld [vmem:[%s5368_s28 + $0x30] sm:$0xff] }
 0x23b   :  { %1105 = vmatpush.bf16.msrb.mxu1 %v3416_v51 }
 0x23c   :  { %2978 = vmatmul.msk.bf16.vlgmr.msra.gmra.mxu0 %vm979_vm3, %v837_v43 }
 0x23d   :  { %1197 = vmatpush.bf16.msrb.mxu0 %v3430_v25 }
 0x23e   :  { %1007 = vmatpush.bf16.msrb.mxu3 %v3396_v40  ;;  %1243 = vmatpush.bf16.msrb.mxu2 %v3421_v22 }
 0x23f   :  { %1106 = vmatpush.bf16.msrb.mxu1 %v3415_v52 }
 0x241   :  { %1008 = vmatmul.bf16.vlgmr.msrb.gmra.mxu3 %v836_v44  ;;  %1198 = vmatpush.bf16.msrb.mxu0 %v3429_v26  ;;  %v3594_v44 = vld [vmem:[#allocation18] ss:$0 sm:$0xff] }
 0x242   :  { %1244 = vmatpush.bf16.msrb.mxu2 %v3420_v23 }
 0x243   :  { %1107 = vmatpush.bf16.msrb.mxu1 %v3414_v53  ;;  %v3438_v53 = vld [vmem:[#allocation21 + $0x38] sm:$0xff] }
 0x244   :  { %1333 = vmatpush.bf16.msra.mxu3 %v3438_v53 }
 0x245   :  { %1199 = vmatpush.bf16.msrb.mxu0 %v3428_v27 }
 0x246   :  { %1245 = vmatpush.bf16.msrb.mxu2 %v3419_v24 }
 0x247   :  { %1108 = vmatpush.bf16.msrb.mxu1 %v3413_v56  ;;  %v3435_v56 = vld [vmem:[#allocation21 + $0x20] sm:$0xff] }
 0x249   :  { %1200 = vmatpush.bf16.msrb.mxu0 %v3427_v28 }
 0x24b   :  { %1109 = vmatpush.bf16.msrb.mxu1 %v3412_v58  ;;  %v3433_v58 = vld [vmem:[#allocation21 + $0x10] sm:$0xff] }
 0x24d   :  { %1201 = vmatpush.bf16.msrb.mxu0 %v3426_v29  ;;  %v3597_v29 = vld [vmem:[#allocation27] ss:$0 sm:$0xff] }
 0x24f   :  { %1110 = vmatpush.bf16.msrb.mxu1 %v3411_v62  ;;  %v3445_v62 = vld [vmem:[#allocation24 + $0x30] sm:$0xff] }
 0x251   :  { %1202 = vmatpush.bf16.msrb.mxu0 %v3425_v32 }
 0x255   :  { %1203 = vmatpush.bf16.msrb.mxu0 %v3424_v34 }
 0x259   :  { %1204 = vmatpush.bf16.msrb.mxu0 %v3423_v38 }
 0x2a4   :  { %v711_v55 = vpop.f32.mrf.mxu3 }
 0x2a5   :  { %v712_v57 = vadd.f32 %v3591_v54, %v711_v55  ;;  %v3436_v55 = vld [vmem:[#allocation21 + $0x28] sm:$0xff] }
 0x2a7   :  { %v718_v59 = vmul.f32 0.01, %v712_v57  ;;  %vm716_vm4 = vcmp.gt.f32.partialorder %v712_v57, 0.0 }
 0x2a9   :  { %v720_v0 = vsel %vm716_vm4, %v712_v57, %v718_v59  ;;  %v3434_v57 = vld [vmem:[#allocation21 + $0x18] sm:$0xff]  ;;  %v3432_v59 = vld [vmem:[#allocation21 + $0x8] sm:$0xff] }
 0x2ac   :  { %v713_v60 = vpop.f32.mrf.mxu3 }
 0x2ad   :  { %v714_v61 = vadd.f32 %v3591_v54, %v713_v60  ;;  %v3437_v54 = vld [vmem:[#allocation21 + $0x30] sm:$0xff]  ;;  %v3431_v60 = vld [vmem:[#allocation21] sm:$0xff] }
 0x2ae   :  { %1334 = vmatpush.bf16.msra.mxu3 %v3437_v54 }
 0x2af   :  { %vm717_vm5 = vcmp.gt.f32.partialorder %v714_v61, 0.0  ;;  %v719_v63 = vmul.f32 0.01, %v714_v61 }
 0x2b1   :  { %v721_v1 = vsel %vm717_vm5, %v714_v61, %v719_v63  ;;  %v3446_v61 = vld [vmem:[#allocation24 + $0x38] sm:$0xff]  ;;  %v3444_v63 = vld [vmem:[#allocation24 + $0x28] sm:$0xff]  ;;  %vm1495_vm5 = vcmask 130048  }
 0x2b2   :  { %v730_v2 = vpack.c.bf16 %v721_v1, %v720_v0  ;;  %1335 = vmatpush.bf16.msra.mxu3 %v3436_v55  ;;  %v3443_v0 = vld [vmem:[#allocation24 + $0x20] sm:$0xff] }
 0x2b4   :  { %2885 = vmatmul.msk.bf16.vlgmr.msra.gmra.mxu1 %vm759_vm6, %v730_v2 }
 0x2b5   :  { %1418 = vmatpush.bf16.msra.mxu1 %v3446_v61 }
 0x2b6   :  { %1336 = vmatpush.bf16.msra.mxu3 %v3435_v56 }
 0x2b9   :  { %v1023_v6 = vpop.f32.mrf.mxu0  ;;  %1419 = vmatpush.bf16.msra.mxu1 %v3445_v62 }
 0x2ba   :  { %1337 = vmatpush.bf16.msra.mxu3 %v3434_v57 }
 0x2bc   :  { %v995_v4 = vpop.f32.mrf.mxu2 }
 0x2bd   :  { %v996_v5 = vadd.f32 %v3592_v3, %v995_v4  ;;  %1420 = vmatpush.bf16.msra.mxu1 %v3444_v63  ;;  %v3595_v4 = vld [vmem:[#allocation19] ss:$0 sm:$0xff] }
 0x2be   :  { %1338 = vmatpush.bf16.msra.mxu3 %v3433_v58 }
 0x2c1   :  { %v1025_v14 = vpop.f32.mrf.mxu0  ;;  %1421 = vmatpush.bf16.msra.mxu1 %v3443_v0 }
 0x2c2   :  { %1339 = vmatpush.bf16.msra.mxu3 %v3432_v59 }
 0x2c4   :  { %v1009_v7 = vpop.f32.mrf.mxu3  ;;  %v997_v9 = vpop.f32.mrf.mxu2 }
 0x2c5   :  { %v1010_v8 = vadd.f32 %v1009_v7, %v996_v5  ;;  %v998_v11 = vadd.f32 %v3592_v3, %v997_v9 }
 0x2c6   :  { %1340 = vmatpush.bf16.msra.mxu3 %v3431_v60 }
 0x2c7   :  { %v1024_v10 = vadd.f32 %v1023_v6, %v1010_v8 }
 0x2c9   :  { %v1030_v15 = vmul.f32 0.01, %v1024_v10  ;;  %vm1028_vm7 = vcmp.gt.f32.partialorder %v1024_v10, 0.0 }
 0x2cb   :  { %v1032_v18 = vsel %vm1028_vm7, %v1024_v10, %v1030_v15  ;;  %v3442_v15 = vld [vmem:[#allocation24 + $0x18] sm:$0xff] }
 0x2cc   :  { %v1011_v12 = vpop.f32.mrf.mxu3  ;;  %1422 = vmatpush.bf16.msra.mxu1 %v3442_v15  ;;  %v3450_v15 = vld [vmem:[#allocation30 + $0x18] sm:$0xff] }
 0x2cd   :  { %v1012_v13 = vadd.f32 %v1011_v12, %v998_v11 }
 0x2cf   :  { %v1026_v16 = vadd.f32 %v1025_v14, %v1012_v13 }
 0x2d1   :  { %vm1029_vm8 = vcmp.gt.f32.partialorder %v1026_v16, 0.0  ;;  %v1031_v17 = vmul.f32 0.01, %v1026_v16 }
 0x2d3   :  { %v1033_v19 = vsel %vm1029_vm8, %v1026_v16, %v1031_v17  ;;  %v3441_v16 = vld [vmem:[#allocation24 + $0x10] sm:$0xff]  ;;  %v3440_v17 = vld [vmem:[#allocation24 + $0x8] sm:$0xff] }
 0x2d4   :  { %v1050_v20 = vpack.c.bf16 %v1033_v19, %v1032_v18  ;;  %1423 = vmatpush.bf16.msra.mxu1 %v3441_v16  ;;  %v3439_v18 = vld [vmem:[#allocation24] sm:$0xff]  ;;  %v3449_v16 = vld [vmem:[#allocation30 + $0x10] sm:$0xff] }
 0x2d6   :  { %1111 = vmatmul.bf16.vlgmr.msrb.gmra.mxu1 %v1050_v20  ;;  %v3596_v20 = vld [vmem:[#allocation22] ss:$0 sm:$0xff] }
 0x2d8   :  { %1424 = vmatpush.bf16.msra.mxu1 %v3440_v17  ;;  %v3448_v17 = vld [vmem:[#allocation30 + $0x8] sm:$0xff] }
 0x2dc   :  { %1425 = vmatpush.bf16.msra.mxu1 %v3439_v18  ;;  %v3447_v18 = vld [vmem:[#allocation30] sm:$0xff] }
 0x331   :  { %v772_v30 = vpop.f32.mrf.mxu1 }
 0x332   :  { %v773_v33 = vadd.f32 %v3593_v31, %v772_v30  ;;  %v3598_v30 = vld [vmem:[#allocation25] ss:$0 sm:$0xff] }
 0x334   :  { %v779_v36 = vmul.f32 0.01, %v773_v33  ;;  %vm777_vm9 = vcmp.gt.f32.partialorder %v773_v33, 0.0 }
 0x336   :  { %v781_v40 = vsel %vm777_vm9, %v773_v33, %v779_v36 }
 0x339   :  { %v774_v35 = vpop.f32.mrf.mxu1 }
 0x33a   :  { %v775_v37 = vadd.f32 %v3593_v31, %v774_v35 }
 0x33c   :  { %vm778_vm10 = vcmp.gt.f32.partialorder %v775_v37, 0.0  ;;  %v780_v39 = vmul.f32 0.01, %v775_v37 }
 0x33e   :  { %v782_v41 = vsel %vm778_vm10, %v775_v37, %v780_v39 }
 0x33f   :  { %v1131_v42 = vpack.c.bf16 %v782_v41, %v781_v40 }
 0x341   :  { %3059 = vmatmul.msk.bf16.vlgmr.msrb.gmra.mxu2 %vm759_vm6, %v1131_v42 }
 0x353   :  { %v1112_v43 = vpop.f32.mrf.mxu1 }
 0x354   :  { %v1113_v45 = vadd.f32 %v3594_v44, %v1112_v43  ;;  %v5092_v43 = vld [vmem:[#allocation7 + $0x8] sm:$0xff] }
 0x355   :  { %vm676_vm1 = vcmp.gt.f32.partialorder %v5092_v43, 0.5 }
 0x356   :  { %v1119_v47 = vmul.f32 0.01, %v1113_v45  ;;  %vm1117_vm11 = vcmp.gt.f32.partialorder %v1113_v45, 0.0 }
 0x358   :  { %v1121_v50 = vsel %vm1117_vm11, %v1113_v45, %v1119_v47 }
 0x35b   :  { %v1114_v46 = vpop.f32.mrf.mxu1 }
 0x35c   :  { %v1115_v48 = vadd.f32 %v3594_v44, %v1114_v46  ;;  %v5094_v44 = vld [vmem:[#allocation7] sm:$0xff] }
 0x35d   :  { %vm675_vm2 = vcmp.gt.f32.partialorder %v5094_v44, 0.5 }
 0x35e   :  { %vm1118_vm12 = vcmp.gt.f32.partialorder %v1115_v48, 0.0  ;;  %v1120_v49 = vmul.f32 0.01, %v1115_v48 }
 0x360   :  { %v1122_v51 = vsel %vm1118_vm12, %v1115_v48, %v1120_v49 }
 0x361   :  { %v1148_v52 = vpack.c.bf16 %v1122_v51, %v1121_v50 }
 0x363   :  { %1205 = vmatmul.bf16.vlgmr.msrb.gmra.mxu0 %v1148_v52 }
 0x3c4   :  { %v1247_v1 = vpop.f32.mrf.mxu2 }
 0x3cc   :  { %v1249_v6 = vpop.f32.mrf.mxu2 }
 0x3e0   :  { %v1206_v2 = vpop.f32.mrf.mxu0 }
 0x3e1   :  { %v1248_v3 = vadd.f32 %v1247_v1, %v1206_v2 }
 0x3e3   :  { %v1256_v5 = vadd.f32 %v3595_v4, %v1248_v3 }
 0x3e5   :  { %v1260_v9 = vmul.f32 0.01, %v1256_v5  ;;  %vm1258_vm13 = vcmp.gt.f32.partialorder %v1256_v5, 0.0 }
 0x3e7   :  { %v1262_v12 = vsel %vm1258_vm13, %v1256_v5, %v1260_v9  ;;  %v3453_v5 = vld [vmem:[#allocation30 + $0x30] sm:$0xff]  ;;  %vm1974_vm13 = vcmask 1043456  }
 0x3e8   :  { %v1208_v7 = vpop.f32.mrf.mxu0 }
 0x3e9   :  { %v1250_v8 = vadd.f32 %v1249_v6, %v1208_v7  ;;  %v3452_v6 = vld [vmem:[#allocation30 + $0x28] sm:$0xff]  ;;  %v3451_v7 = vld [vmem:[#allocation30 + $0x20] sm:$0xff] }
 0x3eb   :  { %v1257_v10 = vadd.f32 %v3595_v4, %v1250_v8  ;;  %v3454_v4 = vld [vmem:[#allocation30 + $0x38] sm:$0xff] }
 0x3ec   :  { %1614 = vmatpush.bf16.msra.mxu0 %v3454_v4  ;;  %v3462_v4 = vld [vmem:[%s5369_s23 + $0x38] sm:$0xff] }
 0x3ed   :  { %vm1259_vm14 = vcmp.gt.f32.partialorder %v1257_v10, 0.0  ;;  %v1261_v11 = vmul.f32 0.01, %v1257_v10  ;;  %1809 = vmatpush.bf16.msrb.mxu3 %v3462_v4 }
 0x3ef   :  { %v1263_v13 = vsel %vm1259_vm14, %v1257_v10, %v1261_v11  ;;  %vm1970_vm14 = vcmask 195584  }
 0x3f0   :  { %v1280_v14 = vpack.c.bf16 %v1263_v13, %v1262_v12  ;;  %1615 = vmatpush.bf16.msra.mxu0 %v3453_v5  ;;  %v3461_v5 = vld [vmem:[%s5369_s23 + $0x30] sm:$0xff] }
 0x3f1   :  { %1810 = vmatpush.bf16.msrb.mxu3 %v3461_v5 }
 0x3f2   :  { %1341 = vmatmul.bf16.vlgmr.msra.gmra.mxu3 %v1280_v14 }
 0x3f4   :  { %1616 = vmatpush.bf16.msra.mxu0 %v3452_v6  ;;  %v3460_v6 = vld [vmem:[%s5369_s23 + $0x28] sm:$0xff] }
 0x3f5   :  { %1811 = vmatpush.bf16.msrb.mxu3 %v3460_v6 }
 0x3f8   :  { %1617 = vmatpush.bf16.msra.mxu0 %v3451_v7  ;;  %v3459_v7 = vld [vmem:[%s5369_s23 + $0x20] sm:$0xff] }
 0x3f9   :  { %1812 = vmatpush.bf16.msrb.mxu3 %v3459_v7 }
 0x3fc   :  { %1618 = vmatpush.bf16.msra.mxu0 %v3450_v15  ;;  %v3458_v15 = vld [vmem:[%s5369_s23 + $0x18] sm:$0xff] }
 0x3fd   :  { %1813 = vmatpush.bf16.msrb.mxu3 %v3458_v15 }
 0x400   :  { %1619 = vmatpush.bf16.msra.mxu0 %v3449_v16  ;;  %v3457_v16 = vld [vmem:[%s5369_s23 + $0x10] sm:$0xff] }
 0x401   :  { %1814 = vmatpush.bf16.msrb.mxu3 %v3457_v16 }
 0x404   :  { %1620 = vmatpush.bf16.msra.mxu0 %v3448_v17  ;;  %v3456_v17 = vld [vmem:[%s5369_s23 + $0x8] sm:$0xff] }
 0x405   :  { %1815 = vmatpush.bf16.msrb.mxu3 %v3456_v17 }
 0x408   :  { %1621 = vmatpush.bf16.msra.mxu0 %v3447_v18  ;;  %v3455_v18 = vld [vmem:[%s5369_s23] sm:$0xff] }
 0x409   :  { %1816 = vmatpush.bf16.msrb.mxu3 %v3455_v18 }
 0x475   :  { %v1342_v19 = vpop.f32.mrf.mxu3 }
 0x476   :  { %v1343_v21 = vadd.f32 %v3596_v20, %v1342_v19 }
 0x478   :  { %v1349_v23 = vmul.f32 0.01, %v1343_v21  ;;  %vm1347_vm15 = vcmp.gt.f32.partialorder %v1343_v21, 0.0 }
 0x47a   :  { %v1351_v26 = vsel %vm1347_vm15, %v1343_v21, %v1349_v23 }
 0x47d   :  { %v1344_v22 = vpop.f32.mrf.mxu3 }
 0x47e   :  { %v1345_v24 = vadd.f32 %v3596_v20, %v1344_v22  ;;  %v3599_v20 = vld [vmem:[#allocation28] ss:$0 sm:$0xff] }
 0x480   :  { %vm1348_vm0 = vcmp.gt.f32.partialorder %v1345_v24, 0.0  ;;  %v1350_v25 = vmul.f32 0.01, %v1345_v24 }
 0x482   :  { %v1352_v27 = vsel %vm1348_vm0, %v1345_v24, %v1350_v25 }
 0x483   :  { %v1369_v28 = vpack.c.bf16 %v1352_v27, %v1351_v26 }
 0x485   :  { %1426 = vmatmul.bf16.vlgmr.msra.gmra.mxu1 %v1369_v28 }
 0x502   :  { %v1427_v31 = vpop.f32.mrf.mxu1 }
 0x503   :  { %v1446_v32 = vmul.f32 %v3597_v29, %v1427_v31  ;;  %v1436_v33 = vmul.f32 %v3598_v30, %v1427_v31 }
 0x505   :  { %1448 = vadd.xlane.f32.xlu1 %v1446_v32  ;;  %1438 = vadd.xlane.f32.xlu0 %v1436_v33  ;;  %v3601_v32 = vld [vmem:[#allocation33] ss:$0 sm:$0xff] }
 0x50a   :  { %v1429_v34 = vpop.f32.mrf.mxu1 }
 0x50b   :  { %v1521_v35 = vpack.c.bf16 %v1429_v34, %v1427_v31  ;;  %v1447_v36 = vmul.f32 %v3597_v29, %v1429_v34  ;;  %v1437_v37 = vmul.f32 %v3598_v30, %v1429_v34  ;;  %v3600_v29 = vld [vmem:[#allocation31] ss:$0 sm:$0xff] }
 0x50d   :  { %1536 = vmatpush.bf16.msra.mxu2 %v1521_v35  ;;  %1450 = vadd.xlane.f32.xlu1 %v1447_v36 }
 0x50e   :  { %1440 = vadd.xlane.f32.xlu0 %v1437_v37 }
 0x578   :  { %v1439_v38 = vpop.xlane.xlu0 %1438  ;;  %v1449_v40 = vpop.xlane.xlu1 %1448 }
 0x579   :  { %1452 = vxpose.xlu2.b32.start [1/2] (short) (narrow) %v1439_v38, 8 }
 0x580   :  { %v1451_v45 = vpop.xlane.xlu1 %1450 }
 0x581   :  { %v1441_v39 = vpop.xlane.xlu0 %1440 }
 0x582   :  { %1453 = vxpose.xlu2.b32.end [2/2] (short) (narrow) %v1441_v39, 8 }
 0x613   :  { %v1468_v41 = vpop.trf.xlu2 }
 0x614   :  { %v1484_v42 = vperm.slane %v1468_v41, 0 }
 0x616   :  { %v1485_v46 = vadd.f32 %v1484_v42, %v1449_v40  ;;  %v1486_v47 = vadd.f32 %v1484_v42, %v1451_v45 }
 0x618   :  { %vm1488_vm3 = vcmp.gt.f32.partialorder %v1486_v47, 0.0  ;;  %v1490_v48 = vmul.f32 0.2, %v1486_v47  ;;  %vm1487_vm4 = vcmp.gt.f32.partialorder %v1485_v46, 0.0  ;;  %v1489_v49 = vmul.f32 0.2, %v1485_v46 }
 0x61a   :  { %v1492_v50 = vsel %vm1488_vm3, %v1486_v47, %v1490_v48  ;;  %v1491_v51 = vsel %vm1487_vm4, %v1485_v46, %v1489_v49 }
 0x61b   :  { %v1494_v52 = vsel %vm676_vm1, %v1492_v50, -1e+30  ;;  %v1493_v53 = vsel %vm675_vm2, %v1491_v51, -1e+30 }
 0x61c   :  { %v1499_v54 = vsel %vm1495_vm5, %v1494_v52, -inf  ;;  %v1496_v55 = vsel %vm1495_vm5, %v1493_v53, -inf }
 0x61d   :  { %1500 = vmax.xlane.f32.xlu1 %v1499_v54  ;;  %1497 = vmax.xlane.f32.xlu0 %v1496_v55 }
 0x690   :  { %v1501_v56 = vpop.xlane.xlu1 %1500  ;;  %v1498_v57 = vpop.xlane.xlu0 %1497 }
 0x691   :  { %v1503_v58 = vsub.f32 %v1494_v52, %v1501_v56  ;;  %v1502_v59 = vsub.f32 %v1493_v53, %v1498_v57 }
 0x693   :  { %v1506_v60 = vmul.f32 1.442695, %v1503_v58  ;;  %v1504_v61 = vmul.f32 1.442695, %v1502_v59 }
 0x695   :  { %3611 = vpow2.f32 %v1506_v60 }
 0x696   :  { %3613 = vpow2.f32 %v1504_v61 }
 0x69b   :  { %v3612_v62 = vpop.eup %3611 }
 0x69c   :  { %v3614_v63 = vpop.eup %3613  ;;  %v1509_v0 = vsel %vm676_vm1, %v3612_v62, 0.0 }
 0x69d   :  { %v1513_v1 = vsel %vm1495_vm5, %v1509_v0, 0.0  ;;  %v1508_v2 = vsel %vm675_vm2, %v3614_v63, 0.0 }
 0x69e   :  { %1514 = vadd.xlane.f32.xlu0 %v1513_v1  ;;  %v1510_v3 = vsel %vm1495_vm5, %v1508_v2, 0.0 }
 0x69f   :  { %1511 = vadd.xlane.f32.xlu2 %v1510_v3 }
 0x711   :  { %v1515_v8 = vpop.xlane.xlu0 %1514 }
 0x712   :  { %v1512_v9 = vpop.xlane.xlu2 %1511  ;;  %3615 = vrcp.f32 %v1515_v8 }
 0x713   :  { %3617 = vrcp.f32 %v1512_v9 }
 0x718   :  { %v3616_v10 = vpop.eup %3615 }
 0x719   :  { %v3618_v11 = vpop.eup %3617  ;;  %v1519_v12 = vmul.f32 %v3616_v10, %v1509_v0 }
 0x71a   :  { %v1518_v13 = vmul.f32 %v3618_v11, %v1508_v2 }
 0x71c   :  { %v1520_v14 = vpack.c.bf16 %v1519_v12, %v1518_v13 }
 0x71e   :  { %3124 = vmatmul.msk.bf16.vlgmr.msra.gmra.mxu2 %vm1495_vm5, %v1520_v14 }
 0x7a1   :  { %v1538_v19 = vpop.f32.mrf.mxu2 }
 0x7a2   :  { %v1539_v21 = vadd.f32 %v3599_v20, %v1538_v19 }
 0x7a4   :  { %v1545_v23 = vmul.f32 0.01, %v1539_v21  ;;  %vm1543_vm7 = vcmp.gt.f32.partialorder %v1539_v21, 0.0 }
 0x7a6   :  { %v1547_v26 = vsel %vm1543_vm7, %v1539_v21, %v1545_v23 }
 0x7a9   :  { %v1540_v22 = vpop.f32.mrf.mxu2 }
 0x7aa   :  { %v1541_v24 = vadd.f32 %v3599_v20, %v1540_v22  ;;  %v3602_v20 = vld [vmem:[#allocation34] ss:$0 sm:$0xff] }
 0x7ac   :  { %vm1544_vm8 = vcmp.gt.f32.partialorder %v1541_v24, 0.0  ;;  %v1546_v25 = vmul.f32 0.01, %v1541_v24 }
 0x7ae   :  { %v1548_v27 = vsel %vm1544_vm8, %v1541_v24, %v1546_v25 }
 0x7af   :  { %v1565_v28 = vpack.c.bf16 %v1548_v27, %v1547_v26 }
 0x7b1   :  { %1622 = vmatmul.bf16.vlgmr.msra.gmra.mxu0 %v1565_v28 }
 0x82e   :  { %v1623_v30 = vpop.f32.mrf.mxu0 }
 0x82f   :  { %v1632_v31 = vmul.f32 %v3600_v29, %v1623_v30  ;;  %v1642_v35 = vmul.f32 %v3601_v32, %v1623_v30 }
 0x831   :  { %1634 = vadd.xlane.f32.xlu1 %v1632_v31 }
 0x836   :  { %v1625_v33 = vpop.f32.mrf.mxu0 }
 0x837   :  { %v1716_v34 = vpack.c.bf16 %v1625_v33, %v1623_v30  ;;  %v1633_v36 = vmul.f32 %v3600_v29, %v1625_v33  ;;  %v1643_v37 = vmul.f32 %v3601_v32, %v1625_v33  ;;  %v3603_v29 = vld [vmem:[#allocation36] ss:$0 sm:$0xff] }
 0x839   :  { %1644 = vadd.xlane.f32.xlu1 %v1642_v35  ;;  %1731 = vmatpush.bf16.msrb.mxu2 %v1716_v34 }
 0x83a   :  { %1636 = vadd.xlane.f32.xlu0 %v1633_v36 }
 0x842   :  { %1646 = vadd.xlane.f32.xlu0 %v1643_v37  ;;  %v3604_v37 = vld [vmem:[#allocation37] ss:$0 sm:$0xff] }
 0x8a4   :  { %v1635_v38 = vpop.xlane.xlu1 %1634 }
 0x8a5   :  { %1648 = vxpose.xlu1.b32.start [1/2] (short) (narrow) %v1635_v38, 8 }
 0x8ac   :  { %v1645_v40 = vpop.xlane.xlu1 %1644 }
 0x8ad   :  { %v1637_v39 = vpop.xlane.xlu0 %1636 }
 0x8ae   :  { %1649 = vxpose.xlu1.b32.end [2/2] (short) (narrow) %v1637_v39, 8 }
 0x8b5   :  { %v1647_v45 = vpop.xlane.xlu0 %1646 }
 0x94a   :  { %v1664_v41 = vpop.trf.xlu1 }
 0x94b   :  { %v1680_v42 = vperm.slane %v1664_v41, 0 }
 0x94d   :  { %v1681_v46 = vadd.f32 %v1680_v42, %v1645_v40  ;;  %v1682_v47 = vadd.f32 %v1680_v42, %v1647_v45  ;;  %v1947_v42 = vld [vmem:[#allocation40 + $0x10] sm:$0xff] }
 0x94e   :  { %v1962_v45 = vunpack.c.l.b16 %v1947_v42 }
 0x94f   :  { %vm1683_vm9 = vcmp.gt.f32.partialorder %v1681_v46, 0.0  ;;  %v1685_v48 = vmul.f32 0.2, %v1681_v46  ;;  %v1686_v50 = vmul.f32 0.2, %v1682_v47  ;;  %vm1684_vm10 = vcmp.gt.f32.partialorder %v1682_v47, 0.0 }
 0x951   :  { %v1687_v49 = vsel %vm1683_vm9, %v1681_v46, %v1685_v48  ;;  %v1688_v53 = vsel %vm1684_vm10, %v1682_v47, %v1686_v50  ;;  %v1966_v46 = vpack.c.b16 %v1962_v45, %v1962_v45  ;;  %v3193_v47 = vld [vmem:[#allocation40] sm:$0xf]  ;;  %v3464_v48 = vld [vmem:[#allocation40 + $0x4] sm:$0xf0] }
 0x952   :  { %v1689_v51 = vsel %vm675_vm2, %v1687_v49, -1e+30  ;;  %v1690_v54 = vsel %vm676_vm1, %v1688_v53, -1e+30  ;;  %v3194_v50 = vor.u32 %v3464_v48, %v3193_v47 }
 0x953   :  { %v1691_v52 = vsel %vm1495_vm5, %v1689_v51, -inf  ;;  %v1694_v55 = vsel %vm1495_vm5, %v1690_v54, -inf  ;;  %v1976_v49 = vsel %vm1974_vm13, %v1966_v46, 0  ;;  %v3233_v46 = vld [vmem:[#allocation42 + $0x38] sm:$0xf0] }
 0x954   :  { %1692 = vmax.xlane.f32.xlu0 %v1691_v52  ;;  %1987 = vmatpush.bf16.msra.mxu2 %v1976_v49  ;;  %v1944_v52 = vld [vmem:[#allocation6 + $0x8] sm:$0xff] }
 0x958   :  { %1988 = vmatpush.bf16.msra.mxu2 %v3194_v50 }
 0x95c   :  { %1695 = vmax.xlane.f32.xlu0 %v1694_v55 }
 0x9c7   :  { %v1693_v56 = vpop.xlane.xlu0 %1692 }
 0x9c8   :  { %v1697_v57 = vsub.f32 %v1689_v51, %v1693_v56  ;;  %v1943_v51 = vld [vmem:[#allocation6] sm:$0xff]  ;;  %v1963_v56 = vunpack.c.h.b16 %v1947_v42 }
 0x9ca   :  { %v1699_v58 = vmul.f32 1.442695, %v1697_v57  ;;  %v1967_v57 = vpack.c.b16 %v1963_v56, %v1963_v56 }
 0x9cc   :  { %3619 = vpow2.f32 %v1699_v58  ;;  %v3463_v58 = vld [vmem:[#allocation40 + $0x4] sm:$0xf] }
 0x9cf   :  { %v1696_v59 = vpop.xlane.xlu0 %1695 }
 0x9d0   :  { %v1698_v60 = vsub.f32 %v1690_v54, %v1696_v59  ;;  %v1948_v54 = vpack.c.bf16 %v1944_v52, %v1943_v51  ;;  %v3195_v59 = vld [vmem:[#allocation40 + $0x8] sm:$0xf0]  ;;  %v3223_v51 = vld [vmem:[#allocation42 + $0x20] sm:$0xf]  ;;  %v3470_v52 = vld [vmem:[#allocation42 + $0x24] sm:$0xf0] }
 0x9d2   :  { %v3620_v61 = vpop.eup %3619  ;;  %v1701_v62 = vmul.f32 1.442695, %v1698_v60  ;;  %v1979_v60 = vsel %vm1974_vm13, %v1967_v57, 0 }
 0x9d3   :  { %v1703_v63 = vsel %vm675_vm2, %v3620_v61, 0.0  ;;  %2001 = vmatpush.bf16.msrb.mxu0 %v1979_v60  ;;  %v3198_v61 = vor.u32 %v3463_v58, %v3195_v59  ;;  %v3215_v59 = vld [vmem:[#allocation42 + $0x10] sm:$0xf]  ;;  %v3468_v60 = vld [vmem:[#allocation42 + $0x14] sm:$0xf0] }
 0x9d4   :  { %3621 = vpow2.f32 %v1701_v62  ;;  %v1705_v0 = vsel %vm1495_vm5, %v1703_v63, 0.0  ;;  %v1949_v62 = vld [vmem:[%s5370_s27] sm:$0x3] }
 0x9d5   :  { %1706 = vadd.xlane.f32.xlu0 %v1705_v0  ;;  %v1951_v0 = vperm.slane %v1949_v62, 0 }
 0x9d7   :  { %2002 = vmatpush.bf16.msrb.mxu0 %v3198_v61  ;;  %v3467_v61 = vld [vmem:[#allocation42 + $0x14] sm:$0xf] }
 0x9da   :  { %v3622_v1 = vpop.eup %3621  ;;  %3200 = vmatmul.msk.bf16.vlgmr.msrb.gmra.mxu0 %vm1970_vm14, %v1948_v54 }
 0x9db   :  { %v1704_v2 = vsel %vm676_vm1, %v3622_v1, 0.0 }
 0x9dc   :  { %v1708_v3 = vsel %vm1495_vm5, %v1704_v2, 0.0 }
 0x9dd   :  { %1709 = vadd.xlane.f32.xlu0 %v1708_v3 }
 0xa48   :  { %v1707_v8 = vpop.xlane.xlu0 %1706 }
 0xa49   :  { %3623 = vrcp.f32 %v1707_v8 }
 0xa4f   :  { %v3624_v10 = vpop.eup %3623 }
 0xa50   :  { %v1710_v9 = vpop.xlane.xlu0 %1709  ;;  %v1713_v12 = vmul.f32 %v3624_v10, %v1703_v63 }
 0xa51   :  { %3625 = vrcp.f32 %v1710_v9 }
 0xa57   :  { %v3626_v11 = vpop.eup %3625 }
 0xa58   :  { %v1714_v13 = vmul.f32 %v3626_v11, %v1704_v2 }
 0xa5a   :  { %v1715_v14 = vpack.c.bf16 %v1714_v13, %v1713_v12 }
 0xa5c   :  { %3157 = vmatmul.msk.bf16.vlgmr.msrb.gmra.mxu2 %vm1495_vm5, %v1715_v14 }
 0xa6c   :  { %3199 = vmatmul.msk.bf16.vlgmr.msra.gmra.mxu2 %vm1970_vm14, %v1948_v54  ;;  %v3224_v54 = vor.u32 %v3470_v52, %v3223_v51 }
 0xadf   :  { %v1733_v19 = vpop.f32.mrf.mxu2 }
 0xae0   :  { %v1734_v21 = vadd.f32 %v3602_v20, %v1733_v19 }
 0xae2   :  { %v1740_v23 = vmul.f32 0.01, %v1734_v21  ;;  %vm1738_vm11 = vcmp.gt.f32.partialorder %v1734_v21, 0.0 }
 0xae4   :  { %v1742_v26 = vsel %vm1738_vm11, %v1734_v21, %v1740_v23 }
 0xae7   :  { %v1735_v22 = vpop.f32.mrf.mxu2 }
 0xae8   :  { %v1736_v24 = vadd.f32 %v3602_v20, %v1735_v22 }
 0xaea   :  { %vm1739_vm12 = vcmp.gt.f32.partialorder %v1736_v24, 0.0  ;;  %v1741_v25 = vmul.f32 0.01, %v1736_v24 }
 0xaec   :  { %v1743_v27 = vsel %vm1739_vm12, %v1736_v24, %v1741_v25 }
 0xaed   :  { %v1760_v28 = vpack.c.bf16 %v1743_v27, %v1742_v26 }
 0xaef   :  { %1817 = vmatmul.bf16.vlgmr.msrb.gmra.mxu3 %v1760_v28  ;;  %v1990_v63 = vpop.f32.mrf.mxu2 }
 0xaf0   :  { %v1991_v1 = vadd.f32 %v1990_v63, %v1951_v0  ;;  %v3217_v63 = vld [vmem:[#allocation42 + $0x18] sm:$0xf0] }
 0xaf2   :  { %3627 = vtanh.f32 %v1991_v1 }
 0xaf8   :  { %v3628_v3 = vpop.eup %3627 }
 0xaf9   :  { %2089 = vrot.lane.b32.xlu2 %v3628_v3, %s4626_s1 }
 0xb72   :  { %v1818_v30 = vpop.f32.mrf.mxu3 }
 0xb73   :  { %v1827_v31 = vmul.f32 %v3603_v29, %v1818_v30  ;;  %v1839_v38 = vmul.f32 %v3604_v37, %v1818_v30 }
 0xb75   :  { %v1829_v32 = vsel %vm759_vm6, %v1827_v31, 0.0  ;;  %v1841_v39 = vsel %vm759_vm6, %v1839_v38, 0.0  ;;  %v3201_v31 = vmul.f32 -1.442695, %v1991_v1  ;;  %v3220_v1 = vor.u32 %v3467_v61, %v3217_v63 }
 0xb76   :  { %1830 = vadd.xlane.f32.xlu0 %v1829_v32  ;;  %v2004_v32 = vpop.f32.mrf.mxu0 }
 0xb7a   :  { %v1820_v33 = vpop.f32.mrf.mxu3 }
 0xb7b   :  { %v1915_v34 = vpack.c.bf16 %v1820_v33, %v1818_v30  ;;  %v1828_v35 = vmul.f32 %v3603_v29, %v1820_v33  ;;  %v1840_v40 = vmul.f32 %v3604_v37, %v1820_v33  ;;  %v1992_v29 = vpop.f32.mrf.mxu2 }
 0xb7c   :  { %v1993_v30 = vadd.f32 %v1992_v29, %v1951_v0 }
 0xb7d   :  { %1930 = vmatpush.bf16.msrb.mxu1 %v1915_v34  ;;  %v1832_v36 = vsel %vm759_vm6, %v1828_v35, 0.0  ;;  %v1844_v41 = vsel %vm759_vm6, %v1840_v40, 0.0  ;;  %v1952_v34 = vperm.slane %v1949_v62, 1  ;;  %v3472_v40 = vld [vmem:[#allocation42 + $0x34] sm:$0xf0]  ;;  %v3216_v62 = vor.u32 %v3468_v60, %v3215_v59 }
 0xb7e   :  { %1833 = vadd.xlane.f32.xlu0 %v1832_v36  ;;  %v3202_v33 = vmul.f32 -1.442695, %v1993_v30  ;;  %v2006_v36 = vpop.f32.mrf.mxu0 }
 0xb7f   :  { %v2005_v43 = vadd.f32 %v2004_v32, %v1952_v34  ;;  %v2007_v38 = vadd.f32 %v2006_v36, %v1952_v34 }
 0xb81   :  { %v3203_v42 = vmul.f32 -1.442695, %v2005_v43  ;;  %v3204_v49 = vmul.f32 -1.442695, %v2007_v38  ;;  %v2090_v43 = vpop.permute.xlu2 %2089 }
 0xb86   :  { %1842 = vadd.xlane.f32.xlu0 %v1841_v39  ;;  %v3231_v39 = vld [vmem:[#allocation42 + $0x30] sm:$0xf] }
 0xb87   :  { %v3232_v45 = vor.u32 %v3472_v40, %v3231_v39 }
 0xb89   :  { %2163 = vmatpush.bf16.msra.mxu1 %v3232_v45 }
 0xb8d   :  { %2164 = vmatpush.bf16.msra.mxu1 %v3224_v54 }
 0xb8e   :  { %1845 = vadd.xlane.f32.xlu0 %v1844_v41  ;;  %v3471_v41 = vld [vmem:[#allocation42 + $0x34] sm:$0xf] }
 0xb8f   :  { %v3236_v47 = vor.u32 %v3471_v41, %v3233_v46 }
 0xb91   :  { %2177 = vmatpush.bf16.msrb.mxu2 %v3236_v47  ;;  %2165 = vmatpush.bf16.msra.mxu1 %v3216_v62 }
 0xbe9   :  { %v1831_v53 = vpop.xlane.xlu0 %1830 }
 0xbea   :  { %1847 = vxpose.xlu1.b32.start [1/2] (short) (narrow) %v1831_v53, 8  ;;  %v3469_v53 = vld [vmem:[#allocation42 + $0x24] sm:$0xf] }
 0xbf1   :  { %v1834_v55 = vpop.xlane.xlu0 %1833 }
 0xbf2   :  { %1848 = vxpose.xlu1.b32.end [2/2] (short) (narrow) %v1834_v55, 8  ;;  %v3225_v55 = vld [vmem:[#allocation42 + $0x28] sm:$0xf0] }
 0xbf3   :  { %v3228_v56 = vor.u32 %v3469_v53, %v3225_v55 }
 0xbf5   :  { %2178 = vmatpush.bf16.msrb.mxu2 %v3228_v56 }
 0xbf9   :  { %v1843_v2 = vpop.xlane.xlu0 %1842  ;;  %2179 = vmatpush.bf16.msrb.mxu2 %v3220_v1 }
 0xc01   :  { %v1846_v6 = vpop.xlane.xlu0 %1845 }
 0xc8e   :  { %v1863_v4 = vpop.trf.xlu1 }
 0xc8f   :  { %v1879_v5 = vperm.slane %v1863_v4, 0  ;;  %v3207_v4 = vld [vmem:[#allocation42] sm:$0xf] }
 0xc91   :  { %v1880_v7 = vadd.f32 %v1879_v5, %v1843_v2  ;;  %v1881_v8 = vadd.f32 %v1879_v5, %v1846_v6  ;;  %v3466_v5 = vld [vmem:[#allocation42 + $0x4] sm:$0xf0]  ;;  %v3465_v6 = vld [vmem:[#allocation42 + $0x4] sm:$0xf] }
 0xc93   :  { %vm1882_vm15 = vcmp.gt.f32.partialorder %v1880_v7, 0.0  ;;  %v1884_v9 = vmul.f32 0.2, %v1880_v7  ;;  %v1885_v11 = vmul.f32 0.2, %v1881_v8  ;;  %vm1883_vm0 = vcmp.gt.f32.partialorder %v1881_v8, 0.0 }
 0xc95   :  { %v1886_v10 = vsel %vm1882_vm15, %v1880_v7, %v1884_v9  ;;  %v1887_v14 = vsel %vm1883_vm0, %v1881_v8, %v1885_v11  ;;  %v3208_v9 = vor.u32 %v3466_v5, %v3207_v4  ;;  %v3605_v4 = vld [vmem:[#allocation39] ss:$0 sm:$0xff] }
 0xc96   :  { %v1888_v12 = vsel %vm675_vm2, %v1886_v10, -1e+30  ;;  %v1889_v15 = vsel %vm676_vm1, %v1887_v14, -1e+30  ;;  %v3209_v10 = vld [vmem:[#allocation42 + $0x8] sm:$0xf0] }
 0xc97   :  { %v1890_v13 = vsel %vm1495_vm5, %v1888_v12, -inf  ;;  %v1893_v16 = vsel %vm1495_vm5, %v1889_v15, -inf  ;;  %2166 = vmatpush.bf16.msra.mxu1 %v3208_v9 }
 0xc98   :  { %1891 = vmax.xlane.f32.xlu0 %v1890_v13 }
 0xca0   :  { %1894 = vmax.xlane.f32.xlu0 %v1893_v16 }
 0xd0b   :  { %v1892_v17 = vpop.xlane.xlu0 %1891 }
 0xd0c   :  { %v1896_v18 = vsub.f32 %v1888_v12, %v1892_v17  ;;  %v3212_v12 = vor.u32 %v3465_v6, %v3209_v10 }
 0xd0e   :  { %v1898_v19 = vmul.f32 1.442695, %v1896_v18  ;;  %2180 = vmatpush.bf16.msrb.mxu2 %v3212_v12 }
 0xd10   :  { %3629 = vpow2.f32 %v1898_v19 }
 0xd13   :  { %v1895_v20 = vpop.xlane.xlu0 %1894 }
 0xd14   :  { %v1897_v21 = vsub.f32 %v1889_v15, %v1895_v20 }
 0xd16   :  { %v3630_v22 = vpop.eup %3629  ;;  %v1900_v23 = vmul.f32 1.442695, %v1897_v21 }
 0xd17   :  { %v5148_v24 = vsel %vm675_vm2, %v3630_v22, 0.0 }
 0xd18   :  { %3631 = vpow2.f32 %v1900_v23  ;;  %v1904_v25 = vsel %vm1495_vm5, %v5148_v24, 0.0 }
 0xd19   :  { %1905 = vadd.xlane.f32.xlu1 %v1904_v25  ;;  %3633 = vtanh.f32 %v1993_v30 }
 0xd1a   :  { %3635 = vpow2.f32 %v3201_v31 }
 0xd1b   :  { %3637 = vpow2.f32 %v3202_v33 }
 0xd1e   :  { %v3632_v26 = vpop.eup %3631 }
 0xd1f   :  { %v5154_v27 = vsel %vm676_vm1, %v3632_v26, 0.0  ;;  %v3634_v44 = vpop.eup %3633 }
 0xd20   :  { %v1907_v28 = vsel %vm1495_vm5, %v5154_v27, 0.0  ;;  %v3636_v35 = vpop.eup %3635 }
 0xd21   :  { %1908 = vadd.xlane.f32.xlu0 %v1907_v28  ;;  %v5159_v37 = vadd.f32 1.0, %v3636_v35  ;;  %v3638_v48 = vpop.eup %3637 }
 0xd22   :  { %v5162_v50 = vadd.f32 1.0, %v3638_v48 }
 0xd23   :  { %3639 = vrcp.f32 %v5159_v37  ;;  %vm2022_vm1 = vweird.f32 %v5159_v37  ;;  %v2026_v20 = vand.u32 2147483647, %v5159_v37  ;;  %v2028_v21 = vand.u32 2147483648, %v5159_v37 }
 0xd24   :  { %3641 = vpow2.f32 %v3203_v42  ;;  %vm2037_vm7 = vweird.f32 %v5162_v50  ;;  %v2043_v36 = vand.u32 2147483648, %v5162_v50 }
 0xd25   :  { %3643 = vpow2.f32 %v3204_v49  ;;  %vm2027_vm4 = vcmp.eq.f32.partialorder %v2026_v20, 8.507059e+37  ;;  %v2029_v31 = vor.u32 1.1754944e-38, %v2028_v21 }
 0xd26   :  { %3645 = vrcp.f32 %v5162_v50  ;;  %v2044_v40 = vor.u32 1.1754944e-38, %v2043_v36  ;;  %v3271_v36 = vld [vmem:[#allocation45 + $0x38] sm:$0xf0] }
 0xd29   :  { %v5164_v57 = vpop.eup %3639 }
 0xd2a   :  { %v3642_v58 = vpop.eup %3641  ;;  %v2018_v3 = vmul.f32 %v5164_v57, %v5159_v37  ;;  %vm2023_vm2 = vweird.f32 %v5164_v57 }
 0xd2b   :  { %v3644_v0 = vpop.eup %3643  ;;  %v5167_v2 = vadd.f32 1.0, %v3642_v58  ;;  %vm5186_vm3 = vmor %vm2022_vm1, %vm2023_vm2 }
 0xd2c   :  { %v5171_v7 = vadd.f32 1.0, %v3644_v0  ;;  %v3646_v11 = vpop.eup %3645  ;;  %v2019_v13 = vsub.f32 1.0, %v2018_v3 }
 0xd2d   :  { %3647 = vrcp.f32 %v5167_v2  ;;  %v2033_v15 = vmul.f32 %v3646_v11, %v5162_v50  ;;  %vm2038_vm8 = vweird.f32 %v3646_v11  ;;  %vm2062_vm11 = vweird.f32 %v5167_v2 }
 0xd2e   :  { %v2020_v16 = vmul.f32 %v5164_v57, %v2019_v13  ;;  %vm2039_vm9 = vmor %vm2037_vm7, %vm2038_vm8  ;;  %v2066_v46 = vand.u32 2147483647, %v5167_v2  ;;  %v2068_v47 = vand.u32 2147483648, %v5167_v2  ;;  %v2083_v52 = vand.u32 2147483648, %v5171_v7  ;;  %v2110_v13 = vld [vmem:[#allocation43] sm:$0x3] }
 0xd2f   :  { %v2034_v18 = vsub.f32 1.0, %v2033_v15  ;;  %v2081_v55 = vand.u32 2147483647, %v5171_v7 }
 0xd30   :  { %v2021_v23 = vadd.f32 %v5164_v57, %v2020_v16  ;;  %v2069_v56 = vor.u32 1.1754944e-38, %v2068_v47  ;;  %vm2067_vm0 = vcmp.eq.f32.partialorder %v2066_v46, 8.507059e+37  ;;  %v2084_v58 = vor.u32 1.1754944e-38, %v2083_v52 }
 0xd31   :  { %vm2082_vm1 = vcmp.eq.f32.partialorder %v2081_v55, 8.507059e+37 }
 0xd32   :  { %v2025_v33 = vsel %vm5186_vm3, %v5164_v57, %v2021_v23 }
 0xd33   :  { %v5177_v17 = vpop.eup %3647  ;;  %v2030_v37 = vsel %vm2027_vm4, %v2029_v31, %v2025_v33  ;;  %v3480_v33 = vld [vmem:[#allocation45 + $0x34] sm:$0xf0] }
 0xd34   :  { %v2058_v26 = vmul.f32 %v5177_v17, %v5167_v2  ;;  %v2095_v41 = vmul.f32 %v2090_v43, %v2030_v37  ;;  %vm2063_vm12 = vweird.f32 %v5177_v17 }
 0xd35   :  { %2091 = vrot.lane.b32.xlu0 %v3634_v44, %s4626_s1  ;;  %v2035_v44 = vmul.f32 %v3646_v11, %v2034_v18  ;;  %vm5207_vm14 = vmor %vm2062_vm11, %vm2063_vm12 }
 0xd36   :  { %v2059_v35 = vsub.f32 1.0, %v2058_v26 }
 0xd38   :  { %v2060_v39 = vmul.f32 %v5177_v17, %v2059_v35 }
 0xd3a   :  { %v2061_v48 = vadd.f32 %v5177_v17, %v2060_v39 }
 0xd3c   :  { %v2065_v57 = vsel %vm5207_vm14, %v5177_v17, %v2061_v48 }
 0xd3d   :  { %v2070_v61 = vsel %vm2067_vm0, %v2069_v56, %v2065_v57 }
 0xd8c   :  { %v1906_v8 = vpop.xlane.xlu1 %1905 }
 0xd8d   :  { %3649 = vrcp.f32 %v1906_v8 }
 0xd8e   :  { %3651 = vrcp.f32 %v5171_v7 }
 0xd93   :  { %v3650_v19 = vpop.eup %3649 }
 0xd94   :  { %v1909_v14 = vpop.xlane.xlu0 %1908  ;;  %v3652_v22 = vpop.eup %3651  ;;  %v1912_v29 = vmul.f32 %v3650_v19, %v5148_v24  ;;  %v2036_v24 = vadd.f32 %v3646_v11, %v2035_v44 }
 0xd95   :  { %3653 = vrcp.f32 %v1909_v14  ;;  %v2073_v32 = vmul.f32 %v3652_v22, %v5171_v7  ;;  %vm2078_vm13 = vweird.f32 %v3652_v22  ;;  %v2112_v14 = vperm.slane %v2110_v13, 0 }
 0xd96   :  { %v2040_v42 = vsel %vm2039_vm9, %v3646_v11, %v2036_v24  ;;  %3655 = vtanh.f32 %v2095_v41 }
 0xd97   :  { %v2074_v38 = vsub.f32 1.0, %v2073_v32  ;;  %v3269_v32 = vld [vmem:[#allocation45 + $0x30] sm:$0xf] }
 0xd98   :  { %v3270_v35 = vor.u32 %v3480_v33, %v3269_v32  ;;  %v3490_v33 = vld [vmem:[%s5377_s19 + $0x8] sm:$0xff] }
 0xd99   :  { %v2075_v45 = vmul.f32 %v3652_v22, %v2074_v38 }
 0xd9a   :  { %2341 = vmatpush.bf16.msra.mxu3 %v3270_v35 }
 0xd9b   :  { %v3654_v25 = vpop.eup %3653  ;;  %v2076_v54 = vadd.f32 %v3652_v22, %v2075_v45 }
 0xd9c   :  { %v1913_v30 = vmul.f32 %v3654_v25, %v5154_v27  ;;  %v2041_v27 = vand.u32 2147483647, %v5162_v50  ;;  %v3656_v60 = vpop.eup %3655 }
 0xd9d   :  { %v2099_v0 = vmul.f32 %v3656_v60, %v2070_v61  ;;  %v3477_v60 = vld [vmem:[#allocation45 + $0x24] sm:$0xf] }
 0xd9e   :  { %v1914_v34 = vpack.c.bf16 %v1913_v30, %v1912_v29  ;;  %vm2042_vm10 = vcmp.eq.f32.partialorder %v2041_v27, 8.507059e+37 }
 0xd9f   :  { %v2045_v49 = vsel %vm2042_vm10, %v2044_v40, %v2040_v42 }
 0xda0   :  { %3190 = vmatmul.msk.bf16.vlgmr.msrb.gmra.mxu1 %vm1495_vm5, %v1914_v34  ;;  %vm2077_vm5 = vweird.f32 %v5171_v7  ;;  %v3479_v34 = vld [vmem:[#allocation45 + $0x34] sm:$0xf] }
 0xda1   :  { %vm2079_vm15 = vmor %vm2077_vm5, %vm2078_vm13  ;;  %v3274_v24 = vor.u32 %v3479_v34, %v3271_v36  ;;  %v3489_v36 = vld [vmem:[%s5377_s19] sm:$0xff] }
 0xda2   :  { %v2080_v59 = vsel %vm2079_vm15, %v3652_v22, %v2076_v54  ;;  %v2113_v22 = vperm.slane %v2110_v13, 1 }
 0xda3   :  { %v2085_v63 = vsel %vm2082_vm1, %v2084_v58, %v2080_v59  ;;  %2355 = vmatpush.bf16.msra.mxu0 %v3274_v24  ;;  %v3261_v58 = vld [vmem:[#allocation45 + $0x20] sm:$0xf]  ;;  %v3478_v59 = vld [vmem:[#allocation45 + $0x24] sm:$0xf0] }
 0xda7   :  { %v2092_v50 = vpop.permute.xlu0 %2091 }
 0xda8   :  { %v2096_v53 = vmul.f32 %v2092_v50, %v2045_v49 }
 0xdaa   :  { %3657 = vtanh.f32 %v2096_v53 }
 0xdb0   :  { %v3658_v62 = vpop.eup %3657 }
 0xdb1   :  { %v2100_v1 = vmul.f32 %v3658_v62, %v2085_v63  ;;  %v3262_v62 = vor.u32 %v3478_v59, %v3261_v58  ;;  %v3263_v63 = vld [vmem:[#allocation45 + $0x28] sm:$0xf0] }
 0xdb3   :  { %v2109_v2 = vpack.c.bf16 %v2100_v1, %v2099_v0  ;;  %v3266_v1 = vor.u32 %v3477_v60, %v3263_v63  ;;  %2342 = vmatpush.bf16.msra.mxu3 %v3262_v62 }
 0xdb5   :  { %3237 = vmatmul.msk.bf16.vlgmr.msra.gmra.mxu1 %vm759_vm6, %v2109_v2  ;;  %3238 = vmatmul.msk.bf16.vlgmr.msrb.gmra.mxu2 %vm759_vm6, %v2109_v2 }
 0xdb6   :  { %2356 = vmatpush.bf16.msra.mxu0 %v3266_v1 }
 0xe1d   :  { %v1932_v3 = vpop.f32.mrf.mxu1 }
 0xe1e   :  { %v1933_v5 = vadd.f32 %v3605_v4, %v1932_v3 }
 0xe20   :  { %v1939_v7 = vmul.f32 0.01, %v1933_v5  ;;  %vm1937_vm2 = vcmp.gt.f32.partialorder %v1933_v5, 0.0 }
 0xe22   :  { %v5218_v10 = vsel %vm1937_vm2, %v1933_v5, %v1939_v7  ;;  %v3476_v5 = vld [vmem:[#allocation45 + $0x14] sm:$0xf0] }
 0xe25   :  { %v1934_v6 = vpop.f32.mrf.mxu1 }
 0xe26   :  { %v1935_v8 = vadd.f32 %v3605_v4, %v1934_v6  ;;  %v3253_v4 = vld [vmem:[#allocation45 + $0x10] sm:$0xf]  ;;  %v3475_v6 = vld [vmem:[#allocation45 + $0x14] sm:$0xf] }
 0xe28   :  { %vm1938_vm3 = vcmp.gt.f32.partialorder %v1935_v8, 0.0  ;;  %v1940_v9 = vmul.f32 0.01, %v1935_v8 }
 0xe2a   :  { %v5220_v11 = vsel %vm1938_vm3, %v1935_v8, %v1940_v9  ;;  %v3254_v8 = vor.u32 %v3476_v5, %v3253_v4  ;;  %v3255_v9 = vld [vmem:[#allocation45 + $0x18] sm:$0xf0] }
 0xe2b   :  { %v2585_v12 = vpack.c.bf16 %v5220_v11, %v5218_v10 }
 0xe2c   :  { %2343 = vmatpush.bf16.msra.mxu3 %v3254_v8 }
 0xe32   :  { %v2168_v15 = vpop.f32.mrf.mxu1 }
 0xe33   :  { %v2169_v16 = vadd.f32 %v2168_v15, %v2112_v14  ;;  %v3258_v15 = vor.u32 %v3475_v6, %v3255_v9 }
 0xe35   :  { %3659 = vtanh.f32 %v2169_v16  ;;  %v3239_v21 = vmul.f32 -1.442695, %v2169_v16  ;;  %2357 = vmatpush.bf16.msra.mxu0 %v3258_v15 }
 0xe38   :  { %v2182_v23 = vpop.f32.mrf.mxu2 }
 0xe39   :  { %v2183_v25 = vadd.f32 %v2182_v23, %v2113_v22 }
 0xe3a   :  { %v2170_v17 = vpop.f32.mrf.mxu1 }
 0xe3b   :  { %v3660_v18 = vpop.eup %3659  ;;  %v2171_v19 = vadd.f32 %v2170_v17, %v2112_v14  ;;  %v3241_v26 = vmul.f32 -1.442695, %v2183_v25  ;;  %v3247_v25 = vld [vmem:[#allocation45 + $0x8] sm:$0xf0] }
 0xe3c   :  { %2267 = vrot.lane.b32.xlu2 %v3660_v18, %s4626_s1  ;;  %v3245_v18 = vld [vmem:[#allocation45] sm:$0xf] }
 0xe3d   :  { %3661 = vtanh.f32 %v2171_v19  ;;  %v3240_v38 = vmul.f32 -1.442695, %v2171_v19  ;;  %v3474_v19 = vld [vmem:[#allocation45 + $0x4] sm:$0xf0] }
 0xe3e   :  { %3663 = vpow2.f32 %v3239_v21  ;;  %v3246_v23 = vor.u32 %v3474_v19, %v3245_v18 }
 0xe3f   :  { %3665 = vpow2.f32 %v3241_v26 }
 0xe40   :  { %v2184_v41 = vpop.f32.mrf.mxu2  ;;  %2344 = vmatpush.bf16.msra.mxu3 %v3246_v23 }
 0xe41   :  { %v2185_v42 = vadd.f32 %v2184_v41, %v2113_v22 }
 0xe43   :  { %v3662_v20 = vpop.eup %3661  ;;  %v3242_v50 = vmul.f32 -1.442695, %v2185_v42 }
 0xe44   :  { %2269 = vrot.lane.b32.xlu0 %v3662_v20, %s4626_s1  ;;  %v3664_v28 = vpop.eup %3663  ;;  %v3473_v20 = vld [vmem:[#allocation45 + $0x4] sm:$0xf] }
 0xe45   :  { %v2193_v29 = vadd.f32 1.0, %v3664_v28  ;;  %v3666_v30 = vpop.eup %3665  ;;  %v3250_v28 = vor.u32 %v3473_v20, %v3247_v25 }
 0xe46   :  { %v5226_v44 = vadd.f32 1.0, %v3666_v30  ;;  %v3492_v30 = vld [vmem:[%s5377_s19 + $0x18] sm:$0xff] }
 0xe47   :  { %3667 = vrcp.f32 %v2193_v29  ;;  %v2206_v47 = vand.u32 2147483648, %v2193_v29  ;;  %vm2200_vm7 = vweird.f32 %v2193_v29  ;;  %v2204_v48 = vand.u32 2147483647, %v2193_v29  ;;  %2358 = vmatpush.bf16.msra.mxu0 %v3250_v28 }
 0xe48   :  { %3669 = vrcp.f32 %v5226_v44  ;;  %vm2240_vm11 = vweird.f32 %v5226_v44  ;;  %v2246_v0 = vand.u32 2147483648, %v5226_v44  ;;  %v2244_v3 = vand.u32 2147483647, %v5226_v44 }
 0xe49   :  { %3671 = vpow2.f32 %v3240_v38  ;;  %v2207_v53 = vor.u32 1.1754944e-38, %v2206_v47  ;;  %vm2205_vm9 = vcmp.eq.f32.partialorder %v2204_v48, 8.507059e+37 }
 0xe4a   :  { %3673 = vpow2.f32 %v3242_v50  ;;  %v2247_v14 = vor.u32 1.1754944e-38, %v2246_v0  ;;  %vm2245_vm5 = vcmp.eq.f32.partialorder %v2244_v3, 8.507059e+37  ;;  %v3484_v0 = vld [vmem:[#allocation48 + $0x18] sm:$0xff] }
 0xe4b   :  { %2667 = vmatpush.bf16.msrb.mxu0 %v3492_v30  ;;  %2501 = vmatpush.bf16.msrb.mxu1 %v3484_v0 }
 0xe4d   :  { %v3668_v31 = vpop.eup %3667 }
 0xe4e   :  { %v2196_v27 = vmul.f32 %v3668_v31, %v2193_v29  ;;  %v3670_v37 = vpop.eup %3669  ;;  %vm2201_vm4 = vweird.f32 %v3668_v31 }
 0xe4f   :  { %v2236_v40 = vmul.f32 %v3670_v37, %v5226_v44  ;;  %vm2202_vm8 = vmor %vm2200_vm7, %vm2201_vm4  ;;  %v3672_v49 = vpop.eup %3671  ;;  %vm2241_vm10 = vweird.f32 %v3670_v37  ;;  %v3491_v44 = vld [vmem:[%s5377_s19 + $0x10] sm:$0xff] }
 0xe50   :  { %v2197_v43 = vsub.f32 1.0, %v2196_v27  ;;  %v5230_v54 = vadd.f32 1.0, %v3672_v49  ;;  %vm5234_vm12 = vmor %vm2240_vm11, %vm2241_vm10  ;;  %v3674_v13 = vpop.eup %3673  ;;  %2668 = vmatpush.bf16.msrb.mxu0 %v3491_v44 }
 0xe51   :  { %v2237_v46 = vsub.f32 1.0, %v2236_v40  ;;  %v2234_v21 = vadd.f32 1.0, %v3674_v13  ;;  %v3483_v13 = vld [vmem:[#allocation48 + $0x10] sm:$0xff] }
 0xe52   :  { %v2198_v39 = vmul.f32 %v3668_v31, %v2197_v43  ;;  %v2221_v43 = vand.u32 2147483648, %v5230_v54  ;;  %vm2215_vm14 = vweird.f32 %v5230_v54  ;;  %2502 = vmatpush.bf16.msrb.mxu1 %v3483_v13 }
 0xe53   :  { %v2238_v52 = vmul.f32 %v3670_v37, %v2237_v46  ;;  %v2261_v47 = vand.u32 2147483648, %v2234_v21  ;;  %vm2255_vm2 = vweird.f32 %v2234_v21  ;;  %v2259_v48 = vand.u32 2147483647, %v2234_v21 }
 0xe54   :  { %v2199_v45 = vadd.f32 %v3668_v31, %v2198_v39  ;;  %2669 = vmatpush.bf16.msrb.mxu0 %v3490_v33  ;;  %v2222_v40 = vor.u32 1.1754944e-38, %v2221_v43 }
 0xe55   :  { %v2239_v61 = vadd.f32 %v3670_v37, %v2238_v52  ;;  %v2262_v50 = vor.u32 1.1754944e-38, %v2261_v47  ;;  %vm2260_vm4 = vcmp.eq.f32.partialorder %v2259_v48, 8.507059e+37 }
 0xe56   :  { %v2203_v51 = vsel %vm2202_vm8, %v3668_v31, %v2199_v45 }
 0xe57   :  { %v2208_v56 = vsel %vm2205_vm9, %v2207_v53, %v2203_v51  ;;  %v2243_v7 = vsel %vm5234_vm12, %v3670_v37, %v2239_v61  ;;  %v2219_v37 = vand.u32 2147483647, %v5230_v54 }
 0xe58   :  { %v2248_v17 = vsel %vm2245_vm5, %v2247_v14, %v2243_v7  ;;  %2670 = vmatpush.bf16.msrb.mxu0 %v3489_v36 }
 0xe59   :  { %vm2220_vm0 = vcmp.eq.f32.partialorder %v2219_v37, 8.507059e+37 }
 0xe96   :  { %v2268_v55 = vpop.permute.xlu2 %2267 }
 0xe97   :  { %v2273_v57 = vmul.f32 %v2268_v55, %v2208_v56  ;;  %v2288_v55 = vld [vmem:[#allocation46] sm:$0x3] }
 0xe98   :  { %v2290_v56 = vperm.slane %v2288_v55, 0  ;;  %v2291_v11 = vperm.slane %v2288_v55, 1 }
 0xe99   :  { %3675 = vtanh.f32 %v2273_v57 }
 0xe9a   :  { %3677 = vrcp.f32 %v5230_v54 }
 0xe9b   :  { %3679 = vrcp.f32 %v2234_v21 }
 0xe9f   :  { %v3676_v16 = vpop.eup %3675 }
 0xea0   :  { %v2277_v22 = vmul.f32 %v3676_v16, %v2248_v17  ;;  %v3678_v26 = vpop.eup %3677  ;;  %v3482_v17 = vld [vmem:[#allocation48 + $0x8] sm:$0xff] }
 0xea1   :  { %v2211_v29 = vmul.f32 %v3678_v26, %v5230_v54  ;;  %v3680_v32 = vpop.eup %3679  ;;  %vm2216_vm13 = vweird.f32 %v3678_v26  ;;  %2503 = vmatpush.bf16.msrb.mxu1 %v3482_v17 }
 0xea2   :  { %v2251_v35 = vmul.f32 %v3680_v32, %v2234_v21  ;;  %vm2217_vm15 = vmor %vm2215_vm14, %vm2216_vm13  ;;  %vm2256_vm1 = vweird.f32 %v3680_v32 }
 0xea3   :  { %v2212_v31 = vsub.f32 1.0, %v2211_v29  ;;  %vm2257_vm3 = vmor %vm2255_vm2, %vm2256_vm1 }
 0xea4   :  { %v2252_v27 = vsub.f32 1.0, %v2251_v35 }
 0xea5   :  { %v2213_v34 = vmul.f32 %v3678_v26, %v2212_v31 }
 0xea6   :  { %v2253_v39 = vmul.f32 %v3680_v32, %v2252_v27 }
 0xea7   :  { %v2214_v24 = vadd.f32 %v3678_v26, %v2213_v34 }
 0xea8   :  { %v2254_v46 = vadd.f32 %v3680_v32, %v2253_v39 }
 0xea9   :  { %v2218_v38 = vsel %vm2217_vm15, %v3678_v26, %v2214_v24 }
 0xeaa   :  { %v2223_v42 = vsel %vm2220_vm0, %v2222_v40, %v2218_v38  ;;  %v2258_v49 = vsel %vm2257_vm3, %v3680_v32, %v2254_v46 }
 0xeab   :  { %v2263_v52 = vsel %vm2260_vm4, %v2262_v50, %v2258_v49 }
 0xeb6   :  { %v2270_v41 = vpop.permute.xlu0 %2269 }
 0xeb7   :  { %v2274_v45 = vmul.f32 %v2270_v41, %v2223_v42 }
 0xeb9   :  { %3681 = vtanh.f32 %v2274_v45 }
 0xebf   :  { %v3682_v51 = vpop.eup %3681 }
 0xec0   :  { %v2278_v53 = vmul.f32 %v3682_v51, %v2263_v52 }
 0xec2   :  { %v2287_v54 = vpack.c.bf16 %v2278_v53, %v2277_v22  ;;  %v3481_v22 = vld [vmem:[#allocation48] sm:$0xff] }
 0xec3   :  { %2504 = vmatpush.bf16.msrb.mxu1 %v3481_v22  ;;  %v3493_v22 = vld [vmem:[%s5377_s19 + $0x20] sm:$0xff] }
 0xec4   :  { %3275 = vmatmul.msk.bf16.vlgmr.msra.gmra.mxu3 %vm759_vm6, %v2287_v54  ;;  %3276 = vmatmul.msk.bf16.vlgmr.msra.gmra.mxu0 %vm759_vm6, %v2287_v54 }
 0xed4   :  { %3348 = vmatmul.msk.bf16.vlgmr.msrb.gmra.mxu0 %vm759_vm6, %v2585_v12 }
 0xf41   :  { %v2360_v63 = vpop.f32.mrf.mxu0 }
 0xf42   :  { %v2361_v2 = vadd.f32 %v2360_v63, %v2291_v11 }
 0xf44   :  { %v3279_v5 = vmul.f32 -1.442695, %v2361_v2 }
 0xf47   :  { %v2346_v57 = vpop.f32.mrf.mxu3 }
 0xf48   :  { %v2347_v58 = vadd.f32 %v2346_v57, %v2290_v56 }
 0xf49   :  { %v2362_v1 = vpop.f32.mrf.mxu0 }
 0xf4a   :  { %3683 = vtanh.f32 %v2347_v58  ;;  %v3277_v10 = vmul.f32 -1.442695, %v2347_v58  ;;  %v2363_v3 = vadd.f32 %v2362_v1, %v2291_v11 }
 0xf4c   :  { %v3280_v6 = vmul.f32 -1.442695, %v2363_v3 }
 0xf4f   :  { %v2348_v59 = vpop.f32.mrf.mxu3 }
 0xf50   :  { %v3684_v60 = vpop.eup %3683  ;;  %v2349_v61 = vadd.f32 %v2348_v59, %v2290_v56 }
 0xf51   :  { %2445 = vrot.lane.b32.xlu2 %v3684_v60, %s4626_s1 }
 0xf52   :  { %3685 = vtanh.f32 %v2349_v61  ;;  %v3278_v12 = vmul.f32 -1.442695, %v2349_v61 }
 0xf53   :  { %3687 = vpow2.f32 %v3277_v10 }
 0xf54   :  { %3689 = vpow2.f32 %v3278_v12 }
 0xf55   :  { %3691 = vpow2.f32 %v3279_v5 }
 0xf56   :  { %3693 = vpow2.f32 %v3280_v6 }
 0xf58   :  { %v3686_v62 = vpop.eup %3685 }
 0xf59   :  { %2447 = vrot.lane.b32.xlu0 %v3686_v62, %s4626_s1  ;;  %v3688_v4 = vpop.eup %3687  ;;  %s5378_s1 = sld [smem:[#allocation94_spill]] }
 0xf5a   :  { %v2371_v7 = vadd.f32 1.0, %v3688_v4  ;;  %v3690_v8 = vpop.eup %3689 }
 0xf5b   :  { %v2372_v9 = vadd.f32 1.0, %v3690_v8  ;;  %v3692_v14 = vpop.eup %3691 }
 0xf5c   :  { %3695 = vrcp.f32 %v2371_v7  ;;  %v3694_v15 = vpop.eup %3693  ;;  %v5258_v18 = vadd.f32 1.0, %v3692_v14  ;;  %v2384_v34 = vand.u32 2147483648, %v2371_v7  ;;  %vm2378_vm8 = vweird.f32 %v2371_v7 }
 0xf5d   :  { %3697 = vrcp.f32 %v2372_v9  ;;  %v5260_v19 = vadd.f32 1.0, %v3694_v15  ;;  %v2382_v35 = vand.u32 2147483647, %v2371_v7  ;;  %v2399_v39 = vand.u32 2147483648, %v2372_v9 }
 0xf5e   :  { %3699 = vrcp.f32 %v5258_v18  ;;  %v2385_v38 = vor.u32 1.1754944e-38, %v2384_v34  ;;  %vm2393_vm12 = vweird.f32 %v2372_v9  ;;  %v2397_v40 = vand.u32 2147483647, %v2372_v9  ;;  %v3500_v34 = vld [vmem:[#allocation52 + $0x18] sm:$0xff] }
 0xf5f   :  { %3701 = vrcp.f32 %v5260_v19  ;;  %vm2383_vm11 = vcmp.eq.f32.partialorder %v2382_v35, 8.507059e+37  ;;  %v2400_v48 = vor.u32 1.1754944e-38, %v2399_v39  ;;  %vm2418_vm0 = vweird.f32 %v5258_v18  ;;  %v3488_v2 = vld [vmem:[%s5378_s1 + $0x18] sm:$0xff]  ;;  %v3487_v3 = vld [vmem:[%s5378_s1 + $0x10] sm:$0xff]  ;;  %v3486_v4 = vld [vmem:[%s5378_s1 + $0x8] sm:$0xff]  ;;  %2729 = vmatpush.bf16.msra.mxu1 %v3500_v34 }
 0xf60   :  { %vm2398_vm13 = vcmp.eq.f32.partialorder %v2397_v40, 8.507059e+37  ;;  %v2424_v54 = vand.u32 2147483648, %v5258_v18  ;;  %v2439_v55 = vand.u32 2147483648, %v5260_v19  ;;  %v2422_v56 = vand.u32 2147483647, %v5258_v18  ;;  %2561 = vmatpush.bf16.msra.mxu2 %v3488_v2  ;;  %v3485_v5 = vld [vmem:[%s5378_s1] sm:$0xff] }
 0xf61   :  { %vm2433_vm2 = vweird.f32 %v5260_v19  ;;  %v2437_v57 = vand.u32 2147483647, %v5260_v19  ;;  %v3499_v35 = vld [vmem:[#allocation52 + $0x10] sm:$0xff]  ;;  %v3608_v39 = vld [vmem:[%s5379_s7] ss:$0 sm:$0xff] }
 0xf62   :  { %v3696_v16 = vpop.eup %3695  ;;  %v2425_v61 = vor.u32 1.1754944e-38, %v2424_v54  ;;  %v2440_v62 = vor.u32 1.1754944e-38, %v2439_v55  ;;  %vm2423_vm4 = vcmp.eq.f32.partialorder %v2422_v56, 8.507059e+37  ;;  %v3609_v54 = vld [vmem:[%s4857_s8] ss:$0 sm:$0xff] }
 0xf63   :  { %v2374_v20 = vmul.f32 %v3696_v16, %v2371_v7  ;;  %v3698_v21 = vpop.eup %3697  ;;  %vm2379_vm7 = vweird.f32 %v3696_v16  ;;  %v3606_v7 = vld [vmem:[#allocation49] ss:$0 sm:$0xff]  ;;  %2730 = vmatpush.bf16.msra.mxu1 %v3499_v35 }
 0xf64   :  { %v2389_v25 = vmul.f32 %v3698_v21, %v2372_v9  ;;  %v3700_v29 = vpop.eup %3699  ;;  %vm2380_vm9 = vmor %vm2378_vm8, %vm2379_vm7  ;;  %vm2394_vm10 = vweird.f32 %v3698_v21  ;;  %vm2438_vm7 = vcmp.eq.f32.partialorder %v2437_v57, 8.507059e+37  ;;  %2562 = vmatpush.bf16.msra.mxu2 %v3487_v3 }
 0xf65   :  { %v2375_v23 = vsub.f32 1.0, %v2374_v20  ;;  %v3702_v30 = vpop.eup %3701  ;;  %v2414_v32 = vmul.f32 %v3700_v29, %v5258_v18  ;;  %vm2395_vm5 = vmor %vm2393_vm12, %vm2394_vm10  ;;  %vm2419_vm14 = vweird.f32 %v3700_v29  ;;  %v3495_v20 = vld [vmem:[%s5377_s19 + $0x30] sm:$0xff]  ;;  %vm2795_vm12 = vcmask 31744  }
 0xf66   :  { %v2390_v28 = vsub.f32 1.0, %v2389_v25  ;;  %v2429_v33 = vmul.f32 %v3702_v30, %v5260_v19  ;;  %vm2434_vm15 = vweird.f32 %v3702_v30  ;;  %vm2420_vm1 = vmor %vm2418_vm0, %vm2419_vm14  ;;  %v3496_v19 = vld [vmem:[%s5377_s19 + $0x38] sm:$0xff] }
 0xf67   :  { %v2376_v26 = vmul.f32 %v3696_v16, %v2375_v23  ;;  %v2415_v27 = vsub.f32 1.0, %v2414_v32  ;;  %vm2435_vm3 = vmor %vm2433_vm2, %vm2434_vm15  ;;  %2626 = vmatpush.bf16.msrb.mxu3 %v3496_v19  ;;  %v3607_v25 = vld [vmem:[#allocation51] ss:$0 sm:$0xff] }
 0xf68   :  { %v2391_v31 = vmul.f32 %v3698_v21, %v2390_v28  ;;  %v2430_v43 = vsub.f32 1.0, %v2429_v33  ;;  %2563 = vmatpush.bf16.msra.mxu2 %v3486_v4 }
 0xf69   :  { %v2377_v44 = vadd.f32 %v3696_v16, %v2376_v26  ;;  %v2416_v46 = vmul.f32 %v3700_v29, %v2415_v27  ;;  %v3504_v27 = vld [vmem:[%s4862_s21 + $0x18] sm:$0xff] }
 0xf6a   :  { %v2392_v24 = vadd.f32 %v3698_v21, %v2391_v31  ;;  %v2431_v47 = vmul.f32 %v3702_v30, %v2430_v43  ;;  %v2672_v43 = vpop.f32.mrf.mxu0 }
 0xf6b   :  { %v2381_v36 = vsel %vm2380_vm9, %v3696_v16, %v2377_v44  ;;  %v2417_v52 = vadd.f32 %v3700_v29, %v2416_v46  ;;  %2627 = vmatpush.bf16.msrb.mxu3 %v3495_v20 }
 0xf6c   :  { %v2386_v41 = vsel %vm2383_vm11, %v2385_v38, %v2381_v36  ;;  %v2396_v45 = vsel %vm2395_vm5, %v3698_v21, %v2392_v24  ;;  %v2432_v53 = vadd.f32 %v3702_v30, %v2431_v47  ;;  %2564 = vmatpush.bf16.msra.mxu2 %v3485_v5  ;;  %v3494_v21 = vld [vmem:[%s5377_s19 + $0x28] sm:$0xff]  ;;  %v3497_v24 = vld [vmem:[#allocation52] sm:$0xff] }
 0xf6d   :  { %v2401_v50 = vsel %vm2398_vm13, %v2400_v48, %v2396_v45  ;;  %v2421_v58 = vsel %vm2420_vm1, %v3700_v29, %v2417_v52  ;;  %v3498_v36 = vld [vmem:[#allocation52 + $0x8] sm:$0xff] }
 0xf6e   :  { %v2436_v59 = vsel %vm2435_vm3, %v3702_v30, %v2432_v53  ;;  %v2426_v0 = vsel %vm2423_vm4, %v2425_v61, %v2421_v58  ;;  %2731 = vmatpush.bf16.msra.mxu1 %v3498_v36  ;;  %v3501_v52 = vld [vmem:[%s4862_s21] sm:$0xff] }
 0xf6f   :  { %v2441_v10 = vsel %vm2438_vm7, %v2440_v62, %v2436_v59  ;;  %2628 = vmatpush.bf16.msrb.mxu3 %v3494_v21  ;;  %v3610_v61 = vld [vmem:[%s4867_s5] ss:$0 sm:$0xff] }
 0xf70   :  { %2785 = vmatpush.bf16.msrb.mxu2 %v3504_v27 }
 0xf72   :  { %2732 = vmatpush.bf16.msra.mxu1 %v3497_v24  ;;  %v2674_v40 = vpop.f32.mrf.mxu0 }
 0xf73   :  { %2629 = vmatpush.bf16.msrb.mxu3 %v3493_v22 }
 0xfab   :  { %v2446_v37 = vpop.permute.xlu2 %2445 }
 0xfac   :  { %v2451_v42 = vmul.f32 %v2446_v37, %v2386_v41 }
 0xfae   :  { %3703 = vtanh.f32 %v2451_v42 }
 0xfb4   :  { %v3704_v60 = vpop.eup %3703 }
 0xfb5   :  { %v2455_v11 = vmul.f32 %v3704_v60, %v2426_v0 }
 0xfcb   :  { %v2448_v49 = vpop.permute.xlu0 %2447 }
 0xfcc   :  { %v2452_v51 = vmul.f32 %v2448_v49, %v2401_v50  ;;  %v3503_v50 = vld [vmem:[%s4862_s21 + $0x10] sm:$0xff] }
 0xfcd   :  { %2786 = vmatpush.bf16.msrb.mxu2 %v3503_v50 }
 0xfce   :  { %3705 = vtanh.f32 %v2452_v51  ;;  %v3502_v51 = vld [vmem:[%s4862_s21 + $0x8] sm:$0xff] }
 0xfd1   :  { %2787 = vmatpush.bf16.msrb.mxu2 %v3502_v51 }
 0xfd4   :  { %v3706_v63 = vpop.eup %3705 }
 0xfd5   :  { %v2456_v12 = vmul.f32 %v3706_v63, %v2441_v10  ;;  %2788 = vmatpush.bf16.msrb.mxu2 %v3501_v52 }
 0xfd7   :  { %v2465_v1 = vpack.c.bf16 %v2456_v12, %v2455_v11 }
 0xfd9   :  { %3297 = vmatmul.msk.bf16.vlgmr.msrb.gmra.mxu1 %vm759_vm6, %v2465_v1 }
0x1056   :  { %v2506_v6 = vpop.f32.mrf.mxu1 }
0x1057   :  { %v2507_v8 = vadd.f32 %v3606_v7, %v2506_v6 }
0x1059   :  { %v2513_v13 = vmul.f32 0.01, %v2507_v8  ;;  %vm2511_vm8 = vcmp.gt.f32.partialorder %v2507_v8, 0.0 }
0x105b   :  { %v2515_v16 = vsel %vm2511_vm8, %v2507_v8, %v2513_v13 }
0x105e   :  { %v2508_v9 = vpop.f32.mrf.mxu1 }
0x105f   :  { %v2509_v14 = vadd.f32 %v3606_v7, %v2508_v9 }
0x1061   :  { %vm2512_vm9 = vcmp.gt.f32.partialorder %v2509_v14, 0.0  ;;  %v2514_v15 = vmul.f32 0.01, %v2509_v14 }
0x1063   :  { %v2516_v17 = vsel %vm2512_vm9, %v2509_v14, %v2514_v15 }
0x1064   :  { %v2525_v18 = vpack.c.bf16 %v2516_v17, %v2515_v16 }
0x1066   :  { %3314 = vmatmul.msk.bf16.vlgmr.msra.gmra.mxu2 %vm759_vm6, %v2525_v18 }
0x10e9   :  { %v2566_v23 = vpop.f32.mrf.mxu2 }
0x10ea   :  { %v2567_v26 = vadd.f32 %v3607_v25, %v2566_v23 }
0x10ec   :  { %v2573_v29 = vmul.f32 0.01, %v2567_v26  ;;  %vm2571_vm10 = vcmp.gt.f32.partialorder %v2567_v26, 0.0 }
0x10ee   :  { %v2575_v31 = vsel %vm2571_vm10, %v2567_v26, %v2573_v29 }
0x10f1   :  { %v2568_v28 = vpop.f32.mrf.mxu2 }
0x10f2   :  { %v2569_v30 = vadd.f32 %v3607_v25, %v2568_v28 }
0x10f4   :  { %vm2572_vm11 = vcmp.gt.f32.partialorder %v2569_v30, 0.0  ;;  %v2574_v44 = vmul.f32 0.01, %v2569_v30 }
0x10f6   :  { %v2576_v32 = vsel %vm2572_vm11, %v2569_v30, %v2574_v44 }
0x10f7   :  { %v2594_v33 = vpack.c.bf16 %v2576_v32, %v2575_v31 }
0x10f9   :  { %3331 = vmatmul.msk.bf16.vlgmr.msrb.gmra.mxu3 %vm759_vm6, %v2594_v33 }
0x117c   :  { %v2631_v37 = vpop.f32.mrf.mxu3 }
0x117d   :  { %v2673_v38 = vadd.f32 %v2672_v43, %v2631_v37 }
0x117f   :  { %v2681_v42 = vadd.f32 %v3608_v39, %v2673_v38 }
0x1181   :  { %v2683_v47 = vmax.f32 %v2681_v42, 0.0 }
0x1184   :  { %v2633_v41 = vpop.f32.mrf.mxu3 }
0x1185   :  { %v2675_v45 = vadd.f32 %v2674_v40, %v2633_v41 }
0x1187   :  { %v2682_v46 = vadd.f32 %v3608_v39, %v2675_v45 }
0x1189   :  { %v2684_v48 = vmax.f32 %v2682_v46, 0.0 }
0x118b   :  { %v2693_v49 = vpack.c.bf16 %v2684_v48, %v2683_v47 }
0x118d   :  { %3365 = vmatmul.msk.bf16.vlgmr.msra.gmra.mxu1 %vm759_vm6, %v2693_v49 }
0x120a   :  { %v2734_v53 = vpop.f32.mrf.mxu1 }
0x120b   :  { %v2735_v55 = vadd.f32 %v3609_v54, %v2734_v53 }
0x120d   :  { %v2739_v58 = vmax.f32 %v2735_v55, 0.0 }
0x1212   :  { %v2736_v56 = vpop.f32.mrf.mxu1 }
0x1213   :  { %v2737_v57 = vadd.f32 %v3609_v54, %v2736_v56 }
0x1215   :  { %v2740_v59 = vmax.f32 %v2737_v57, 0.0 }
0x1217   :  { %v2749_v60 = vpack.c.bf16 %v2740_v59, %v2739_v58 }
0x1219   :  { %3382 = vmatmul.msk.bf16.vlgmr.msrb.gmra.mxu2 %vm759_vm6, %v2749_v60 }
0x129c   :  { %v2790_v62 = vpop.f32.mrf.mxu2 }
0x129d   :  { %v2791_v63 = vadd.f32 %v3610_v61, %v2790_v62 }
0x129f   :  { %2796 = vst.msk [vmem:[%s4872_s13] sm:$0xff] %vm2795_vm12, %v2791_v63 }
0x12a4   :  { %v2792_v0 = vpop.f32.mrf.mxu2 }
0x12a5   :  { %v2793_v10 = vadd.f32 %v3610_v61, %v2792_v0 }
0x12a7   :  { %2797 = vst.msk [vmem:[%s4872_s13 + $0x8] sm:$0xff] %vm2795_vm12, %v2793_v10 }
0x12a8   :  { %2802 = vsyncpa [#allocation3], 1 }
0x12a9   :  { %2803 = vsyncpa [#allocation5], 1 }
0x12aa   :  { %2804 = vsyncpa [#allocation8], 1 }
0x12ab   :  { %2805 = vsyncpa [#allocation11], 1 }
0x12ac   :  { %2806 = vsyncpa [#allocation14], 1 }
0x12ad   :  { %2807 = vsyncpa [#allocation17], 1 }
0x12ae   :  { %2808 = vsyncpa [#allocation20], 1 }
0x12af   :  { %2809 = vsyncpa [#allocation23], 1 }
0x12b0   :  { %2810 = vsyncpa [#allocation26], 1 }
0x12b1   :  { %2811 = vsyncpa [#allocation29], 1 }
0x12b2   :  { %2812 = vsyncpa [#allocation32], 1 }
0x12b3   :  { %2813 = vsyncpa [#allocation35], 1 }
0x12b4   :  { %2814 = vsyncpa [#allocation38], 1 }
0x12b5   :  { %2815 = vsyncpa [#allocation41], 1 }
0x12b6   :  { %2816 = vsyncpa [#allocation44], 1 }
0x12b7   :  { %2817 = vsyncpa [#allocation47], 1 }
0x12b8   :  { %2818 = vsyncpa [#allocation50], 1 }
0x12b9   :  { %2819 = vsyncpa [#allocation53], 1 }

</bundles_post_ra>
